<compile_context>
chip_gen: v5e
topology: v5e:2x2
jax: 0.10.0
libtpu: 0.0.40
codegen_flags: <defaults>
</compile_context>

<pallas_src>
import functools
import math

import numpy as np
import jax
import jax.numpy as jnp
from jax import lax
from jax.experimental import pallas as pl
from jax.experimental.pallas import tpu as pltpu


def _seghead_kernel(xp_ref, w3_ref, bnb_ref, w1_ref, b1_ref, uwt_ref, uhb_ref,
                    o_ref, *, CIN, BT, H, W, HO, WO, COUT):
    L = BT * H * W
    xp = xp_ref[...]                                   # (CIN, BT, H+2, W+2) bf16

    # ---- im2col built in VMEM from the single padded plane (no 9x HBM traffic) ----
    taps = [xp[:, :, dy:dy + H, dx:dx + W].reshape(CIN, L)
            for dy in range(3) for dx in range(3)]
    xcol = jnp.concatenate(taps, axis=0)               # (9*CIN, L) bf16

    # ---- 3x3 conv (pad=1, no bias; BN scale pre-folded into weights): one GEMM ----
    fm = jnp.dot(w3_ref[...], xcol, preferred_element_type=jnp.float32)   # (CMID, L)

    # ---- remaining BatchNorm bias + ReLU (f32 elementwise) ----
    fm = jnp.maximum(fm + bnb_ref[...], 0.0)

    # ---- 1x1 conv with bias ----
    logits = jnp.dot(w1_ref[...], fm.astype(jnp.bfloat16),
                     preferred_element_type=jnp.float32) + b1_ref[...]    # (COUT, L)

    # ---- separable bilinear upsample (align_corners=True), no explicit .T relayouts ----
    # single lane-split relayout of the logits, then leading-dim moves only
    lg = logits.astype(jnp.bfloat16).reshape(COUT, BT, H, W)
    lg = jnp.transpose(lg, (1, 0, 2, 3)).reshape(BT * COUT * H, W)
    # W interp: plain 2-D GEMM against uw^T
    s = jnp.dot(lg, uwt_ref[...], preferred_element_type=jnp.float32)     # (BT*COUT*H, WO)
    # H interp: standard batched matmul (batch = BT*COUT), Mosaic handles layouts
    s = s.astype(jnp.bfloat16).reshape(BT * COUT, H, WO)
    t = jnp.einsum('nph,nhq->npq', uhb_ref[...], s,
                   preferred_element_type=jnp.float32)                    # (BT*COUT, HO, WO)

    # ---- NCHW-flattened, lane-dense store ----
    o_ref[...] = t.reshape(BT, COUT, HO * WO).astype(o_ref.dtype)


def make_interp_matrix(n_out, n_in):
    """Interpolation matrix matching F.interpolate(mode='bilinear', align_corners=True)."""
    m = np.zeros((n_out, n_in), np.float32)
    if n_in == 1 or n_out == 1:
        m[:, 0] = 1.0
        return m
    for i in range(n_out):
        src = i * (n_in - 1) / (n_out - 1)
        lo = int(np.floor(src))
        hi = min(lo + 1, n_in - 1)
        w = src - lo
        m[i, lo] += 1.0 - w
        m[i, hi] += w
    return m


def _pick_batch_tile(n, hw, target_lanes=512):
    """Grow the per-step batch tile until the conv-GEMM lane dim reaches ~target_lanes,
    but keep >=2 grid steps when the batch allows (v7x has 2 TensorCores)."""
    bt = 1
    while bt * hw < target_lanes and n % (bt * 2) == 0 and n // (bt * 2) >= 2:
        bt *= 2
    return bt


def seg_head_pallas(x_nchw, w3_oihw, bn_gamma, bn_beta, bn_mean, bn_var,
                    w1_oihw, b1, scale, eps=1e-5, b_tile=None):
    N, CIN, H, W = x_nchw.shape
    CMID = w3_oihw.shape[0]
    COUT = w1_oihw.shape[0]
    # Matches F.interpolate(scale_factor=scale) only when scale > 1 (module skips otherwise).
    if scale > 1:
        HO, WO = int(math.floor(H * scale)), int(math.floor(W * scale))
    else:
        HO, WO = H, W
    Hp, Wp = H + 2, W + 2

    if b_tile is None:
        b_tile = _pick_batch_tile(N, H * W)
    assert N % b_tile == 0
    grid_n = N // b_tile

    # ---- wrapper-side prep (plain XLA, once per call) ----
    # Zero-padded activation, channel-major so each grid step DMAs (CIN, BT, Hp, Wp).
    xpad = jnp.pad(x_nchw.astype(jnp.float32), ((0, 0), (0, 0), (1, 1), (1, 1)))
    xpad = jnp.transpose(xpad, (1, 0, 2, 3)).astype(jnp.bfloat16)     # (CIN, N, Hp, Wp)

    # Eval-mode BatchNorm folded: scale into w3 (f32 fold -> bf16), bias kept separate.
    inv = 1.0 / jnp.sqrt(bn_var.astype(jnp.float32) + eps)
    bn_s = bn_gamma.astype(jnp.float32) * inv                          # (CMID,)
    bn_b = (bn_beta.astype(jnp.float32)
            - bn_mean.astype(jnp.float32) * bn_s).reshape(CMID, 1)     # (CMID, 1) f32
    w3s = w3_oihw.astype(jnp.float32) * bn_s[:, None, None, None]
    # (CMID, CIN, 3, 3) -> (CMID, 9*CIN), column = (dy*3 + dx)*CIN + cin (matches taps order).
    w3t = jnp.transpose(w3s, (0, 2, 3, 1)).reshape(CMID, 9 * CIN).astype(jnp.bfloat16)

    w1t = w1_oihw[:, :, 0, 0].astype(jnp.bfloat16)                     # (COUT, CMID)
    b1c = b1.reshape(COUT, 1).astype(jnp.float32)

    # Separable bilinear operators (align_corners=True), bf16 matmul operands.
    uh = make_interp_matrix(HO, H)
    uw = make_interp_matrix(WO, W)
    uwt = jnp.asarray(uw.T, jnp.bfloat16)                              # (W, WO)
    uhb = jnp.tile(jnp.asarray(uh, jnp.bfloat16)[None],
                   (b_tile * COUT, 1, 1))                              # (BT*COUT, HO, H)

    kernel = functools.partial(_seghead_kernel, CIN=CIN, BT=b_tile,
                               H=H, W=W, HO=HO, WO=WO, COUT=COUT)

    flops = 2 * N * (CMID * 9 * CIN * H * W      # 3x3 conv GEMM
                     + COUT * CMID * H * W       # 1x1 conv GEMM
                     + COUT * H * W * WO         # W interp
                     + COUT * H * WO * HO)       # H interp
    bytes_accessed = int(xpad.size * 2 + w3t.size * 2 + w1t.size * 2
                         + uwt.size * 2 + uhb.size * 2
                         + (bn_b.size + b1c.size) * 4
                         + N * COUT * HO * WO * 4)

    out_flat = pl.pallas_call(
        kernel,
        out_shape=jax.ShapeDtypeStruct((N, COUT, HO * WO), jnp.float32),
        grid_spec=pltpu.PrefetchScalarGridSpec(
            num_scalar_prefetch=0,
            grid=(grid_n,),
            in_specs=[
                pl.BlockSpec((CIN, b_tile, Hp, Wp), lambda n: (0, n, 0, 0)),  # padded activation
                pl.BlockSpec((CMID, 9 * CIN), lambda n: (0, 0)),              # conv3x3 w (BN-scaled)
                pl.BlockSpec((CMID, 1), lambda n: (0, 0)),                    # BN bias
                pl.BlockSpec((COUT, CMID), lambda n: (0, 0)),                 # conv1x1 w
                pl.BlockSpec((COUT, 1), lambda n: (0, 0)),                    # conv1x1 bias
                pl.BlockSpec((W, WO), lambda n: (0, 0)),                      # uw^T
                pl.BlockSpec((b_tile * COUT, HO, H), lambda n: (0, 0, 0)),    # uh (batched)
            ],
            out_specs=pl.BlockSpec((b_tile, COUT, HO * WO), lambda n: (n, 0, 0)),
        ),
        compiler_params=pltpu.CompilerParams(dimension_semantics=("parallel",)),
        cost_estimate=pl.CostEstimate(flops=flops, transcendentals=0,
                                      bytes_accessed=bytes_accessed),
    )(xpad, w3t, bn_b, w1t, b1c, uwt, uhb)

    # NCHW-flattened -> NCHW (pure metadata reshape).
    return out_flat.reshape(N, COUT, HO, WO)


def seg_head_reference(x_nchw, w3, gamma, beta, mean, var, w1, b1, scale, eps=1e-5):
    """Pure-JAX f32 reference of the same forward (eval-mode BN)."""
    x = jnp.transpose(x_nchw, (0, 2, 3, 1))
    w3_hwio = jnp.transpose(w3, (2, 3, 1, 0))
    fm = lax.conv_general_dilated(x, w3_hwio, (1, 1), "SAME",
                                  dimension_numbers=("NHWC", "HWIO", "NHWC"))
    s = gamma / jnp.sqrt(var + eps)
    fm = jnp.maximum(fm * s + (beta - mean * s), 0.0)
    out = jnp.einsum("nhwi,oi->nhwo", fm, w1[:, :, 0, 0]) + b1
    H, W = x.shape[1], x.shape[2]
    HO = int(H * scale) if scale > 1 else H
    WO = int(W * scale) if scale > 1 else W
    uh = jnp.asarray(make_interp_matrix(HO, H))
    uw = jnp.asarray(make_interp_matrix(WO, W))
    out = jnp.einsum("oh,pw,nhwc->nopc", uh, uw, out)
    return jnp.transpose(out, (0, 3, 1, 2))  # NCHW


if __name__ == "__main__":
    # SegHead(in_planes=8, out_planes=8, scale=2, is_aux=False) -> mid channels = 64
    N, CIN, H, W = 2, 8, 16, 16
    CMID, COUT, SCALE = 64, 8, 2

    key = jax.random.PRNGKey(0)
    ks = jax.random.split(key, 8)
    x = jax.random.normal(ks[0], (N, CIN, H, W), jnp.float32)
    w3 = 0.1 * jax.random.normal(ks[1], (CMID, CIN, 3, 3), jnp.float32)
    gamma = 1.0 + 0.1 * jax.random.normal(ks[2], (CMID,), jnp.float32)
    beta = 0.1 * jax.random.normal(ks[3], (CMID,), jnp.float32)
    mean = 0.05 * jax.random.normal(ks[4], (CMID,), jnp.float32)
    var = jnp.abs(1.0 + 0.1 * jax.random.normal(ks[5], (CMID,), jnp.float32))
    w1 = 0.1 * jax.random.normal(ks[6], (COUT, CMID, 1, 1), jnp.float32)
    b1 = 0.1 * jax.random.normal(ks[7], (COUT,), jnp.float32)

    out = seg_head_pallas(x, w3, gamma, beta, mean, var, w1, b1, SCALE)
    out = jax.block_until_ready(out)
    assert out.shape == (N, COUT, H * SCALE, W * SCALE), out.shape

    ref = seg_head_reference(x, w3, gamma, beta, mean, var, w1, b1, SCALE)
    # bf16 matmul operands (conv + interp path) with f32 accumulation vs f32 reference.
    np.testing.assert_allclose(np.asarray(out), np.asarray(ref), rtol=2e-2, atol=3e-2)

    print("KERNEL_OK")
</pallas_src>

<mosaic_0001>
module attributes {stable_mosaic.version = 11 : i64} {
  func.func @_seghead_kernel(%arg0: i32, %arg1: memref<8x1x18x18xbf16, #tpu.memory_space<vmem>>, %arg2: memref<64x72xbf16, #tpu.memory_space<vmem>>, %arg3: memref<64x1xf32, #tpu.memory_space<vmem>>, %arg4: memref<8x64xbf16, #tpu.memory_space<vmem>>, %arg5: memref<8x1xf32, #tpu.memory_space<vmem>>, %arg6: memref<16x32xbf16, #tpu.memory_space<vmem>>, %arg7: memref<8x32x16xbf16, #tpu.memory_space<vmem>>, %arg8: memref<1x8x1024xf32, #tpu.memory_space<vmem>>) attributes {dimension_semantics = [#tpu.dimension_semantics<parallel>], iteration_bounds = array<i64: 2>, scalar_prefetch = 0 : i64, scratch_operands = 0 : i64, tpu.core_type = #tpu.core_type<tc>, window_params = [{transform_indices = @transform_0, window_bounds = array<i64: 8, 1, 18, 18>}, {pipeline_mode = #tpu.pipeline_mode<synchronous>, transform_indices = @transform_1, window_bounds = array<i64: 64, 72>}, {pipeline_mode = #tpu.pipeline_mode<synchronous>, transform_indices = @transform_2, window_bounds = array<i64: 64, 1>}, {pipeline_mode = #tpu.pipeline_mode<synchronous>, transform_indices = @transform_3, window_bounds = array<i64: 8, 64>}, {pipeline_mode = #tpu.pipeline_mode<synchronous>, transform_indices = @transform_4, window_bounds = array<i64: 8, 1>}, {pipeline_mode = #tpu.pipeline_mode<synchronous>, transform_indices = @transform_5, window_bounds = array<i64: 16, 32>}, {pipeline_mode = #tpu.pipeline_mode<synchronous>, transform_indices = @transform_6, window_bounds = array<i64: 8, 32, 16>}, {transform_indices = @transform_7, window_bounds = array<i64: 1, 8, 1024>}]} {
    %c0 = arith.constant 0 : index
    %c0_0 = arith.constant 0 : index
    %c0_1 = arith.constant 0 : index
    %c0_2 = arith.constant 0 : index
    %0 = vector.load %arg1[%c0, %c0_0, %c0_1, %c0_2] : memref<8x1x18x18xbf16, #tpu.memory_space<vmem>>, vector<8x1x18x18xbf16>
    %1 = vector.extract_strided_slice %0 {offsets = [0, 0, 0, 0], sizes = [8, 1, 16, 16], strides = [1, 1, 1, 1]} : vector<8x1x18x18xbf16> to vector<8x1x16x16xbf16>
    %2 = vector.shape_cast %1 : vector<8x1x16x16xbf16> to vector<8x256xbf16>
    %3 = vector.extract_strided_slice %0 {offsets = [0, 0, 0, 1], sizes = [8, 1, 16, 16], strides = [1, 1, 1, 1]} : vector<8x1x18x18xbf16> to vector<8x1x16x16xbf16>
    %4 = vector.shape_cast %3 : vector<8x1x16x16xbf16> to vector<8x256xbf16>
    %5 = vector.extract_strided_slice %0 {offsets = [0, 0, 0, 2], sizes = [8, 1, 16, 16], strides = [1, 1, 1, 1]} : vector<8x1x18x18xbf16> to vector<8x1x16x16xbf16>
    %6 = vector.shape_cast %5 : vector<8x1x16x16xbf16> to vector<8x256xbf16>
    %7 = vector.extract_strided_slice %0 {offsets = [0, 0, 1, 0], sizes = [8, 1, 16, 16], strides = [1, 1, 1, 1]} : vector<8x1x18x18xbf16> to vector<8x1x16x16xbf16>
    %8 = vector.shape_cast %7 : vector<8x1x16x16xbf16> to vector<8x256xbf16>
    %9 = vector.extract_strided_slice %0 {offsets = [0, 0, 1, 1], sizes = [8, 1, 16, 16], strides = [1, 1, 1, 1]} : vector<8x1x18x18xbf16> to vector<8x1x16x16xbf16>
    %10 = vector.shape_cast %9 : vector<8x1x16x16xbf16> to vector<8x256xbf16>
    %11 = vector.extract_strided_slice %0 {offsets = [0, 0, 1, 2], sizes = [8, 1, 16, 16], strides = [1, 1, 1, 1]} : vector<8x1x18x18xbf16> to vector<8x1x16x16xbf16>
    %12 = vector.shape_cast %11 : vector<8x1x16x16xbf16> to vector<8x256xbf16>
    %13 = vector.extract_strided_slice %0 {offsets = [0, 0, 2, 0], sizes = [8, 1, 16, 16], strides = [1, 1, 1, 1]} : vector<8x1x18x18xbf16> to vector<8x1x16x16xbf16>
    %14 = vector.shape_cast %13 : vector<8x1x16x16xbf16> to vector<8x256xbf16>
    %15 = vector.extract_strided_slice %0 {offsets = [0, 0, 2, 1], sizes = [8, 1, 16, 16], strides = [1, 1, 1, 1]} : vector<8x1x18x18xbf16> to vector<8x1x16x16xbf16>
    %16 = vector.shape_cast %15 : vector<8x1x16x16xbf16> to vector<8x256xbf16>
    %17 = vector.extract_strided_slice %0 {offsets = [0, 0, 2, 2], sizes = [8, 1, 16, 16], strides = [1, 1, 1, 1]} : vector<8x1x18x18xbf16> to vector<8x1x16x16xbf16>
    %18 = vector.shape_cast %17 : vector<8x1x16x16xbf16> to vector<8x256xbf16>
    %19 = tpu.concatenate %2, %4, %6, %8, %10, %12, %14, %16, %18 in 0 : vector<8x256xbf16>, vector<8x256xbf16>, vector<8x256xbf16>, vector<8x256xbf16>, vector<8x256xbf16>, vector<8x256xbf16>, vector<8x256xbf16>, vector<8x256xbf16>, vector<8x256xbf16> -> vector<72x256xbf16>
    %c0_3 = arith.constant 0 : index
    %c0_4 = arith.constant 0 : index
    %20 = vector.load %arg2[%c0_3, %c0_4] : memref<64x72xbf16, #tpu.memory_space<vmem>>, vector<64x72xbf16>
    %cst = arith.constant dense<0.000000e+00> : vector<64x256xf32>
    %21 = tpu.matmul %20, %19, %cst {dimension_numbers = #tpu.dot_dimension_numbers<[1], [0], [0], [1], [0, 0, 1, 1], [], []>} : vector<64x72xbf16>, vector<72x256xbf16>, vector<64x256xf32> -> vector<64x256xf32>
    %c0_5 = arith.constant 0 : index
    %c0_6 = arith.constant 0 : index
    %22 = vector.load %arg3[%c0_5, %c0_6] : memref<64x1xf32, #tpu.memory_space<vmem>>, vector<64x1xf32>
    %23 = vector.broadcast %22 : vector<64x1xf32> to vector<64x256xf32>
    %24 = arith.addf %21, %23 : vector<64x256xf32>
    %cst_7 = arith.constant 0.000000e+00 : f32
    %25 = vector.broadcast %cst_7 : f32 to vector<64x256xf32>
    %26 = arith.maximumf %24, %25 : vector<64x256xf32>
    %c0_8 = arith.constant 0 : index
    %c0_9 = arith.constant 0 : index
    %27 = vector.load %arg4[%c0_8, %c0_9] : memref<8x64xbf16, #tpu.memory_space<vmem>>, vector<8x64xbf16>
    %28 = arith.truncf %26 : vector<64x256xf32> to vector<64x256xbf16>
    %cst_10 = arith.constant dense<0.000000e+00> : vector<8x256xf32>
    %29 = tpu.matmul %27, %28, %cst_10 {dimension_numbers = #tpu.dot_dimension_numbers<[1], [0], [0], [1], [0, 0, 1, 1], [], []>} : vector<8x64xbf16>, vector<64x256xbf16>, vector<8x256xf32> -> vector<8x256xf32>
    %c0_11 = arith.constant 0 : index
    %c0_12 = arith.constant 0 : index
    %30 = vector.load %arg5[%c0_11, %c0_12] : memref<8x1xf32, #tpu.memory_space<vmem>>, vector<8x1xf32>
    %31 = vector.broadcast %30 : vector<8x1xf32> to vector<8x256xf32>
    %32 = arith.addf %29, %31 : vector<8x256xf32>
    %33 = arith.truncf %32 : vector<8x256xf32> to vector<8x256xbf16>
    %34 = vector.shape_cast %33 : vector<8x256xbf16> to vector<8x1x16x16xbf16>
    %35 = tpu.transpose %34, [1, 0, 2, 3] : vector<8x1x16x16xbf16> -> vector<1x8x16x16xbf16>
    %36 = vector.shape_cast %35 : vector<1x8x16x16xbf16> to vector<128x16xbf16>
    %c0_13 = arith.constant 0 : index
    %c0_14 = arith.constant 0 : index
    %37 = vector.load %arg6[%c0_13, %c0_14] : memref<16x32xbf16, #tpu.memory_space<vmem>>, vector<16x32xbf16>
    %cst_15 = arith.constant dense<0.000000e+00> : vector<128x32xf32>
    %38 = tpu.matmul %36, %37, %cst_15 {dimension_numbers = #tpu.dot_dimension_numbers<[1], [0], [0], [1], [0, 0, 1, 1], [], []>} : vector<128x16xbf16>, vector<16x32xbf16>, vector<128x32xf32> -> vector<128x32xf32>
    %39 = arith.truncf %38 : vector<128x32xf32> to vector<128x32xbf16>
    %40 = vector.shape_cast %39 : vector<128x32xbf16> to vector<8x16x32xbf16>
    %c0_16 = arith.constant 0 : index
    %c0_17 = arith.constant 0 : index
    %c0_18 = arith.constant 0 : index
    %41 = vector.load %arg7[%c0_16, %c0_17, %c0_18] : memref<8x32x16xbf16, #tpu.memory_space<vmem>>, vector<8x32x16xbf16>
    "tpu.trace_start"() <{level = 10 : i32, message = "nph,nhq->npq"}> : () -> ()
    %cst_19 = arith.constant dense<0.000000e+00> : vector<8x32x32xf32>
    %42 = tpu.matmul %41, %40, %cst_19 {dimension_numbers = #tpu.dot_dimension_numbers<[2], [1], [1], [2], [0, 0, 0, 1, 1, 2], [0], [0]>} : vector<8x32x16xbf16>, vector<8x16x32xbf16>, vector<8x32x32xf32> -> vector<8x32x32xf32>
    "tpu.trace_stop"() : () -> ()
    %43 = vector.shape_cast %42 : vector<8x32x32xf32> to vector<1x8x1024xf32>
    %c0_20 = arith.constant 0 : index
    %c0_21 = arith.constant 0 : index
    %c0_22 = arith.constant 0 : index
    %44 = vector.load %arg8[%c0_20, %c0_21, %c0_22] : memref<1x8x1024xf32, #tpu.memory_space<vmem>>, vector<1x8x1024xf32>
    tpu.vector_store %arg8[%c0_20, %c0_21, %c0_22], %43 {strides = array<i32>} : memref<1x8x1024xf32, #tpu.memory_space<vmem>>, vector<1x8x1024xf32>,
    return
  }
  func.func @transform_0(%arg0: i32) -> (i32, i32, i32, i32) {
    %c0_i32 = arith.constant 0 : i32
    %c0_i32_0 = arith.constant 0 : i32
    %c0_i32_1 = arith.constant 0 : i32
    %c0_i32_2 = arith.constant 0 : i32
    return %c0_i32, %arg0, %c0_i32_0, %c0_i32_1 : i32, i32, i32, i32
  }
  func.func @transform_1(%arg0: i32) -> (i32, i32) {
    %c0_i32 = arith.constant 0 : i32
    %c0_i32_0 = arith.constant 0 : i32
    %c0_i32_1 = arith.constant 0 : i32
    return %c0_i32, %c0_i32_0 : i32, i32
  }
  func.func @transform_2(%arg0: i32) -> (i32, i32) {
    %c0_i32 = arith.constant 0 : i32
    %c0_i32_0 = arith.constant 0 : i32
    %c0_i32_1 = arith.constant 0 : i32
    return %c0_i32, %c0_i32_0 : i32, i32
  }
  func.func @transform_3(%arg0: i32) -> (i32, i32) {
    %c0_i32 = arith.constant 0 : i32
    %c0_i32_0 = arith.constant 0 : i32
    %c0_i32_1 = arith.constant 0 : i32
    return %c0_i32, %c0_i32_0 : i32, i32
  }
  func.func @transform_4(%arg0: i32) -> (i32, i32) {
    %c0_i32 = arith.constant 0 : i32
    %c0_i32_0 = arith.constant 0 : i32
    %c0_i32_1 = arith.constant 0 : i32
    return %c0_i32, %c0_i32_0 : i32, i32
  }
  func.func @transform_5(%arg0: i32) -> (i32, i32) {
    %c0_i32 = arith.constant 0 : i32
    %c0_i32_0 = arith.constant 0 : i32
    %c0_i32_1 = arith.constant 0 : i32
    return %c0_i32, %c0_i32_0 : i32, i32
  }
  func.func @transform_6(%arg0: i32) -> (i32, i32, i32) {
    %c0_i32 = arith.constant 0 : i32
    %c0_i32_0 = arith.constant 0 : i32
    %c0_i32_1 = arith.constant 0 : i32
    %c0_i32_2 = arith.constant 0 : i32
    return %c0_i32, %c0_i32_0, %c0_i32_1 : i32, i32, i32
  }
  func.func @transform_7(%arg0: i32) -> (i32, i32, i32) {
    %c0_i32 = arith.constant 0 : i32
    %c0_i32_0 = arith.constant 0 : i32
    %c0_i32_1 = arith.constant 0 : i32
    return %arg0, %c0_i32, %c0_i32_0 : i32, i32, i32
  }
}

</mosaic_0001>

<bundles_post_ra>
// kernel: tpu_custom_call.1
= control target key start
LH: loop header
LB: loop body
LE: loop exit
PB: predicated region body
PF: predicated region fallthrough
CT: control target
= control target key end

     0   :  { %12 = vsyncpa [#allocation4], 0  ;;  %s8467_s0 = inlined_call_operand.vmem [shape: bf16[8,2,18,18], index: 0, kind: input, shape index: {}]   ;;  %s8468_s1 = inlined_call_operand.vmem [shape: bf16[64,72], index: 1, kind: input, shape index: {}]   ;;  %s8469_s2 = inlined_call_operand.vmem [shape: f32[64,1], index: 2, kind: input, shape index: {}]   ;;  %s8470_s3 = inlined_call_operand.vmem [shape: bf16[8,64], index: 3, kind: input, shape index: {}]   ;;  %s8471_s4 = inlined_call_operand.vmem [shape: f32[8,1], index: 4, kind: input, shape index: {}]   ;;  %s8472_s5 = inlined_call_operand.vmem [shape: bf16[16,32], index: 5, kind: input, shape index: {}]   ;;  %s8473_s6 = inlined_call_operand.vmem [shape: bf16[8,32,16], index: 6, kind: input, shape index: {}]   ;;  %s8474_s7 = inlined_call_operand.hbm [shape: f32[2,8,1024], index: 7, kind: output, shape index: {}]  }
   0x1   :  { %14 = vsyncpa [#allocation4 + $0x1], 0  ;;  %s5201_s24 = smov 0   ;;  %s5203_s25 = smov 0  }
   0x2   :  { %s5205_s26 = smov 0   ;;  %s5207_s27 = smov 0  }
   0x3 LB: > { %s8554_s28 = sadd.s32 4294967295, %s5147_s27   ;;  %s4849_s29 = sadd.s32 4294967294, %s5147_s27   ;;  %s5147_s27 = sphi %s5207_s27, %s8828_s27   ;;  %s5143_s26 = sphi %s5205_s26, %s8827_s26   ;;  %s5139_s25 = sphi %s5203_s25, %s8826_s25   ;;  %s5135_s24 = sphi %s5201_s24, %s8825_s24  }
   0x4   : > { %s5224_s30 = sadd.s32 1, %s5147_s27   ;;  %s27_s8 = sadd.s32 1, %s5143_s26 }
   0x5   : > { %s24_s9 = ssub.s32 %s5147_s27, %s5224_s30  ;;  %p34_p0 = scmp.ne.s32.totalorder %s5143_s26, %s5139_s25 }
   0x6   : > { %p25_p1 = scmp.eq.s32.totalorder %s24_s9, 0  ;;  %p35_p2 = scmp.eq.s32.totalorder %s5147_s27, 0 }
   0x7   : > { %p190_p3 = scmp.eq.s32.totalorder %s8554_s28, 1  ;;  %p195_p4 = scmp.ne.s32.totalorder %s5139_s25, %s5135_s24 }
   0x8   : > { %s5237_s10 = scalar_select %p25_p1, %s5143_s26, %s27_s8  }
   0x9   : > { %p36_p5 = por %p35_p2, %p34_p0  ;;  %p5239_p6 = por %p190_p3, %p34_p0 }
   0xa   : > { %p196_p7 = scmp.eq.s32.totalorder %s4849_s29, 1  ;;  %p4851_p9 = scmp.ge.s32.totalorder %s5147_s27, 2 }
   0xc   : > { %p5243_p8 = por %p196_p7, %p195_p4  ;;  %230 = sbr.rel (%p4851_p9) target bundleno = 38 (0x26), region = 40 }
  0x11   : > { %233 = sbr.rel (!%p36_p5) target bundleno = 38 (0x26), region = 44  ;;  %s235_s13 = sand.u32 (%p36_p5), 1, %s5143_s26  }
  0x12   : > { %s5013_s14 = smul.u32 (%p36_p5), 12, %s5147_s27 }
  0x13   : > { %s5012_s15 = smul.u32 (%p36_p5), 96, %s235_s13 }
  0x14   : > { %s5255_s18 = scalar_lea.vmem (%p36_p5), %s8467_s0, %s5013_s14 }
  0x15   : > { %v257_v0 = vld [vmem:[%s5255_s18] sm:$0xff] (%p36_p5)   ;;  %v261_v1 = vld [vmem:[%s5255_s18 + $0x8] sm:$0xf] (%p36_p5)  ;;  %v263_v2 = vld [vmem:[%s5255_s18 + $0x18] sm:$0xff] (%p36_p5)   ;;  %s237_s19 = scalar_lea.vmem (%p36_p5), [#allocation2], %s5012_s15 }
  0x16   : > { %258 = vst [vmem:[%s237_s19] sm:$0xff] %v257_v0   ;;  %v267_v3 = vld [vmem:[%s5255_s18 + $0x20] sm:$0xf]  ;;  %v269_v4 = vld [vmem:[%s5255_s18 + $0x30] sm:$0xff]   ;;  %v273_v5 = vld [vmem:[%s5255_s18 + $0x38] sm:$0xf] }
  0x17   : > { %262 = vst [vmem:[%s237_s19 + $0x8] sm:$0xf] %v261_v1  ;;  %v275_v6 = vld [vmem:[%s5255_s18 + $0x48] sm:$0xff]   ;;  %v279_v7 = vld [vmem:[%s5255_s18 + $0x50] sm:$0xf]  ;;  %v281_v8 = vld [vmem:[%s5255_s18 + $0x60] sm:$0xff]  }
  0x18   : > { %264 = vst [vmem:[%s237_s19 + $0xc] sm:$0xff] %v263_v2   ;;  %v285_v9 = vld [vmem:[%s5255_s18 + $0x68] sm:$0xf]  ;;  %v287_v10 = vld [vmem:[%s5255_s18 + $0x78] sm:$0xff]   ;;  %v291_v11 = vld [vmem:[%s5255_s18 + $0x80] sm:$0xf] }
  0x19   : > { %268 = vst [vmem:[%s237_s19 + $0x14] sm:$0xf] %v267_v3  ;;  %v293_v12 = vld [vmem:[%s5255_s18 + $0x90] sm:$0xff]   ;;  %v297_v13 = vld [vmem:[%s5255_s18 + $0x98] sm:$0xf]  ;;  %v299_v14 = vld [vmem:[%s5255_s18 + $0xa8] sm:$0xff]  }
  0x1a   : > { %270 = vst [vmem:[%s237_s19 + $0x18] sm:$0xff] %v269_v4   ;;  %v303_v15 = vld [vmem:[%s5255_s18 + $0xb0] sm:$0xf] }
  0x1b   : > { %274 = vst [vmem:[%s237_s19 + $0x20] sm:$0xf] %v273_v5 }
  0x1c   : > { %276 = vst [vmem:[%s237_s19 + $0x24] sm:$0xff] %v275_v6  }
  0x1d   : > { %280 = vst [vmem:[%s237_s19 + $0x2c] sm:$0xf] %v279_v7 }
  0x1e   : > { %282 = vst [vmem:[%s237_s19 + $0x30] sm:$0xff] %v281_v8  }
  0x1f   : > { %286 = vst [vmem:[%s237_s19 + $0x38] sm:$0xf] %v285_v9 }
  0x20   : > { %288 = vst [vmem:[%s237_s19 + $0x3c] sm:$0xff] %v287_v10  }
  0x21   : > { %292 = vst [vmem:[%s237_s19 + $0x44] sm:$0xf] %v291_v11 }
  0x22   : > { %294 = vst [vmem:[%s237_s19 + $0x48] sm:$0xff] %v293_v12  }
  0x23   : > { %298 = vst [vmem:[%s237_s19 + $0x50] sm:$0xf] %v297_v13 }
  0x24   : > { %300 = vst [vmem:[%s237_s19 + $0x54] sm:$0xff] %v299_v14  }
  0x25   : > { %304 = vst [vmem:[%s237_s19 + $0x5c] sm:$0xf] %v303_v15 }
  0x26 PF: > { %p4853_p10 = scmp.ge.s32.totalorder %s5147_s27, 1  ;;  %p375_p11 = scmp.lt.s32.totalorder %s5147_s27, 3 }
  0x28   : > { %p376_p12 = pnand %p4853_p10, %p375_p11 }
  0x2a   : > { %379 = sbr.rel (%p376_p12) target bundleno = 1823 (0x71f), region = 85 }
  0x2f   : > { %s5276_s20 = sand.u32 1, %s5139_s25   ;;  %vm2349_vm0 = vcmask 1042432   ;;  %vm2350_vm1 = vcmask 1046532   ;;  %s5149_s23 = smov 126   ;;  %vm439_vm3 = vcmask 1047556   ;;  %vm655_vm7 = vcmask 130048  }
  0x30   : > { %s5014_s21 = smul.u32 96, %s5276_s20  ;;  %vm5279_vm2 = vmor %vm2349_vm0, %vm2350_vm1  ;;  %s5150_s29 = smov 127   ;;  %v5151_v0 = vmov 1983009808   ;;  %vm1296_vm4 = vsmask.f32 3328 }
  0x31   : > { %v442_v1 = vunpack.c.l.s4 %v5151_v0  ;;  %vm1297_vm5 = vsmask.f32 7440  ;;  %s5153_s8 = smov 16   ;;  %s5154_s9 = smov 32   ;;  %vm659_vm8 = vcmask 261120   ;;  %vm662_vm9 = vcmask 392192  }
  0x32   : > { %s5283_s22 = scalar_lea.vmem [#allocation2], %s5014_s21  ;;  %vm5542_vm6 = vmor %vm1296_vm4, %vm1297_vm5  ;;  %s8555_s13 = smov 48   ;;  %vm665_vm10 = vcmask 523264   ;;  %vm668_vm11 = vcmask 654336   ;;  %vm671_vm12 = vcmask 785408   ;;  %vm674_vm13 = vcmask 916480  }
  0x33   : > { %v5286_v17 = vld [vmem:[%s5283_s22 + $0x54] sm:$0xf]  ;;  %v5289_v18 = vld [vmem:[%s5283_s22 + $0x58] sm:$0xf]  ;;  %v5292_v19 = vld [vmem:[%s5283_s22 + $0x48] sm:$0xf]  ;;  %v5395_v8 = vunpack.c.0.s8 %v442_v1 }
  0x34   : > { %v4862_v20 = vrot.slane %v5286_v17, 9  ;;  %v2403_v21 = vrot.slane %v5289_v18, 5  ;;  %v5297_v22 = vld [vmem:[%s5283_s22 + $0x4c] sm:$0xf]  ;;  %v4861_v23 = vrot.slane %v5292_v19, 9  ;;  %s5156_s14 = smov 64  }
  0x35   : > { %v2396_v24 = vrot.slane %v5297_v22, 5  ;;  %v5302_v25 = vld [vmem:[%s5283_s22 + $0x5c] sm:$0x1]  ;;  %v5308_v29 = vld [vmem:[%s5283_s22 + $0x50] sm:$0x1]  ;;  %8560 = vst [vmem:[#allocation6_spill] sm:$0xff] %v5395_v8 }
  0x36   : > { %v2404_v26 = vsel %vm5279_vm2, %v4862_v20, %v2403_v21  ;;  %v2405_v27 = vrot.slane %v2403_v21, 4  ;;  %v2406_v28 = vrot.slane %v5302_v25, 5  ;;  %v5311_v30 = vld [vmem:[%s5283_s22 + $0x18] sm:$0xf]  ;;  %v2399_v33 = vrot.slane %v5308_v29, 5  ;;  %s5157_s15 = smov 80  }
  0x37   : > { %2992 = vrot.lane.b32.xlu1 %v2404_v26, %s5149_s23  ;;  %v2397_v31 = vsel %vm5279_vm2, %v4861_v23, %v2396_v24  ;;  %v2398_v32 = vrot.slane %v2396_v24, 4  ;;  %v5318_v34 = vld [vmem:[%s5283_s22 + $0x1c] sm:$0xf]  ;;  %v4857_v36 = vrot.slane %v5311_v30, 9  ;;  %v5325_v38 = vld [vmem:[%s5283_s22 + $0x24] sm:$0xf] }
  0x38   : > { %2694 = vrot.lane.b32.xlu2 %v2397_v31, %s5150_s29  ;;  %v2430_v35 = vrot.slane %v2397_v31, 4  ;;  %2988 = vrot.lane.b32.xlu0 %v2397_v31, %s5149_s23  ;;  %v2368_v37 = vrot.slane %v5318_v34, 5  ;;  %v2458_v39 = vrot.slane %v2404_v26, 4  ;;  %v2407_v40 = vsel %vm5279_vm2, %v2405_v27, %v2406_v28  ;;  %v5332_v42 = vld [vmem:[%s5283_s22 + $0x28] sm:$0xf]  ;;  %s5158_s16 = smov 96  }
  0x39   : > { %v2400_v41 = vsel %vm5279_vm2, %v2398_v32, %v2399_v33  ;;  %v4858_v43 = vrot.slane %v5325_v38, 9  ;;  %v5336_v44 = vld [vmem:[%s5283_s22 + $0x20] sm:$0x1]  ;;  %v2375_v47 = vrot.slane %v5332_v42, 5  ;;  %v5344_v49 = vld [vmem:[%s5283_s22 + $0x2c] sm:$0x1] }
  0x3a   : > { %v2486_v45 = vrot.slane %v2400_v41, 4  ;;  %v5340_v46 = vsel %vm5279_vm2, %v4857_v36, %v2368_v37  ;;  %v2370_v48 = vrot.slane %v2368_v37, 4  ;;  %v2514_v50 = vrot.slane %v2407_v40, 4  ;;  %v5374_v61 = vld [vmem:[%s5283_s22 + $0x34] sm:$0xf]  ;;  %s5159_s17 = smov 112  }
  0x3b   : > { %v2431_v51 = vsel %vm439_vm3, %v2430_v35, %v5340_v46  ;;  %v2371_v52 = vrot.slane %v5336_v44, 5  ;;  %v2378_v53 = vrot.slane %v5344_v49, 5  ;;  %v5352_v54 = vsel %vm5279_vm2, %v4858_v43, %v2375_v47  ;;  %v5382_v63 = vld [vmem:[%s5283_s22 + $0x38] sm:$0x1]  ;;  %v5385_v2 = vld [vmem:[%s5283_s22 + $0x30] sm:$0xf] }
  0x3c   : > { %v2377_v55 = vrot.slane %v2375_v47, 4  ;;  %v2459_v56 = vsel %vm439_vm3, %v2458_v39, %v5352_v54  ;;  %v2382_v62 = vrot.slane %v5374_v61, 5  ;;  %v5388_v3 = vld [vmem:[%s5283_s22 + $0x3c] sm:$0xf]  ;;  %v5391_v4 = vld [vmem:[%s5283_s22 + $0x40] sm:$0xf]  ;;  %v5412_v13 = vperm.slane %v2431_v51, %v5395_v8 }
  0x3d   : > { %v5358_v57 = vsel %vm5279_vm2, %v2370_v48, %v2371_v52  ;;  %v2385_v6 = vrot.slane %v5382_v63, 5  ;;  %v4859_v7 = vrot.slane %v5385_v2, 9  ;;  %v4860_v9 = vrot.slane %v5388_v3, 9  ;;  %v5406_v11 = vld [vmem:[%s5283_s22 + $0xc] sm:$0xf]  ;;  %s8822_s18 = smov 48  }
  0x3e   : > { %v2487_v58 = vsel %vm439_vm3, %v2486_v45, %v5358_v57  ;;  %v5364_v59 = vsel %vm5279_vm2, %v2377_v55, %v2378_v53  ;;  %v2384_v5 = vrot.slane %v2382_v62, 4  ;;  %v2389_v10 = vrot.slane %v5391_v4, 5  ;;  %v5409_v12 = vld [vmem:[%s5283_s22 + $0x10] sm:$0xf]  ;;  %8561 = vst [vmem:[#allocation7_spill] sm:$0xff] %v5412_v13  ;;  %s4768_s28 = scalar_lea.sflag [#allocation4], %s5276_s20 }
  0x3f   : > { %2994 = vrot.lane.b32.xlu1 %v2407_v40, %s5149_s23  ;;  %v5369_v60 = vsel %vm439_vm3, %v2514_v50, %v5364_v59  ;;  %v5419_v15 = vperm.slane %v2459_v56, %v5395_v8  ;;  %v5422_v20 = vperm.slane %v2487_v58, %v5395_v8  ;;  %v2383_v23 = vsel %vm5279_vm2, %v4859_v7, %v2382_v62  ;;  %v5428_v24 = vld [vmem:[%s5283_s22 + $0x4] sm:$0xf]  ;;  %v5439_v36 = vld [vmem:[%s5283_s22 + $0x8] sm:$0x1]  ;;  %v5442_v37 = vld [vmem:[%s5283_s22] sm:$0xf] }
  0x40   : > { %2696 = vrot.lane.b32.xlu2 %v2400_v41, %s5150_s29  ;;  %2990 = vrot.lane.b32.xlu0 %v2400_v41, %s5149_s23  ;;  %v5416_v14 = vsel %vm5279_vm2, %v2384_v5, %v2385_v6  ;;  %v5433_v27 = vld [vmem:[%s5283_s22 + $0x44] sm:$0x1]  ;;  %v4856_v28 = vrot.slane %v5406_v11, 9  ;;  %v2361_v31 = vrot.slane %v5409_v12, 5  ;;  %v2354_v32 = vrot.slane %v5428_v24, 5 }
  0x41   : > { %8562 = vst [vmem:[#allocation8_spill] sm:$0xff] %v5419_v15  ;;  %v2480_v21 = vrot.slane %v5416_v14, 4  ;;  %v2424_v33 = vrot.slane %v2383_v23, 4  ;;  %v4855_v41 = vrot.slane %v5442_v37, 9  ;;  %v2436_v43 = vrot.slane %v5412_v13, 4 }
  0x42   : > { %8563 = vst [vmem:[#allocation9_spill] sm:$0xff] %v5422_v20  ;;  %v2356_v39 = vrot.slane %v2354_v32, 4  ;;  %v2464_v45 = vrot.slane %v5419_v15, 4  ;;  %v2492_v47 = vrot.slane %v5422_v20, 4  ;;  %v2392_v48 = vrot.slane %v5433_v27, 5 }
  0x43   : > { %v5454_v50 = vsel %vm5279_vm2, %v4856_v28, %v2361_v31  ;;  %v5462_v52 = vsel %vm5279_vm2, %v4855_v41, %v2354_v32  ;;  %v2391_v53 = vrot.slane %v2389_v10, 4  ;;  %v5491_v7 = vperm.slane %v5369_v60, %v5395_v8 }
  0x44   : > { %v2425_v58 = vsel %vm439_vm3, %v2424_v33, %v5462_v52  ;;  %v2363_v32 = vrot.slane %v2361_v31, 4  ;;  %v1453_v16 = vshll.u32 %v5297_v22, 16  ;;  %v1447_v41 = vshll.u32 %v5292_v19, 16 }
  0x45   : > { %v5479_v1 = vperm.slane %v2425_v58, %v5395_v8  ;;  %8569 = vst [vmem:[#allocation15_spill] sm:$0xff] %v5491_v7  ;;  %v1471_v58 = vshll.u32 %v5286_v17, 16  ;;  %v1367_v13 = vshll.u32 %v5336_v44, 16  ;;  %v1381_v44 = vshll.u32 %v5332_v42, 16 }
  0x46   : > { %vm3274_vm14 = vcmask 1043456   ;;  %vm3375_vm15 = vcmask 588800  }
  0x47   : > { %2700 = vrot.lane.b32.xlu1 %v2407_v40, %s5150_s29  ;;  %v2357_v40 = vrot.slane %v5439_v36, 5  ;;  %8566 = vst [vmem:[#allocation12_spill] sm:$0xff] %v5479_v1 }
  0x48   : > { %2698 = vrot.lane.b32.xlu0 %v2404_v26, %s5150_s29  ;;  %2972 = vrot.lane.b32.xlu2 %v5340_v46, %s5149_s23  ;;  %v2390_v26 = vsel %vm5279_vm2, %v4860_v9, %v2389_v10  ;;  %v2393_v9 = vsel %vm5279_vm2, %v2391_v53, %v2392_v48  ;;  %v5497_v10 = vsel %vm439_vm3, %v2436_v43, %v5479_v1  ;;  %v1455_v43 = vrot.slane %v1453_v16, 5 }
  0x49   : > { %v2452_v35 = vrot.slane %v2390_v26, 4  ;;  %v5458_v51 = vsel %vm5279_vm2, %v2356_v39, %v2357_v40  ;;  %8570 = vst [vmem:[#allocation16_spill] sm:$0xff] %v5497_v10  ;;  %v2508_v28 = vrot.slane %v2393_v9, 4  ;;  %v1444_v40 = vshrl.u32 %v5292_v19, 16 }
  0x4a   : > { %v2481_v56 = vsel %vm439_vm3, %v2480_v21, %v5458_v51  ;;  %v5500_v21 = vld [vmem:[%s5283_s22 + $0x14] sm:$0x1]  ;;  %v1449_v48 = vrot.slane %v1447_v41, 5  ;;  %v1477_v53 = vshll.u32 %v5289_v18, 16  ;;  %v1361_v16 = vshrl.u32 %v5318_v34, 16 }
  0x4b   : > { %v2453_v55 = vsel %vm439_vm3, %v2452_v35, %v5454_v50  ;;  %v5476_v0 = vperm.slane %v2481_v56, %v5395_v8  ;;  %v2364_v33 = vrot.slane %v5500_v21, 5  ;;  %v2520_v35 = vrot.slane %v5491_v7, 4 }
  0x4c   : > { %v5473_v62 = vperm.slane %v2453_v55, %v5395_v8  ;;  %v1481_v55 = vshrl.u32 %v5289_v18, 16  ;;  %v1468_v56 = vshrl.u32 %v5286_v17, 16 }
  0x4d   : > { %8565 = vst [vmem:[#allocation11_spill] sm:$0xff] %v5476_v0  ;;  %v5487_v6 = vsel %vm439_vm3, %v2492_v47, %v5476_v0  ;;  %v5511_v60 = vsel %vm5279_vm2, %v2363_v32, %v2364_v33  ;;  %v1446_v47 = vrot.slane %v1444_v40, 4  ;;  %v1473_v40 = vrot.slane %v1471_v58, 5 }
  0x4e   : > { %8564 = vst [vmem:[#allocation10_spill] sm:$0xff] %v5473_v62  ;;  %v5483_v5 = vsel %vm439_vm3, %v2464_v45, %v5473_v62  ;;  %v2509_v39 = vsel %vm439_vm3, %v2508_v28, %v5511_v60  ;;  %v1483_v33 = vrot.slane %v1481_v55, 4 }
  0x4f   : > { %2976 = vrot.lane.b32.xlu1 %v5352_v54, %s5149_s23  ;;  %8567 = vst [vmem:[#allocation13_spill] sm:$0xff] %v5483_v5  ;;  %v5516_v31 = vperm.slane %v2509_v39, %v5395_v8  ;;  %v1357_v39 = vshll.u32 %v5318_v34, 16 }
  0x50   : > { %2974 = vrot.lane.b32.xlu0 %v5358_v57, %s5149_s23  ;;  %2978 = vrot.lane.b32.xlu2 %v5364_v59, %s5149_s23  ;;  %8568 = vst [vmem:[#allocation14_spill] sm:$0xff] %v5487_v6  ;;  %v8599_v62 = vld [vmem:[#allocation16_spill] sm:$0xff] }
  0x51   : > { %8571 = vst [vmem:[#allocation17_spill] sm:$0xff] %v5516_v31 }
  0x57   : > { %2982 = vrot.lane.b32.xlu1 %v5416_v14, %s5149_s23 }
  0x58   : > { %2980 = vrot.lane.b32.xlu0 %v2383_v23, %s5149_s23  ;;  %2984 = vrot.lane.b32.xlu2 %v2390_v26, %s5149_s23 }
  0x5f   : > { %2678 = vrot.lane.b32.xlu1 %v5340_v46, %s5150_s29  ;;  %v5520_v46 = vsel %vm439_vm3, %v2520_v35, %v5516_v31  ;;  %v1351_v35 = vshll.u32 %v5311_v30, 16 }
  0x60   : > { %2986 = vrot.lane.b32.xlu0 %v2393_v9, %s5149_s23  ;;  %2680 = vrot.lane.b32.xlu2 %v5358_v57, %s5150_s29  ;;  %8572 = vst [vmem:[#allocation18_spill] sm:$0xff] %v5520_v46  ;;  %v1457_v57 = vshrl.u32 %v5297_v22, 16 }
  0x62   : > { %v1459_v45 = vrot.slane %v1457_v57, 4  ;;  %v1470_v57 = vrot.slane %v1468_v56, 4 }
  0x64   : > { %v1474_v58 = vor.u32 %v1473_v40, %v1470_v57  ;;  %v1391_v57 = vshll.u32 %v5344_v49, 16  ;;  %v1372_v40 = vshrl.u32 %v5325_v38, 16 }
  0x67   : > { %2684 = vrot.lane.b32.xlu1 %v5364_v59, %s5150_s29  ;;  %v1460_v59 = vor.u32 %v1459_v45, %v1455_v43  ;;  %v1353_v45 = vrot.slane %v1351_v35, 5 }
  0x68   : > { %2682 = vrot.lane.b32.xlu0 %v5352_v54, %s5150_s29  ;;  %2686 = vrot.lane.b32.xlu2 %v2383_v23, %s5150_s29  ;;  %v1463_v54 = vshll.u32 %v5308_v29, 16  ;;  %v1450_v23 = vor.u32 %v1449_v48, %v1446_v47  ;;  %v1359_v47 = vrot.slane %v1357_v39, 5  ;;  %v1363_v48 = vrot.slane %v1361_v16, 4 }
  0x69   : > { %v1461_v28 = vrot.slane %v1460_v59, 4  ;;  %v1369_v39 = vrot.slane %v1367_v13, 5 }
  0x6a   : > { %v1451_v32 = vrot.slane %v1450_v23, 4  ;;  %v1487_v23 = vshll.u32 %v5302_v25, 16  ;;  %v1364_v15 = vor.u32 %v1363_v48, %v1359_v47  ;;  %v1393_v48 = vrot.slane %v1391_v57, 5 }
  0x6b   : > { %v1429_v57 = vshll.u32 %v5391_v4, 16 }
  0x6c   : > { %v1365_v35 = vrot.slane %v1364_v15, 4  ;;  %v1489_v20 = vrot.slane %v1487_v23, 5  ;;  %v1375_v23 = vshll.u32 %v5325_v38, 16 }
  0x6f   : > { %2690 = vrot.lane.b32.xlu1 %v2390_v26, %s5150_s29  ;;  %v1465_v26 = vrot.slane %v1463_v54, 5 }
  0x70   : > { %2688 = vrot.lane.b32.xlu0 %v5416_v14, %s5150_s29  ;;  %2692 = vrot.lane.b32.xlu2 %v2393_v9, %s5150_s29  ;;  %v1479_v14 = vrot.slane %v1477_v53, 5  ;;  %v1348_v9 = vshrl.u32 %v5311_v30, 16  ;;  %v1456_v53 = vsel %vm5542_vm6, %v1451_v32, %v1455_v43  ;;  %v5567_v43 = vsel %vm5542_vm6, %v1365_v35, %v1369_v39 }
  0x71   : > { %v1466_v54 = vsel %vm5542_vm6, %v1461_v28, %v1465_v26  ;;  %v1513_v56 = vrot.slane %v1456_v53, 4  ;;  %v1385_v26 = vshrl.u32 %v5332_v42, 16  ;;  %v1475_v28 = vrot.slane %v1474_v58, 4 }
  0x72   : > { %v1350_v41 = vrot.slane %v1348_v9, 4  ;;  %v1484_v59 = vor.u32 %v1483_v33, %v1479_v14  ;;  %v1569_v7 = vrot.slane %v1466_v54, 4  ;;  %v1383_v32 = vrot.slane %v1381_v44, 5 }
  0x73   : > { %v1387_v33 = vrot.slane %v1385_v26, 4  ;;  %v1399_v44 = vshll.u32 %v5385_v2, 16  ;;  %v1420_v26 = vshrl.u32 %v5388_v3, 16 }
  0x74   : > { %v1354_v55 = vor.u32 %v1353_v45, %v1350_v41  ;;  %v1485_v16 = vrot.slane %v1484_v59, 4  ;;  %v5578_v15 = vsel %vm439_vm3, %v1569_v7, %v5567_v43  ;;  %v1374_v59 = vrot.slane %v1372_v40, 4 }
  0x75   : > { %v1388_v45 = vor.u32 %v1387_v33, %v1383_v32  ;;  %v1480_v7 = vsel %vm5542_vm6, %v1475_v28, %v1479_v14  ;;  %v1423_v28 = vshll.u32 %v5388_v3, 16  ;;  %v1433_v40 = vshrl.u32 %v5391_v4, 16 }
  0x76   : > { %v1355_v9 = vrot.slane %v1354_v55, 4  ;;  %v1490_v41 = vsel %vm5542_vm6, %v1485_v16, %v1489_v20  ;;  %v1396_v16 = vshrl.u32 %v5385_v2, 16 }
  0x77   : > { %2966 = vrot.lane.b32.xlu1 %v5458_v51, %s5149_s23  ;;  %v1389_v55 = vrot.slane %v1388_v45, 4  ;;  %v1425_v33 = vrot.slane %v1423_v28, 5 }
  0x78   : > { %2968 = vrot.lane.b32.xlu2 %v5454_v50, %s5149_s23  ;;  %2964 = vrot.lane.b32.xlu0 %v5462_v52, %s5149_s23  ;;  %v5563_v25 = vsel %vm5542_vm6, %v1355_v9, %v1359_v47  ;;  %v1597_v47 = vrot.slane %v1490_v41, 4  ;;  %v1541_v9 = vrot.slane %v1480_v7, 4 }
  0x79   : > { %v1514_v13 = vsel %vm439_vm3, %v1513_v56, %v5563_v25  ;;  %v1377_v56 = vrot.slane %v1375_v23, 5  ;;  %v5590_v49 = vsel %vm5542_vm6, %v1389_v55, %v1393_v48  ;;  %v1409_v48 = vshrl.u32 %v5374_v61, 16 }
  0x7a   : > { %v5597_v20 = vsel %vm439_vm3, %v1597_v47, %v5590_v49  ;;  %v1405_v47 = vshll.u32 %v5374_v61, 16  ;;  %v1435_v23 = vrot.slane %v1433_v40, 4  ;;  %v1300_v55 = vshrl.u32 %v5442_v37, 16 }
  0x7b   : > { %v1378_v58 = vor.u32 %v1377_v56, %v1374_v59  ;;  %v1431_v59 = vrot.slane %v1429_v57, 5  ;;  %v1303_v56 = vshll.u32 %v5442_v37, 16 }
  0x7d   : > { %v1379_v14 = vrot.slane %v1378_v58, 4  ;;  %v1411_v58 = vrot.slane %v1409_v48, 4  ;;  %v1436_v28 = vor.u32 %v1435_v23, %v1431_v59 }
  0x7f   : > { %2071 = vrot.lane.b32.xlu1 %v1456_v53, %s5149_s23  ;;  %v5601_v35 = vsel %vm5542_vm6, %v1379_v14, %v1383_v32  ;;  %v1398_v32 = vrot.slane %v1396_v16, 4  ;;  %v1302_v14 = vrot.slane %v1300_v55, 4  ;;  %v1305_v16 = vrot.slane %v1303_v56, 5 }
  0x80   : > { %2073 = vrot.lane.b32.xlu2 %v1466_v54, %s5149_s23  ;;  %2970 = vrot.lane.b32.xlu0 %v5511_v60, %s5149_s23  ;;  %v5605_v39 = vsel %vm439_vm3, %v1541_v9, %v5601_v35  ;;  %v1518_v9 = vperm.slane %v1514_v13, %v5395_v8  ;;  %v1333_v55 = vshll.u32 %v5409_v12, 16 }
  0x82   : > { %v1519_v40 = vrot.slane %v1518_v9, 4 }
  0x87   : > { %2077 = vrot.lane.b32.xlu1 %v1490_v41, %s5149_s23 }
  0x88   : > { %2670 = vrot.lane.b32.xlu2 %v5462_v52, %s5150_s29  ;;  %2075 = vrot.lane.b32.xlu0 %v1480_v7, %s5149_s23 }
  0x8f   : > { %2674 = vrot.lane.b32.xlu1 %v5454_v50, %s5150_s29  ;;  %v1401_v50 = vrot.slane %v1399_v44, 5 }
  0x90   : > { %2676 = vrot.lane.b32.xlu2 %v5511_v60, %s5150_s29  ;;  %2672 = vrot.lane.b32.xlu0 %v5458_v51, %s5150_s29  ;;  %v1422_v51 = vrot.slane %v1420_v26, 4 }
  0x91   : > { %v1402_v45 = vor.u32 %v1401_v50, %v1398_v32  ;;  %v1439_v32 = vshll.u32 %v5433_v27, 16  ;;  %v1415_v50 = vshll.u32 %v5382_v63, 16  ;;  %v1437_v27 = vrot.slane %v1436_v28, 4 }
  0x92   : > { %v5613_v52 = vpop.permute.xlu2 %2694 }
  0x93   : > { %v1417_v23 = vrot.slane %v1415_v50, 5  ;;  %v1335_v50 = vrot.slane %v1333_v55, 5 }
  0x97   : > { %1779 = vrot.lane.b32.xlu1 %v1466_v54, %s5150_s29  ;;  %v1426_v54 = vor.u32 %v1425_v33, %v1422_v51  ;;  %v1306_v33 = vor.u32 %v1305_v16, %v1302_v14  ;;  %v1337_v14 = vshrl.u32 %v5409_v12, 16 }
  0x98   : > { %1781 = vrot.lane.b32.xlu2 %v1480_v7, %s5150_s29  ;;  %1777 = vrot.lane.b32.xlu0 %v1456_v53, %s5150_s29  ;;  %v1403_v53 = vrot.slane %v1402_v45, 4  ;;  %v1407_v7 = vrot.slane %v1405_v47, 5  ;;  %v5648_v45 = vperm.slane %v5578_v15, %v5395_v8  ;;  %v1327_v15 = vshll.u32 %v5406_v11, 16 }
  0x99   : > { %v1427_v26 = vrot.slane %v1426_v54, 4  ;;  %v1307_v47 = vrot.slane %v1306_v33, 4  ;;  %v1441_v54 = vrot.slane %v1439_v32, 5  ;;  %v1546_v33 = vperm.slane %v5605_v39, %v5395_v8 }
  0x9a   : > { %v5622_v60 = vpop.permute.xlu2 %2696  ;;  %v5642_v51 = vsel %vm5542_vm6, %v1403_v53, %v1407_v7  ;;  %v1412_v13 = vor.u32 %v1411_v58, %v1407_v7  ;;  %v1324_v7 = vshrl.u32 %v5406_v11, 16  ;;  %v1313_v58 = vshrl.u32 %v5428_v24, 16 }
  0x9b   : > { %v1507_v57 = vrot.slane %v5642_v51, 4  ;;  %v5652_v63 = vsel %vm5542_vm6, %v1427_v26, %v1431_v59  ;;  %v1329_v32 = vrot.slane %v1327_v15, 5  ;;  %v1339_v46 = vrot.slane %v1337_v14, 4 }
  0x9c   : > { %v1413_v59 = vrot.slane %v1412_v13, 4  ;;  %v1326_v28 = vrot.slane %v1324_v7, 4  ;;  %v1442_v31 = vsel %vm5542_vm6, %v1437_v27, %v1441_v54  ;;  %v1343_v14 = vshll.u32 %v5500_v21, 16 }
  0x9d   : > { %v1340_v1 = vor.u32 %v1339_v46, %v1335_v50  ;;  %v1591_v27 = vrot.slane %v1442_v31, 4 }
  0x9e   : > { %v1330_v15 = vor.u32 %v1329_v32, %v1326_v28  ;;  %v1418_v55 = vsel %vm5542_vm6, %v1413_v59, %v1417_v23  ;;  %v1547_v28 = vrot.slane %v1546_v33, 4 }
  0x9f   : > { %2055 = vrot.lane.b32.xlu1 %v5563_v25, %s5149_s23  ;;  %v1563_v6 = vrot.slane %v1418_v55, 4  ;;  %v1341_v46 = vrot.slane %v1340_v1, 4 }
  0xa0   : > { %2057 = vrot.lane.b32.xlu2 %v5567_v43, %s5149_s23  ;;  %1783 = vrot.lane.b32.xlu0 %v1490_v41, %s5150_s29  ;;  %v1309_v41 = vshll.u32 %v5428_v24, 16 }
  0xa2   : > { %v5636_v44 = vpop.permute.xlu2 %2972  ;;  %v1311_v48 = vrot.slane %v1309_v41, 5 }
  0xa4   : > { %v5658_v53 = vsel %vm5542_vm6, %v1307_v47, %v1311_v48  ;;  %v1315_v47 = vrot.slane %v1313_v58, 4  ;;  %v1331_v58 = vrot.slane %v1330_v15, 4 }
  0xa5   : > { %v1508_v56 = vsel %vm439_vm3, %v1507_v57, %v5658_v53  ;;  %v1535_v57 = vrot.slane %v5652_v63, 4 }
  0xa6   : > { %v1512_v26 = vperm.slane %v1508_v56, %v5395_v8  ;;  %v1316_v39 = vor.u32 %v1315_v47, %v1311_v48  ;;  %v1319_v56 = vshll.u32 %v5439_v36, 16  ;;  %v5699_v36 = vsel %vm5542_vm6, %v1331_v58, %v1335_v50 }
  0xa7   : > { %2061 = vrot.lane.b32.xlu1 %v5590_v49, %s5149_s23  ;;  %v1575_v48 = vrot.slane %v5648_v45, 4  ;;  %v1536_v21 = vsel %vm439_vm3, %v1535_v57, %v5699_v36 }
  0xa8   : > { %2063 = vrot.lane.b32.xlu2 %v5642_v51, %s5149_s23  ;;  %2059 = vrot.lane.b32.xlu0 %v5601_v35, %s5149_s23  ;;  %v5684_v10 = vsel %vm439_vm3, %v1519_v40, %v1512_v26  ;;  %v1521_v7 = vrot.slane %v1512_v26, 4  ;;  %v1602_v40 = vperm.slane %v5597_v20, %v5395_v8  ;;  %v1317_v54 = vrot.slane %v1316_v39, 4 }
  0xa9   : > { %v5671_v16 = vpop.permute.xlu1 %2992  ;;  %8575 = vst [vmem:[#allocation19_spill] sm:$0xff] %v5684_v10  ;;  %v1321_v26 = vrot.slane %v1319_v56, 5  ;;  %v1540_v59 = vperm.slane %v1536_v21, %v5395_v8 }
  0xaa   : > { %v5676_v41 = vpop.permute.xlu0 %2988  ;;  %v5678_v13 = vpop.permute.xlu2 %2978  ;;  %v5690_v5 = vsel %vm439_vm3, %v1518_v9, %v1521_v7  ;;  %v1345_v9 = vrot.slane %v1343_v14, 5  ;;  %v1603_v15 = vrot.slane %v1602_v40, 4 }
  0xab   : > { %8576 = vst [vmem:[#allocation20_spill] sm:$0xff] %v5690_v5  ;;  %v1322_v20 = vsel %vm5542_vm6, %v1317_v54, %v1321_v26  ;;  %v5721_v39 = vsel %vm439_vm3, %v1547_v28, %v1540_v59  ;;  %v1549_v56 = vrot.slane %v1540_v59, 4  ;;  %v2780_v5 = vrot.slane %v5622_v60, 4 }
  0xac   : > { %v1564_v32 = vsel %vm439_vm3, %v1563_v6, %v1322_v20  ;;  %v1346_v1 = vsel %vm5542_vm6, %v1341_v46, %v1345_v9  ;;  %8577 = vst [vmem:[#allocation21_spill] sm:$0xff] %v5721_v39 }
  0xad   : > { %v1568_v7 = vperm.slane %v1564_v32, %v5395_v8  ;;  %v1592_v57 = vsel %vm439_vm3, %v1591_v27, %v1346_v1  ;;  %v5727_v29 = vsel %vm439_vm3, %v1546_v33, %v1549_v56 }
  0xae   : > { %8579 = vst [vmem:[#allocation23_spill] sm:$0xff] %v5727_v29  ;;  %v1596_v14 = vperm.slane %v1592_v57, %v5395_v8 }
  0xaf   : > { %2067 = vrot.lane.b32.xlu1 %v5652_v63, %s5149_s23  ;;  %v5724_v58 = vsel %vm439_vm3, %v1575_v48, %v1568_v7  ;;  %v1577_v6 = vrot.slane %v1568_v7, 4 }
  0xb0   : > { %2069 = vrot.lane.b32.xlu2 %v1442_v31, %s5149_s23  ;;  %2065 = vrot.lane.b32.xlu0 %v1418_v55, %s5149_s23  ;;  %8578 = vst [vmem:[#allocation22_spill] sm:$0xff] %v5724_v58  ;;  %v5737_v27 = vsel %vm439_vm3, %v1603_v15, %v1596_v14  ;;  %v1605_v26 = vrot.slane %v1596_v14, 4 }
  0xb1   : > { %v5708_v23 = vpop.permute.xlu1 %2994  ;;  %v5732_v54 = vsel %vm439_vm3, %v5648_v45, %v1577_v6  ;;  %8581 = vst [vmem:[#allocation25_spill] sm:$0xff] %v5737_v27  ;;  %v2724_v27 = vrot.slane %v5613_v52, 4 }
  0xb2   : > { %v5714_v50 = vpop.permute.xlu0 %2990  ;;  %v5716_v47 = vpop.permute.xlu2 %2984  ;;  %8580 = vst [vmem:[#allocation24_spill] sm:$0xff] %v5732_v54  ;;  %v5746_v28 = vsel %vm439_vm3, %v1602_v40, %v1605_v26  ;;  %v3102_v6 = vrot.slane %v5708_v23, 4  ;;  %v5152_v26 = vmov 1934713408   ;;  %v3046_v23 = vrot.slane %v5671_v16, 4 }
  0xb3   : > { %8582 = vst [vmem:[#allocation26_spill] sm:$0xff] %v5746_v28  ;;  %v456_v28 = vunpack.c.l.s4 %v5152_v26  ;;  %v3074_v26 = vrot.slane %v5714_v50, 4  ;;  %v3040_v39 = vrot.slane %v5716_v47, 4 }
  0xb7   : > { %1763 = vrot.lane.b32.xlu1 %v5567_v43, %s5150_s29 }
  0xb8   : > { %1765 = vrot.lane.b32.xlu2 %v5601_v35, %s5150_s29  ;;  %1761 = vrot.lane.b32.xlu0 %v5563_v25, %s5150_s29 }
  0xb9   : > { %v5743_v33 = vpop.permute.xlu1 %2700 }
  0xba   : > { %v5748_v45 = vpop.permute.xlu0 %2698  ;;  %v5750_v46 = vpop.permute.xlu2 %2680 }
  0xbf   : > { %1769 = vrot.lane.b32.xlu1 %v5642_v51, %s5150_s29 }
  0xc0   : > { %1771 = vrot.lane.b32.xlu2 %v1418_v55, %s5150_s29  ;;  %1767 = vrot.lane.b32.xlu0 %v5590_v49, %s5150_s29 }
  0xc1   : > { %v5757_v43 = vpop.permute.xlu1 %2976 }
  0xc2   : > { %v5759_v25 = vpop.permute.xlu0 %2974  ;;  %v5761_v35 = vpop.permute.xlu2 %2686  ;;  %v3047_v52 = vsel %vm439_vm3, %v3046_v23, %v5757_v43 }
  0xc3   : > { %v3075_v50 = vsel %vm439_vm3, %v3074_v26, %v5759_v25  ;;  %v5892_v25 = vperm.slane %v3047_v52, %v5395_v8 }
  0xc5   : > { %v3052_v52 = vrot.slane %v5892_v25, 4 }
  0xc7   : > { %1775 = vrot.lane.b32.xlu1 %v1442_v31, %s5150_s29 }
  0xc8   : > { %1773 = vrot.lane.b32.xlu0 %v5652_v63, %s5150_s29  ;;  %2047 = vrot.lane.b32.xlu2 %v5658_v53, %s5149_s23 }
  0xc9   : > { %v5768_v51 = vpop.permute.xlu1 %2982 }
  0xca   : > { %v5770_v55 = vpop.permute.xlu0 %2980  ;;  %v5772_v40 = vpop.permute.xlu2 %2692 }
  0xcb   : > { %v3012_v47 = vrot.slane %v5770_v55, 4  ;;  %v2802_v43 = vrot.slane %v5772_v40, 4  ;;  %v3068_v55 = vrot.slane %v5768_v51, 4  ;;  %v5898_v40 = vperm.slane %v3075_v50, %v5395_v8 }
  0xcf   : > { %2051 = vrot.lane.b32.xlu1 %v5699_v36, %s5149_s23 }
  0xd0   : > { %2049 = vrot.lane.b32.xlu0 %v1322_v20, %s5149_s23  ;;  %2053 = vrot.lane.b32.xlu2 %v1346_v1, %s5149_s23 }
  0xd1   : > { %v5778_v31 = vpop.permute.xlu1 %2678 }
  0xd2   : > { %v5780_v49 = vpop.permute.xlu0 %2986  ;;  %v5782_v63 = vpop.permute.xlu2 %2968 }
  0xd7   : > { %1028 = vrot.lane.b32.xlu1 %v5297_v22, %s5149_s23 }
  0xd8   : > { %1026 = vrot.lane.b32.xlu0 %v5292_v19, %s5149_s23  ;;  %1030 = vrot.lane.b32.xlu2 %v5286_v17, %s5149_s23 }
  0xd9   : > { %v5790_v9 = vpop.permute.xlu1 %2684 }
  0xda   : > { %v5792_v48 = vpop.permute.xlu0 %2682  ;;  %v5794_v21 = vpop.permute.xlu2 %2073 }
  0xdf   : > { %1753 = vrot.lane.b32.xlu1 %v5658_v53, %s5150_s29 }
  0xe0   : > { %1032 = vrot.lane.b32.xlu0 %v5289_v18, %s5149_s23  ;;  %1755 = vrot.lane.b32.xlu2 %v1322_v20, %s5150_s29 }
  0xe1   : > { %v5801_v59 = vpop.permute.xlu1 %2690 }
  0xe2   : > { %v2689_v32 = vpop.permute.xlu0 %2688  ;;  %v5803_v7 = vpop.permute.xlu2 %2670  ;;  %v2746_v51 = vrot.slane %v5801_v59, 4 }
  0xe3   : > { %v2774_v16 = vrot.slane %v2689_v32, 4 }
  0xe7   : > { %1759 = vrot.lane.b32.xlu1 %v1346_v1, %s5150_s29 }
  0xe8   : > { %1757 = vrot.lane.b32.xlu0 %v5699_v36, %s5150_s29  ;;  %732 = vrot.lane.b32.xlu2 %v5292_v19, %s5150_s29 }
  0xe9   : > { %v5810_v57 = vpop.permute.xlu1 %2966 }
  0xea   : > { %v2677_v53 = vpop.permute.xlu2 %2676  ;;  %v2965_v15 = vpop.permute.xlu0 %2964 }
  0xeb   : > { %v2803_v23 = vsel %vm439_vm3, %v2802_v43, %v2677_v53  ;;  %v2725_v53 = vsel %vm439_vm3, %v2724_v27, %v5778_v31  ;;  %v3080_v27 = vrot.slane %v5898_v40, 4 }
  0xef   : > { %736 = vrot.lane.b32.xlu1 %v5286_v17, %s5150_s29 }
  0xf0   : > { %734 = vrot.lane.b32.xlu0 %v5297_v22, %s5150_s29  ;;  %738 = vrot.lane.b32.xlu2 %v5289_v18, %s5150_s29  ;;  %v3018_v18 = vrot.slane %v5676_v41, 4 }
  0xf1   : > { %v5818_v20 = vpop.permute.xlu1 %2071 }
  0xf2   : > { %v5820_v1 = vpop.permute.xlu2 %1781  ;;  %v2971_v36 = vpop.permute.xlu0 %2970  ;;  %v3019_v56 = vsel %vm439_vm3, %v3018_v18, %v5636_v44  ;;  %v3103_v44 = vsel %vm439_vm3, %v3102_v6, %v5678_v13  ;;  %v5852_v18 = vunpack.c.0.s8 %v456_v28  ;;  %v2808_v13 = vrot.slane %v5743_v33, 4 }
  0xf3   : > { %v5847_v29 = vperm.slane %v3019_v56, %v5395_v8  ;;  %v2781_v56 = vsel %vm439_vm3, %v2780_v5, %v5750_v46  ;;  %v5864_v60 = vperm.slane %v3103_v44, %v5395_v8  ;;  %v2752_v5 = vrot.slane %v5748_v45, 4 }
  0xf4   : > { %8583 = vst [vmem:[#allocation27_spill] sm:$0xff] %v5852_v18  ;;  %v3096_v28 = vrot.slane %v5780_v49, 4  ;;  %v5881_v46 = vperm.slane %v2781_v56, %v5395_v8  ;;  %v2809_v32 = vsel %vm439_vm3, %v2808_v13, %v5790_v9  ;;  %v3013_v49 = vsel %vm439_vm3, %v3012_v47, %v2965_v15 }
  0xf5   : > { %v3024_v58 = vrot.slane %v5847_v29, 4  ;;  %v3041_v9 = vsel %vm439_vm3, %v3040_v39, %v5782_v63  ;;  %v5906_v26 = vperm.slane %v2809_v32, %v5395_v8  ;;  %v3069_v15 = vsel %vm439_vm3, %v3068_v55, %v5810_v57 }
  0xf6   : > { %v3097_v44 = vsel %vm439_vm3, %v3096_v28, %v2971_v36  ;;  %v2786_v56 = vrot.slane %v5881_v46, 4  ;;  %v2718_v39 = vrot.slane %v5761_v35, 4  ;;  %v5917_v63 = vperm.slane %v3013_v49, %v5395_v8 }
  0xf7   : > { %1012 = vrot.lane.b32.xlu1 %v5318_v34, %s5149_s23  ;;  %v3045_v59 = vperm.slane %v3041_v9, %v5395_v8  ;;  %v5926_v57 = vperm.slane %v2803_v23, %v5395_v8  ;;  %v3108_v35 = vrot.slane %v5864_v60, 4  ;;  %v5950_v47 = vperm.slane %v2725_v53, %v5395_v8 }
  0xf8   : > { %1010 = vrot.lane.b32.xlu0 %v5311_v30, %s5149_s23  ;;  %1014 = vrot.lane.b32.xlu2 %v5325_v38, %s5149_s23  ;;  %v2719_v31 = vsel %vm439_vm3, %v2718_v39, %v5803_v7  ;;  %v6083_v0 = vperm.slane %v8599_v62, %v5852_v18 }
  0xf9   : > { %v5828_v17 = vpop.permute.xlu1 %2077  ;;  %v3053_v7 = vsel %vm439_vm3, %v3052_v52, %v3045_v59  ;;  %v5968_v49 = vperm.slane %v2719_v31, %v5395_v8  ;;  %v2730_v23 = vrot.slane %v5950_v47, 4 }
  0xfa   : > { %v5830_v19 = vpop.permute.xlu2 %2057  ;;  %v5832_v22 = vpop.permute.xlu0 %2075  ;;  %8600 = vst [vmem:[#allocation16_spill] sm:$0xff] %v6083_v0 }
  0xfb   : > { %v2731_v53 = vsel %vm439_vm3, %v2730_v23, %v5968_v49 }
  0xff   : > { %1018 = vrot.lane.b32.xlu1 %v5385_v2, %s5149_s23 }
 0x100   : > { %1016 = vrot.lane.b32.xlu0 %v5332_v42, %s5149_s23  ;;  %1020 = vrot.lane.b32.xlu2 %v5374_v61, %s5149_s23 }
 0x101   : > { %v2675_v14 = vpop.permute.xlu1 %2674 }
 0x102   : > { %v5844_v54 = vpop.permute.xlu2 %2063  ;;  %v2673_v41 = vpop.permute.xlu0 %2672  ;;  %v2747_v13 = vsel %vm439_vm3, %v2746_v51, %v2675_v14 }
 0x103   : > { %v5957_v28 = vperm.slane %v2747_v13, %v5395_v8 }
 0x107   : > { %1024 = vrot.lane.b32.xlu1 %v5391_v4, %s5149_s23 }
 0x108   : > { %1022 = vrot.lane.b32.xlu0 %v5388_v3, %s5149_s23  ;;  %716 = vrot.lane.b32.xlu2 %v5311_v30, %s5150_s29  ;;  %v2775_v30 = vsel %vm439_vm3, %v2774_v16, %v2673_v41  ;;  %v2753_v41 = vsel %vm439_vm3, %v2752_v5, %v5792_v48  ;;  %v5920_v48 = vperm.slane %v3097_v44, %v5395_v8 }
 0x109   : > { %v5878_v33 = vpop.permute.xlu1 %1779  ;;  %v5912_v36 = vperm.slane %v2775_v30, %v5395_v8  ;;  %v5934_v16 = vperm.slane %v2753_v41, %v5395_v8  ;;  %v5937_v5 = vperm.slane %v3069_v15, %v5395_v8 }
 0x10a   : > { %v5887_v45 = vpop.permute.xlu2 %2069  ;;  %v5889_v6 = vpop.permute.xlu0 %1777 }
 0x10b   : > { %v2787_v14 = vsel %vm439_vm3, %v2786_v56, %v5912_v36  ;;  %v2758_v55 = vrot.slane %v5934_v16, 4  ;;  %v5988_v56 = vperm.slane %v3053_v7, %v5852_v18 }
 0x10c   : > { %v5973_v44 = vperm.slane %v2787_v14, %v5852_v18  ;;  %v3054_v14 = vrot.slane %v3045_v59, 4 }
 0x10d   : > { %v2759_v15 = vsel %vm439_vm3, %v2758_v55, %v5957_v28  ;;  %8590 = vst [vmem:[#allocation34_spill] sm:$0xff] %v5988_v56 }
 0x10e   : > { %8586 = vst [vmem:[#allocation30_spill] sm:$0xff] %v5973_v44 }
 0x10f   : > { %720 = vrot.lane.b32.xlu1 %v5325_v38, %s5150_s29  ;;  %v2814_v38 = vrot.slane %v5906_v26, 4 }
 0x110   : > { %718 = vrot.lane.b32.xlu0 %v5318_v34, %s5150_s29  ;;  %722 = vrot.lane.b32.xlu2 %v5332_v42, %s5150_s29  ;;  %v3025_v34 = vsel %vm439_vm3, %v3024_v58, %v5917_v63  ;;  %v3109_v42 = vsel %vm439_vm3, %v3108_v35, %v5920_v48  ;;  %v3081_v58 = vsel %vm439_vm3, %v3080_v27, %v5937_v5  ;;  %v8594_v27 = vld [vmem:[#allocation13_spill] sm:$0xff] }
 0x111   : > { %v2056_v50 = vpop.permute.xlu1 %2055  ;;  %v2815_v30 = vsel %vm439_vm3, %v2814_v38, %v5926_v57  ;;  %v5976_v9 = vperm.slane %v3025_v34, %v5852_v18  ;;  %v5979_v41 = vperm.slane %v3109_v42, %v5852_v18  ;;  %v5991_v39 = vperm.slane %v3081_v58, %v5852_v18 }
 0x112   : > { %v5959_v43 = vpop.permute.xlu2 %1765  ;;  %v5961_v32 = vpop.permute.xlu0 %1783  ;;  %v5983_v51 = vperm.slane %v2815_v30, %v5852_v18  ;;  %v6004_v35 = vperm.slane %v2759_v15, %v5852_v18  ;;  %v2101_v34 = vrot.slane %v5818_v20, 4  ;;  %v2095_v42 = vrot.slane %v5844_v54, 4 }
 0x113   : > { %8584 = vst [vmem:[#allocation28_spill] sm:$0xff] %v5959_v43  ;;  %v3151_v10 = vshrl.u32 %v5991_v39, 16  ;;  %v8604_v43 = vld [vmem:[#allocation18_spill] sm:$0xff] }
 0x114   : > { %8585 = vst [vmem:[#allocation29_spill] sm:$0xff] %v5961_v32  ;;  %v2102_v58 = vsel %vm439_vm3, %v2101_v34, %v2056_v50  ;;  %v3036_v50 = vrot.slane %v5976_v9, 4 }
 0x115   : > { %8587 = vst [vmem:[#allocation31_spill] sm:$0xff] %v5976_v9  ;;  %v6039_v59 = vperm.slane %v2102_v58, %v5395_v8 }
 0x116   : > { %8588 = vst [vmem:[#allocation32_spill] sm:$0xff] %v5979_v41 }
 0x117   : > { %8589 = vst [vmem:[#allocation33_spill] sm:$0xff] %v5983_v51  ;;  %726 = vrot.lane.b32.xlu1 %v5374_v61, %s5150_s29  ;;  %v6067_v61 = vperm.slane %v8594_v27, %v5852_v18  ;;  %v3037_v27 = vsel %vm439_vm3, 0, %v3036_v50 }
 0x118   : > { %8591 = vst [vmem:[#allocation35_spill] sm:$0xff] %v5991_v39  ;;  %724 = vrot.lane.b32.xlu0 %v5385_v2, %s5150_s29  ;;  %728 = vrot.lane.b32.xlu2 %v5388_v3, %s5150_s29  ;;  %v6015_v2 = vperm.slane %v2731_v53, %v5852_v18  ;;  %v2732_v3 = vrot.slane %v5968_v49, 4  ;;  %v6099_v49 = vperm.slane %v8604_v43, %v5852_v18 }
 0x119   : > { %8592 = vst [vmem:[#allocation36_spill] sm:$0xff] %v6004_v35  ;;  %v2062_v52 = vpop.permute.xlu1 %2061 }
 0x11a   : > { %v6010_v38 = vpop.permute.xlu2 %1771  ;;  %v6012_v31 = vpop.permute.xlu0 %2059  ;;  %8593 = vst [vmem:[#allocation37_spill] sm:$0xff] %v6015_v2 }
 0x11b   : > { %8595 = vst [vmem:[#allocation13_spill] sm:$0xff] %v6067_v61 }
 0x11c   : > { %8605 = vst [vmem:[#allocation18_spill] sm:$0xff] %v6099_v49 }
 0x11f   : > { %1002 = vrot.lane.b32.xlu1 %v5442_v37, %s5149_s23 }
 0x120   : > { %730 = vrot.lane.b32.xlu0 %v5391_v4, %s5150_s29  ;;  %1004 = vrot.lane.b32.xlu2 %v5428_v24, %s5149_s23  ;;  %v3055_v4 = vsel %vm439_vm3, %v5892_v25, %v3054_v14  ;;  %v3064_v25 = vrot.slane %v5988_v56, 4 }
 0x121   : > { %v6027_v7 = vpop.permute.xlu1 %2067  ;;  %v6057_v14 = vperm.slane %v3055_v4, %v5852_v18 }
 0x122   : > { %v6029_v30 = vpop.permute.xlu0 %2065  ;;  %v2048_v55 = vpop.permute.xlu2 %2047 }
 0x123   : > { %v2096_v23 = vsel %vm439_vm3, %v2095_v42, %v2048_v55  ;;  %v2185_v42 = vrot.slane %v5828_v17, 4  ;;  %v2179_v55 = vrot.slane %v5887_v45, 4  ;;  %v3128_v45 = vshrl.u32 %v5988_v56, 16 }
 0x124   : > { %v6034_v15 = vperm.slane %v2096_v23, %v5395_v8  ;;  %v3127_v23 = vshrl.u32 %v5976_v9, 16 }
 0x125   : > { %v2186_v53 = vsel %vm439_vm3, %v2185_v42, %v2062_v52  ;;  %v3065_v52 = vsel %vm439_vm3, 0, %v3064_v25  ;;  %v3066_v42 = vrot.slane %v6057_v14, 4  ;;  %v2742_v25 = vrot.slane %v6015_v2, 4 }
 0x126   : > { %v2109_v54 = vrot.slane %v6034_v15, 4  ;;  %v3129_v56 = vpack.i.b16 %v3128_v45, %v3127_v23  ;;  %v3132_v62 = vpack.i.b16 %v3065_v52, %v3037_v27  ;;  %v3134_v43 = vshrl.u32 %v3065_v52, 16 }
 0x127   : > { %1008 = vrot.lane.b32.xlu1 %v5409_v12, %s5149_s23  ;;  %v2833_v45 = vshrl.u32 %v6015_v2, 16  ;;  %v2857_v52 = vshrl.u32 %v5973_v44, 16  ;;  %v6134_v2 = vsel %vm439_vm3, 0, %v2742_v25 }
 0x128   : > { %v6049_v34 = vsel %vm439_vm3, %v6039_v59, %v2109_v54  ;;  %1006 = vrot.lane.b32.xlu0 %v5406_v11, %s5149_s23  ;;  %708 = vrot.lane.b32.xlu2 %v5442_v37, %s5150_s29  ;;  %v3152_v54 = vshrl.u32 %v5979_v41, 16  ;;  %v8596_v37 = vld [vmem:[#allocation14_spill] sm:$0xff] }
 0x129   : > { %v6061_v58 = vpop.permute.xlu1 %1763  ;;  %v6071_v13 = vperm.slane %v8596_v37, %v5852_v18  ;;  %v3110_v37 = vrot.slane %v5920_v48, 4  ;;  %v2770_v48 = vrot.slane %v6004_v35, 4 }
 0x12a   : > { %v6074_v20 = vpop.permute.xlu0 %1761  ;;  %v2054_v17 = vpop.permute.xlu2 %2053  ;;  %v3153_v32 = vpack.i.b16 %v3152_v54, %v3151_v10  ;;  %v3026_v10 = vrot.slane %v5917_v63, 4  ;;  %v3092_v63 = vrot.slane %v5991_v39, 4  ;;  %v3082_v39 = vrot.slane %v5937_v5, 4 }
 0x12b   : > { %8597 = vst [vmem:[#allocation14_spill] sm:$0xff] %v6071_v13  ;;  %v2180_v9 = vsel %vm439_vm3, %v2179_v55, %v2054_v17  ;;  %v6093_v55 = vperm.slane %v2186_v53, %v5395_v8  ;;  %v3120_v17 = vrot.slane %v5979_v41, 4  ;;  %v2733_v53 = vsel %vm439_vm3, %v5950_v47, %v2732_v3 }
 0x12c   : > { %v6088_v4 = vperm.slane %v2180_v9, %v5395_v8  ;;  %v2834_v47 = vshrl.u32 %v6004_v35, 16  ;;  %v6122_v3 = vsel %vm439_vm3, 0, %v3066_v42  ;;  %v3176_v41 = vunpack.c.l.b16 %v3132_v62 }
 0x12d   : > { %8603 = vst [vmem:[#allocation39_spill] sm:$0xff] %v6093_v55  ;;  %v6137_v42 = vperm.slane %v2733_v53, %v5852_v18  ;;  %v2858_v62 = vshrl.u32 %v5983_v51, 16  ;;  %v3140_v5 = vshrl.u32 %v6057_v14, 16  ;;  %v3083_v53 = vsel %vm439_vm3, %v5898_v40, %v3082_v39 }
 0x12e   : > { %8602 = vst [vmem:[#allocation38_spill] sm:$0xff] %v6088_v4  ;;  %v2193_v50 = vrot.slane %v6088_v4, 4 }
 0x12f   : > { %712 = vrot.lane.b32.xlu1 %v5406_v11, %s5150_s29  ;;  %v3200_v11 = vunpack.c.l.b16 %v3153_v32  ;;  %v3027_v32 = vsel %vm439_vm3, %v5847_v29, %v3026_v10  ;;  %v3177_v29 = vpack.c.b16 %v3176_v41, %v3176_v41  ;;  %v2859_v10 = vpack.i.b16 %v2858_v62, %v2857_v52 }
 0x130   : > { %v6110_v23 = vsel %vm439_vm3, %v6093_v55, %v2193_v50  ;;  %710 = vrot.lane.b32.xlu0 %v5428_v24, %s5150_s29  ;;  %714 = vrot.lane.b32.xlu2 %v5409_v12, %s5150_s29  ;;  %v3172_v24 = vunpack.c.l.b16 %v3129_v56  ;;  %v3121_v12 = vsel %vm439_vm3, 0, %v3120_v17  ;;  %v3093_v56 = vsel %vm439_vm3, 0, %v3092_v63 }
 0x131   : > { %v6117_v54 = vpop.permute.xlu1 %1769  ;;  %v3133_v17 = vshrl.u32 %v3037_v27, 16  ;;  %v3156_v4 = vpack.i.b16 %v3121_v12, %v3093_v56  ;;  %v2835_v55 = vpack.i.b16 %v2834_v47, %v2833_v45  ;;  %v6149_v27 = vperm.slane %v3027_v32, %v5852_v18 }
 0x132   : > { %v6124_v50 = vpop.permute.xlu0 %1767  ;;  %v6126_v9 = vpop.permute.xlu2 %1030  ;;  %v3158_v40 = vshrl.u32 %v3121_v12, 16  ;;  %v1857_v45 = vrot.slane %v6010_v38, 4  ;;  %v2816_v32 = vrot.slane %v5926_v57, 4  ;;  %v3157_v62 = vshrl.u32 %v3093_v56, 16 }
 0x133   : > { %8606 = vst [vmem:[#allocation40_spill] sm:$0xff] %v6124_v50  ;;  %v3173_v50 = vpack.c.b16 %v3172_v24, %v3172_v24  ;;  %v3135_v41 = vpack.i.b16 %v3134_v43, %v3133_v17  ;;  %v3204_v24 = vunpack.c.l.b16 %v3156_v4  ;;  %v2878_v52 = vunpack.c.l.b16 %v2835_v55 }
 0x134   : > { %8607 = vst [vmem:[#allocation41_spill] sm:$0xff] %v6126_v9  ;;  %v3201_v9 = vpack.c.b16 %v3200_v11, %v3200_v11  ;;  %v3111_v11 = vsel %vm439_vm3, %v5864_v60, %v3110_v37  ;;  %v6165_v43 = vperm.slane %v3083_v53, %v5852_v18  ;;  %v6171_v38 = vsel %vm439_vm3, 0, %v2770_v48 }
 0x135   : > { %v3139_v4 = vshrl.u32 %v6149_v27, 16  ;;  %v2826_v55 = vrot.slane %v5983_v51, 4  ;;  %v3138_v56 = vpack.i.b16 %v6057_v14, %v6149_v27  ;;  %v6181_v17 = vperm.slane %v3111_v11, %v5852_v18 }
 0x136   : > { %v3159_v53 = vpack.i.b16 %v3158_v40, %v3157_v62  ;;  %v2798_v11 = vrot.slane %v5973_v44, 4  ;;  %v2129_v40 = vrot.slane %v5832_v22, 4 }
 0x137   : > { %3202 = vrot.lane.b32.xlu1 %v3201_v9, %s5153_s8  ;;  %v1863_v9 = vrot.slane %v5878_v33, 4  ;;  %v6211_v62 = vunpack.c.l.b16 %v3138_v56 }
 0x138   : > { %3174 = vrot.lane.b32.xlu0 %v3173_v50, %s5153_s8  ;;  %3178 = vrot.lane.b32.xlu2 %v3177_v29, %s5154_s9  ;;  %v2906_v50 = vunpack.c.l.b16 %v2859_v10  ;;  %v3205_v29 = vpack.c.b16 %v3204_v24, %v3204_v24  ;;  %v3180_v10 = vunpack.c.l.b16 %v3135_v41  ;;  %v3141_v41 = vpack.i.b16 %v3140_v5, %v3139_v4 }
 0x139   : > { %v6159_v47 = vpop.permute.xlu1 %1775  ;;  %v1864_v12 = vsel %vm439_vm3, %v1863_v9, %v6061_v58  ;;  %v2879_v58 = vpack.c.b16 %v2878_v52, %v2878_v52  ;;  %v2123_v24 = vrot.slane %v6027_v7, 4  ;;  %v3208_v22 = vunpack.c.l.b16 %v3159_v53 }
 0x13a   : > { %v6162_v60 = vpop.permute.xlu0 %1773  ;;  %v1756_v37 = vpop.permute.xlu2 %1755  ;;  %v6184_v48 = vperm.slane %v1864_v12, %v5395_v8  ;;  %v6209_v7 = vsel %vm439_vm3, 0, %v2826_v55  ;;  %v2130_v12 = vsel %vm439_vm3, %v2129_v40, %v6012_v31  ;;  %v3188_v53 = vunpack.c.l.b16 %v3141_v41 }
 0x13b   : > { %v1858_v33 = vsel %vm439_vm3, %v1857_v45, %v1756_v37  ;;  %v2907_v45 = vpack.c.b16 %v2906_v50, %v2906_v50  ;;  %v2838_v37 = vpack.i.b16 %v6171_v38, %v6134_v2  ;;  %v3163_v55 = vshrl.u32 %v6165_v43, 16 }
 0x13c   : > { %v6175_v57 = vperm.slane %v1858_v33, %v5395_v8  ;;  %v2817_v33 = vsel %vm439_vm3, %v5906_v26, %v2816_v32  ;;  %v3162_v26 = vpack.i.b16 %v6181_v17, %v6165_v43  ;;  %v8608_v32 = vrot.slane %v5794_v21, 4 }
 0x13d   : > { %v2151_v31 = vrot.slane %v6029_v30, 4  ;;  %v2540_v30 = vshrl.u32 %v6067_v61, 16  ;;  %v6253_v39 = vpack.c.b16 %v3188_v53, %v3188_v53  ;;  %v2760_v53 = vrot.slane %v5957_v28, 4 }
 0x13e   : > { %v1871_v9 = vrot.slane %v6175_v57, 4  ;;  %v2158_v5 = vsel %vm439_vm3, %v8608_v32, %v5830_v19  ;;  %v6220_v19 = vsel %vm439_vm3, 0, %v2798_v11  ;;  %v3212_v40 = vunpack.c.l.b16 %v3162_v26 }
 0x13f   : > { %2880 = vrot.lane.b32.xlu1 %v2879_v58, %s5153_s8  ;;  %v6224_v56 = vperm.slane %v2158_v5, %v5395_v8  ;;  %v2134_v32 = vperm.slane %v2130_v12, %v5395_v8  ;;  %v2862_v41 = vpack.i.b16 %v6209_v7, %v6220_v19  ;;  %v2539_v5 = vshrl.u32 %v6083_v0, 16 }
 0x140   : > { %v6198_v52 = vsel %vm439_vm3, %v6184_v48, %v1871_v9  ;;  %3206 = vrot.lane.b32.xlu0 %v3205_v29, %s5154_s9  ;;  %2908 = vrot.lane.b32.xlu2 %v2907_v45, %s5153_s8  ;;  %v3181_v9 = vpack.c.b16 %v3180_v10, %v3180_v10  ;;  %v2882_v45 = vunpack.c.l.b16 %v2838_v37  ;;  %v3209_v37 = vpack.c.b16 %v3208_v22, %v3208_v22 }
 0x141   : > { %v2052_v50 = vpop.permute.xlu1 %2051  ;;  %v2563_v26 = vshrl.u32 %v6071_v13, 16  ;;  %v3185_v22 = vpack.c.b16 %v6211_v62, %v6211_v62  ;;  %v2864_v12 = vshrl.u32 %v6209_v7, 16  ;;  %v2910_v7 = vunpack.c.l.b16 %v2862_v41 }
 0x142   : > { %v2124_v4 = vsel %vm439_vm3, %v2123_v24, %v2052_v50  ;;  %v2050_v29 = vpop.permute.xlu0 %2049  ;;  %v6216_v58 = vpop.permute.xlu2 %732  ;;  %v3164_v24 = vshrl.u32 %v6181_v17, 16  ;;  %v3038_v50 = vrot.slane %v6149_v27, 4  ;;  %v2564_v27 = vshrl.u32 %v6099_v49, 16 }
 0x143   : > { %v2128_v21 = vperm.slane %v2124_v4, %v5395_v8  ;;  %v2152_v11 = vsel %vm439_vm3, %v2151_v31, %v2050_v29  ;;  %v2883_v4 = vpack.c.b16 %v2882_v45, %v2882_v45  ;;  %v3094_v45 = vrot.slane %v6165_v43, 4 }
 0x144   : > { %v3165_v29 = vpack.i.b16 %v3164_v24, %v3163_v55  ;;  %v3213_v55 = vpack.c.b16 %v3212_v40, %v3212_v40  ;;  %v2840_v43 = vshrl.u32 %v6171_v38, 16  ;;  %v3122_v24 = vrot.slane %v6181_v17, 4 }
 0x145   : > { %v2137_v10 = vrot.slane %v2128_v21, 4  ;;  %v2135_v31 = vrot.slane %v2134_v32, 4  ;;  %v2565_v14 = vpack.i.b16 %v2564_v27, %v2563_v26  ;;  %v6265_v63 = vsel %vm439_vm3, 0, %v3038_v50 }
 0x146   : > { %v3216_v44 = vunpack.c.l.b16 %v3165_v29  ;;  %v6270_v51 = vsel %vm439_vm3, 0, %v3094_v45  ;;  %v2107_v40 = vrot.slane %v6039_v59, 4  ;;  %v2911_v41 = vpack.c.b16 %v2910_v7, %v2910_v7 }
 0x147   : > { %v6235_v25 = vsel %vm439_vm3, %v2134_v32, %v2137_v10  ;;  %3210 = vrot.lane.b32.xlu1 %v3209_v37, %s8555_s13  ;;  %v6249_v10 = vperm.slane %v2152_v11, %v5395_v8  ;;  %v2541_v11 = vpack.i.b16 %v2540_v30, %v2539_v5  ;;  %v2136_v38 = vsel %vm439_vm3, %v2135_v31, %v2128_v21 }
 0x148   : > { %3182 = vrot.lane.b32.xlu0 %v3181_v9, %s8555_s13  ;;  %2884 = vrot.lane.b32.xlu2 %v2883_v4, %s5154_s9  ;;  %v6256_v9 = vperm.slane %v2817_v33, %v5852_v18  ;;  %v1807_v33 = vrot.slane %v5889_v6, 4  ;;  %v2863_v32 = vshrl.u32 %v6220_v19, 16  ;;  %v8609_v50 = vshrl.u32 %v6134_v2, 16 }
 0x149   : > { %v6251_v37 = vpop.permute.xlu1 %1028  ;;  %v2165_v17 = vrot.slane %v6249_v10, 4  ;;  %v2108_v30 = vsel %vm439_vm3, %v2107_v40, %v6034_v15  ;;  %v2584_v21 = vunpack.c.l.b16 %v2541_v11  ;;  %v2612_v19 = vunpack.c.l.b16 %v2565_v14 }
 0x14a   : > { %v6258_v4 = vpop.permute.xlu0 %1026  ;;  %v6260_v62 = vpop.permute.xlu2 %738  ;;  %v2841_v5 = vpack.i.b16 %v2840_v43, %v8609_v50  ;;  %v1808_v59 = vsel %vm439_vm3, %v1807_v33, %v6074_v20  ;;  %v1801_v26 = vrot.slane %v6117_v54, 4  ;;  %v6288_v2 = vperm.slane %v2136_v38, %v5852_v18 }
 0x14b   : > { %v6292_v27 = vpack.c.b16 %v3216_v44, %v3216_v44  ;;  %v6295_v15 = vsel %vm439_vm3, 0, %v3122_v24  ;;  %v2761_v20 = vsel %vm439_vm3, %v5934_v16, %v2760_v53  ;;  %v2166_v54 = vsel %vm439_vm3, %v6224_v56, %v2165_v17 }
 0x14c   : > { %8610 = vst [vmem:[#allocation42_spill] sm:$0xff] %v6288_v2  ;;  %v2865_v29 = vpack.i.b16 %v2864_v12, %v2863_v32  ;;  %v6303_v45 = vperm.slane %v2108_v30, %v5852_v18  ;;  %v6306_v31 = vperm.slane %v1808_v59, %v5395_v8  ;;  %v2886_v16 = vunpack.c.l.b16 %v2841_v5  ;;  %v8615_v59 = vld [vmem:[#allocation29_spill] sm:$0xff] }
 0x14d   : > { %v2585_v43 = vpack.c.b16 %v2584_v21, %v2584_v21  ;;  %v2613_v24 = vpack.c.b16 %v2612_v19, %v2612_v19  ;;  %v2504_v12 = vrot.slane %v6071_v13, 4  ;;  %v2532_v11 = vrot.slane %v6099_v49, 4 }
 0x14e   : > { %8611 = vst [vmem:[#allocation43_spill] sm:$0xff] %v6303_v45  ;;  %v6319_v53 = vperm.slane %v2166_v54, %v5852_v18  ;;  %v6323_v33 = vperm.slane %v6235_v25, %v5852_v18  ;;  %v2448_v17 = vrot.slane %v6083_v0, 4  ;;  %v2476_v32 = vrot.slane %v6067_v61, 4 }
 0x14f   : > { %3186 = vrot.lane.b32.xlu1 %v3185_v22, %s5156_s14  ;;  %v2788_v22 = vrot.slane %v5912_v36, 4  ;;  %v2887_v5 = vpack.c.b16 %v2886_v16, %v2886_v16  ;;  %v6337_v25 = vperm.slane %v2761_v20, %v5852_v18  ;;  %v6341_v30 = vperm.slane %v6049_v34, %v5852_v18  ;;  %v8616_v16 = vld [vmem:[#allocation40_spill] sm:$0xff] }
 0x150   : > { %2912 = vrot.lane.b32.xlu0 %v2911_v41, %s5154_s9  ;;  %3214 = vrot.lane.b32.xlu2 %v3213_v55, %s5156_s14  ;;  %8612 = vst [vmem:[#allocation44_spill] sm:$0xff] %v6319_v53  ;;  %v6332_v41 = vperm.slane %v6110_v23, %v5852_v18  ;;  %v1891_v21 = vrot.slane %v8615_v59, 4  ;;  %v2914_v23 = vunpack.c.l.b16 %v2865_v29  ;;  %v6355_v34 = vsel %vm439_vm3, 0, %v2504_v12 }
 0x151   : > { %v1754_v14 = vpop.permute.xlu1 %1753  ;;  %8613 = vst [vmem:[#allocation45_spill] sm:$0xff] %v6323_v33  ;;  %v2789_v50 = vsel %vm439_vm3, %v5881_v46, %v2788_v22  ;;  %v6358_v20 = vsel %vm439_vm3, 0, %v2532_v11  ;;  %v1829_v54 = vrot.slane %v6162_v60, 4  ;;  %v6364_v29 = vsel %vm439_vm3, 0, %v2448_v17  ;;  %v8620_v46 = vld [vmem:[#allocation39_spill] sm:$0xff] }
 0x152   : > { %v6308_v44 = vpop.permute.xlu0 %1032  ;;  %v1802_v7 = vsel %vm439_vm3, %v1801_v26, %v1754_v14  ;;  %v6311_v55 = vpop.permute.xlu2 %1014  ;;  %8614 = vst [vmem:[#allocation46_spill] sm:$0xff] %v6341_v30  ;;  %v1885_v26 = vrot.slane %v6159_v47, 4  ;;  %v6367_v47 = vsel %vm439_vm3, 0, %v2476_v32  ;;  %v2246_v60 = vshrl.u32 %v6319_v53, 16 }
 0x153   : > { %v6314_v36 = vperm.slane %v1802_v7, %v5395_v8  ;;  %v2223_v7 = vshrl.u32 %v6323_v33, 16  ;;  %v2222_v59 = vshrl.u32 %v6341_v30, 16  ;;  %v2915_v40 = vpack.c.b16 %v2914_v23, %v2914_v23 }
 0x155   : > { %v1815_v38 = vrot.slane %v6314_v36, 4  ;;  %v6399_v22 = vpack.i.b16 %v2223_v7, %v2222_v59  ;;  %v2205_v7 = vrot.slane %v6332_v41, 4  ;;  %v2149_v59 = vrot.slane %v6323_v33, 4 }
 0x157   : > { %v6346_v19 = vsel %vm439_vm3, %v6306_v31, %v1815_v38  ;;  %2614 = vrot.lane.b32.xlu1 %v2613_v24, %s5153_s8  ;;  %v6376_v38 = vperm.slane %v2789_v50, %v5852_v18  ;;  %v2544_v50 = vpack.i.b16 %v6367_v47, %v6364_v29  ;;  %8619 = vst [vmem:[#allocation29_spill] sm:$0xff] %v6399_v22  ;;  %v6454_v61 = vsel %vm439_vm3, 0, %v2205_v7 }
 0x158   : > { %2586 = vrot.lane.b32.xlu0 %v2585_v43, %s5153_s8  ;;  %2888 = vrot.lane.b32.xlu2 %v2887_v5, %s8555_s13  ;;  %v1892_v43 = vsel %vm439_vm3, %v1891_v21, %v8616_v16  ;;  %v2568_v5 = vpack.i.b16 %v6358_v20, %v6355_v34  ;;  %v8617_v21 = vld [vmem:[#allocation28_spill] sm:$0xff]  ;;  %v2844_v16 = vpack.i.b16 %v6337_v25, %v6137_v42  ;;  %v2546_v22 = vshrl.u32 %v6367_v47, 16 }
 0x159   : > { %v1760_v14 = vpop.permute.xlu1 %1759  ;;  %8628 = vst [vmem:[#allocation47_spill] sm:$0xff] %v6454_v61 }
 0x15a   : > { %v1758_v24 = vpop.permute.xlu0 %1757  ;;  %v1886_v12 = vsel %vm439_vm3, %v1885_v26, %v1760_v14  ;;  %v6373_v11 = vpop.permute.xlu2 %1020  ;;  %v8618_v26 = vrot.slane %v5820_v1, 4  ;;  %v2191_v1 = vrot.slane %v8620_v46, 4  ;;  %v2616_v23 = vunpack.c.l.b16 %v2568_v5 }
 0x15b   : > { %v1830_v17 = vsel %vm439_vm3, %v1829_v54, %v1758_v24  ;;  %v6381_v32 = vperm.slane %v1886_v12, %v5395_v8  ;;  %v2247_v54 = vshrl.u32 %v6332_v41, 16  ;;  %v6396_v24 = vperm.slane %v1892_v43, %v5395_v8 }
 0x15c   : > { %v1836_v14 = vsel %vm439_vm3, %v8618_v26, %v8617_v21  ;;  %v8621_v21 = vrot.slane %v6224_v56, 4  ;;  %v6407_v6 = vperm.slane %v1830_v17, %v5395_v8  ;;  %v2177_v46 = vrot.slane %v6319_v53, 4  ;;  %v8623_v56 = vld [vmem:[#allocation38_spill] sm:$0xff] }
 0x15d   : > { %v1899_v12 = vrot.slane %v6381_v32, 4  ;;  %v6409_v28 = vpack.i.b16 %v2247_v54, %v2246_v60  ;;  %v2588_v60 = vunpack.c.l.b16 %v2544_v50  ;;  %v2121_v17 = vrot.slane %v6341_v30, 4 }
 0x15e   : > { %v2164_v26 = vsel %vm439_vm3, %v8621_v21, %v6249_v10  ;;  %v2192_v10 = vsel %vm439_vm3, %v2191_v1, %v8623_v56  ;;  %v8625_v54 = vpack.i.b16 %v6122_v3, %v6265_v63  ;;  %v1843_v50 = vrot.slane %v6407_v6, 4 }
 0x15f   : > { %8622 = vst [vmem:[#allocation40_spill] sm:$0xff] %v6409_v28  ;;  %v1900_v43 = vsel %vm439_vm3, %v6396_v24, %v1899_v12  ;;  %3190 = vrot.lane.b32.xlu1 %v6253_v39, %s5157_s15  ;;  %v6425_v39 = vperm.slane %v2164_v26, %v5852_v18  ;;  %v2890_v26 = vunpack.c.l.b16 %v2844_v16  ;;  %v2868_v56 = vpack.i.b16 %v6256_v9, %v6376_v38 }
 0x160   : > { %2916 = vrot.lane.b32.xlu0 %v2915_v40, %s8555_s13  ;;  %3218 = vrot.lane.b32.xlu2 %v6292_v27, %s5157_s15  ;;  %v6432_v12 = vunpack.c.l.b16 %v8625_v54  ;;  %v3168_v40 = vpack.i.b16 %v6295_v15, %v6270_v51  ;;  %v3170_v27 = vshrl.u32 %v6295_v15, 16  ;;  %v6445_v49 = vsel %vm439_vm3, 0, %v2177_v46 }
 0x161   : > { %8624 = vst [vmem:[#allocation28_spill] sm:$0xff] %v6425_v39  ;;  %v6427_v5 = vpop.permute.xlu1 %736  ;;  %v6448_v54 = vperm.slane %v1836_v14, %v5395_v8  ;;  %v6451_v13 = vperm.slane %v2192_v10, %v5852_v18  ;;  %v2617_v15 = vpack.c.b16 %v2616_v23, %v2616_v23  ;;  %v2589_v0 = vpack.c.b16 %v2588_v60, %v2588_v60 }
 0x162   : > { %v6438_v1 = vpop.permute.xlu0 %734  ;;  %v6440_v21 = vpop.permute.xlu2 %716  ;;  %8626 = vst [vmem:[#allocation39_spill] sm:$0xff] %v6445_v49  ;;  %v6459_v28 = vsel %vm439_vm3, 0, %v2121_v17  ;;  %v6462_v46 = vsel %vm439_vm3, 0, %v2149_v59  ;;  %v3220_v35 = vunpack.c.l.b16 %v3168_v40  ;;  %v2211_v14 = vshrl.u32 %v6288_v2, 16 }
 0x163   : > { %8627 = vst [vmem:[#allocation38_spill] sm:$0xff] %v6451_v13  ;;  %v1844_v7 = vsel %vm439_vm3, %v6448_v54, %v1843_v50  ;;  %v2891_v60 = vpack.c.b16 %v2890_v26, %v2890_v26  ;;  %v2869_v16 = vshrl.u32 %v6376_v38, 16  ;;  %v2846_v17 = vshrl.u32 %v6337_v25, 16 }
 0x164   : > { %8629 = vst [vmem:[#allocation48_spill] sm:$0xff] %v6459_v28  ;;  %v2918_v59 = vunpack.c.l.b16 %v2868_v56  ;;  %v2545_v40 = vshrl.u32 %v6364_v29, 16  ;;  %v2210_v10 = vshrl.u32 %v6303_v45, 16  ;;  %v2252_v50 = vshrl.u32 %v6445_v49, 16 }
 0x165   : > { %8630 = vst [vmem:[#allocation49_spill] sm:$0xff] %v6462_v46  ;;  %v2253_v26 = vshrl.u32 %v6454_v61, 16  ;;  %v2228_v23 = vshrl.u32 %v6459_v28, 16  ;;  %v2229_v30 = vshrl.u32 %v6462_v46, 16  ;;  %v6484_v56 = vperm.slane %v1844_v7, %v5852_v18 }
 0x166   : > { %v6487_v29 = vperm.slane %v1900_v43, %v5852_v18  ;;  %v8633_v61 = vshrl.u32 %v6256_v9, 16  ;;  %v8634_v46 = vshrl.u32 %v6137_v42, 16  ;;  %v2547_v53 = vpack.i.b16 %v2546_v22, %v2545_v40 }
 0x167   : > { %2618 = vrot.lane.b32.xlu1 %v2617_v15, %s5154_s9  ;;  %8631 = vst [vmem:[#allocation50_spill] sm:$0xff] %v6484_v56  ;;  %v2212_v15 = vpack.i.b16 %v2211_v14, %v2210_v10  ;;  %v6504_v33 = vpack.i.b16 %v2253_v26, %v2252_v50  ;;  %v6506_v43 = vpack.i.b16 %v2229_v30, %v2228_v23  ;;  %v3169_v30 = vshrl.u32 %v6270_v51, 16 }
 0x168   : > { %2590 = vrot.lane.b32.xlu0 %v2589_v0, %s5154_s9  ;;  %2892 = vrot.lane.b32.xlu2 %v2891_v60, %s5156_s14  ;;  %8632 = vst [vmem:[#allocation51_spill] sm:$0xff] %v6487_v29  ;;  %v2234_v0 = vshrl.u32 %v6425_v39, 16  ;;  %v6498_v28 = vpack.i.b16 %v8633_v61, %v2869_v16  ;;  %v6502_v7 = vpack.i.b16 %v2846_v17, %v8634_v46  ;;  %v2235_v61 = vshrl.u32 %v6451_v13, 16 }
 0x169   : > { %v6489_v47 = vpop.permute.xlu1 %1012  ;;  %8635 = vst [vmem:[#allocation52_spill] sm:$0xff] %v6504_v33  ;;  %v6510_v14 = vperm.slane %v6198_v52, %v5852_v18  ;;  %v6514_v10 = vperm.slane %v6346_v19, %v5852_v18  ;;  %v3193_v16 = vpack.c.b16 %v6432_v12, %v6432_v12  ;;  %v3221_v46 = vpack.c.b16 %v3220_v35, %v3220_v35 }
 0x16a   : > { %v6492_v60 = vpop.permute.xlu0 %1010  ;;  %v6494_v49 = vpop.permute.xlu2 %722  ;;  %8636 = vst [vmem:[#allocation53_spill] sm:$0xff] %v6506_v43  ;;  %v3145_v17 = vshrl.u32 %v6265_v63, 16  ;;  %v2255_v23 = vunpack.c.l.b16 %v2212_v15  ;;  %v2236_v50 = vpack.i.b16 %v2235_v61, %v2234_v0  ;;  %v1841_v22 = vrot.slane %v6448_v54, 4  ;;  %v8639_v61 = vld [vmem:[#allocation11_spill] sm:$0xff] }
 0x16b   : > { %8637 = vst [vmem:[#allocation54_spill] sm:$0xff] %v6510_v14  ;;  %v2919_v40 = vpack.c.b16 %v2918_v59, %v2918_v59  ;;  %v2922_v26 = vunpack.c.l.b16 %v6498_v28  ;;  %v6527_v43 = vpack.i.b16 %v3170_v27, %v3169_v30  ;;  %v1813_v35 = vrot.slane %v6306_v31, 4  ;;  %v8642_v30 = vld [vmem:[#allocation17_spill] sm:$0xff] }
 0x16c   : > { %8638 = vst [vmem:[#allocation55_spill] sm:$0xff] %v6514_v10  ;;  %v2592_v51 = vunpack.c.l.b16 %v2547_v53  ;;  %v2894_v63 = vunpack.c.l.b16 %v6502_v7  ;;  %v2119_v12 = vrot.slane %v6303_v45, 4  ;;  %v1869_v15 = vrot.slane %v6184_v48, 4 }
 0x16d   : > { %v1842_v54 = vsel %vm439_vm3, %v1841_v22, %v6407_v6  ;;  %v2569_v28 = vshrl.u32 %v6355_v34, 16  ;;  %v2570_v31 = vshrl.u32 %v6358_v20, 16  ;;  %v1897_v27 = vrot.slane %v6396_v24, 4  ;;  %v8644_v22 = vld [vmem:[#allocation15_spill] sm:$0xff] }
 0x16e   : > { %v1814_v53 = vsel %vm439_vm3, %v1813_v35, %v6314_v36  ;;  %v2256_v0 = vpack.c.b16 %v2255_v23, %v2255_v23  ;;  %v2283_v48 = vunpack.c.l.b16 %v2236_v50  ;;  %v8643_v20 = vrot.slane %v8642_v30, 4  ;;  %v8647_v35 = vld [vmem:[#allocation7_spill] sm:$0xff] }
 0x16f   : > { %3194 = vrot.lane.b32.xlu1 %v3193_v16, %s5158_s16  ;;  %v8640_v16 = vrot.slane %v8639_v61, 4  ;;  %v1929_v50 = vshrl.u32 %v6484_v56, 16  ;;  %v6563_v19 = vperm.slane %v1842_v54, %v5852_v18  ;;  %v2593_v52 = vpack.c.b16 %v2592_v51, %v2592_v51 }
 0x170   : > { %2920 = vrot.lane.b32.xlu0 %v2919_v40, %s5156_s14  ;;  %3222 = vrot.lane.b32.xlu2 %v3221_v46, %s5158_s16  ;;  %v8641_v46 = vld [vmem:[#allocation9_spill] sm:$0xff]  ;;  %v2523_v24 = vsel %vm439_vm3, %v8644_v22, %v8643_v20  ;;  %v8645_v40 = vld [vmem:[#allocation12_spill] sm:$0xff]  ;;  %v8649_v20 = vld [vmem:[#allocation10_spill] sm:$0xff]  ;;  %v2284_v54 = vpack.c.b16 %v2283_v48, %v2283_v48  ;;  %v1870_v48 = vsel %vm439_vm3, %v1869_v15, %v6175_v57  ;;  %v1883_v15 = vrot.slane %v6510_v14, 4 }
 0x171   : > { %v6543_v59 = vpop.permute.xlu1 %1018  ;;  %v2495_v34 = vsel %vm439_vm3, %v8641_v46, %v8640_v16  ;;  %v8646_v36 = vrot.slane %v8645_v40, 4  ;;  %8648 = vst [vmem:[#allocation11_spill] sm:$0xff] %v6563_v19  ;;  %v6569_v16 = vperm.slane %v2523_v24, %v5852_v18  ;;  %v2571_v46 = vpack.i.b16 %v2570_v31, %v2569_v28  ;;  %v8651_v40 = vld [vmem:[#allocation8_spill] sm:$0xff] }
 0x172   : > { %v6545_v7 = vpop.permute.xlu0 %1016  ;;  %v6547_v6 = vpop.permute.xlu2 %728  ;;  %v6566_v61 = vperm.slane %v2495_v34, %v5852_v18  ;;  %v8650_v22 = vrot.slane %v8649_v20, 4  ;;  %v1952_v24 = vshrl.u32 %v6510_v14, 16  ;;  %v6586_v28 = vperm.slane %v1814_v53, %v5852_v18 }
 0x173   : > { %v2439_v23 = vsel %vm439_vm3, %v8647_v35, %v8646_v36  ;;  %v1928_v35 = vshrl.u32 %v6514_v10, 16  ;;  %v1898_v31 = vsel %vm439_vm3, %v1897_v27, %v6381_v32  ;;  %v1953_v20 = vshrl.u32 %v6487_v29, 16 }
 0x174   : > { %v6572_v30 = vperm.slane %v2439_v23, %v5852_v18  ;;  %v2467_v36 = vsel %vm439_vm3, %v8651_v40, %v8650_v22  ;;  %8652 = vst [vmem:[#allocation9_spill] sm:$0xff] %v6586_v28  ;;  %v8654_v22 = vshrl.u32 %v6122_v3, 16  ;;  %v2620_v32 = vunpack.c.l.b16 %v2571_v46 }
 0x175   : > { %v6582_v34 = vperm.slane %v2467_v36, %v5852_v18  ;;  %v6590_v23 = vpack.i.b16 %v1929_v50, %v1928_v35  ;;  %v2147_v36 = vrot.slane %v6288_v2, 4  ;;  %v6605_v27 = vpack.i.b16 %v1953_v20, %v1952_v24 }
 0x176   : > { %v6598_v40 = vpack.i.b16 %v8654_v22, %v3145_v17  ;;  %v1112_v3 = vrot.slane %v6251_v37, 4  ;;  %v6612_v17 = vperm.slane %v1898_v31, %v5852_v18  ;;  %v1106_v50 = vrot.slane %v6373_v11, 4 }
 0x177   : > { %8653 = vst [vmem:[#allocation17_spill] sm:$0xff] %v6590_v23  ;;  %2285 = vrot.lane.b32.xlu1 %v2284_v54, %s5153_s8  ;;  %v2923_v54 = vpack.c.b16 %v2922_v26, %v2922_v26  ;;  %v2895_v24 = vpack.c.b16 %v2894_v63, %v2894_v63  ;;  %v6621_v20 = vsel %vm439_vm3, 0, %v2119_v12  ;;  %v3224_v22 = vunpack.c.l.b16 %v6527_v43 }
 0x178   : > { %2594 = vrot.lane.b32.xlu2 %v2593_v52, %s8555_s13  ;;  %2257 = vrot.lane.b32.xlu0 %v2256_v0, %s5153_s8  ;;  %8655 = vst [vmem:[#allocation15_spill] sm:$0xff] %v6605_v27  ;;  %v1827_v52 = vrot.slane %v6514_v10, 4  ;;  %v6625_v37 = vperm.slane %v1870_v48, %v5852_v18  ;;  %v1113_v11 = vsel %vm439_vm3, %v1112_v3, %v6489_v47  ;;  %v6631_v57 = vsel %vm439_vm3, 0, %v2147_v36 }
 0x179   : > { %8656 = vst [vmem:[#allocation12_spill] sm:$0xff] %v6612_v17  ;;  %v6615_v35 = vpop.permute.xlu1 %1024  ;;  %v2621_v26 = vpack.c.b16 %v2620_v32, %v2620_v32  ;;  %v6637_v63 = vsel %vm439_vm3, 0, %v1883_v15  ;;  %v1911_v43 = vrot.slane %v6487_v29, 4  ;;  %v2175_v12 = vrot.slane %v6425_v39, 4 }
 0x17a   : > { %v6618_v0 = vpop.permute.xlu0 %1022  ;;  %v1005_v46 = vpop.permute.xlu2 %1004  ;;  %8657 = vst [vmem:[#allocation7_spill] sm:$0xff] %v6625_v37  ;;  %v6642_v48 = vsel %vm439_vm3, 0, %v1827_v52  ;;  %v1855_v47 = vrot.slane %v6484_v56, 4  ;;  %v6648_v3 = vperm.slane %v1113_v11, %v5395_v8  ;;  %v2215_v15 = vpack.i.b16 %v6631_v57, %v6621_v20 }
 0x17b   : > { %v1107_v31 = vsel %vm439_vm3, %v1106_v50, %v1005_v46  ;;  %8659 = vst [vmem:[#allocation8_spill] sm:$0xff] %v6637_v63  ;;  %v6654_v50 = vsel %vm439_vm3, 0, %v1911_v43  ;;  %v1934_v43 = vshrl.u32 %v6642_v48, 16  ;;  %v2203_v53 = vrot.slane %v6451_v13, 4 }
 0x17c   : > { %v6634_v51 = vperm.slane %v1107_v31, %v5395_v8  ;;  %8660 = vst [vmem:[#allocation56_spill] sm:$0xff] %v6642_v48  ;;  %v6660_v46 = vsel %vm439_vm3, 0, %v1855_v47  ;;  %v1958_v31 = vshrl.u32 %v6637_v63, 16  ;;  %v1959_v11 = vshrl.u32 %v6654_v50, 16 }
 0x17d   : > { %8661 = vst [vmem:[#allocation57_spill] sm:$0xff] %v6654_v50  ;;  %v1935_v47 = vshrl.u32 %v6660_v46, 16  ;;  %v2800_v63 = vrot.slane %v6376_v38, 4  ;;  %v3196_v33 = vunpack.c.l.b16 %v6598_v40  ;;  %v6687_v48 = vsel %vm439_vm3, 0, %v2175_v12 }
 0x17e   : > { %8658 = vst [vmem:[#allocation10_spill] sm:$0xff] %v6634_v51  ;;  %v1120_v32 = vrot.slane %v6634_v51, 4  ;;  %v6679_v50 = vpack.i.b16 %v1959_v11, %v1958_v31  ;;  %v2744_v2 = vrot.slane %v6137_v42, 4  ;;  %v3225_v38 = vpack.c.b16 %v3224_v22, %v3224_v22 }
 0x17f   : > { %2896 = vrot.lane.b32.xlu1 %v2895_v24, %s5157_s15  ;;  %8662 = vst [vmem:[#allocation58_spill] sm:$0xff] %v6660_v46  ;;  %v2259_v24 = vunpack.c.l.b16 %v2215_v15  ;;  %v6684_v45 = vpack.i.b16 %v1935_v47, %v1934_v43  ;;  %v2828_v46 = vrot.slane %v6256_v9, 4  ;;  %v6695_v31 = vsel %vm439_vm3, 0, %v2800_v63 }
 0x180   : > { %v6666_v36 = vsel %vm439_vm3, %v6648_v3, %v1120_v32  ;;  %2924 = vrot.lane.b32.xlu2 %v2923_v54, %s5157_s15  ;;  %2622 = vrot.lane.b32.xlu0 %v2621_v26, %s8555_s13  ;;  %v2772_v32 = vrot.slane %v6337_v25, 4  ;;  %8663 = vst [vmem:[#allocation59_spill] sm:$0xff] %v6679_v50  ;;  %v6692_v25 = vsel %vm439_vm3, 0, %v2203_v53  ;;  %v3197_v40 = vpack.c.b16 %v3196_v33, %v3196_v33 }
 0x181   : > { %v6674_v52 = vpop.permute.xlu1 %720  ;;  %8664 = vst [vmem:[#allocation60_spill] sm:$0xff] %v6684_v45  ;;  %v2260_v15 = vpack.c.b16 %v2259_v24, %v2259_v24  ;;  %v2239_v43 = vpack.i.b16 %v6692_v25, %v6687_v48  ;;  %v8665_v42 = vpack.i.b16 %v6582_v34, %v6572_v30  ;;  %v6705_v53 = vsel %vm439_vm3, 0, %v2828_v46 }
 0x182   : > { %v6681_v54 = vpop.permute.xlu0 %718  ;;  %v709_v26 = vpop.permute.xlu2 %708  ;;  %v2773_v11 = vsel %vm439_vm3, 0, %v2772_v32  ;;  %v2745_v22 = vsel %vm439_vm3, 0, %v2744_v2  ;;  %v8666_v33 = vpack.i.b16 %v6569_v16, %v6566_v61  ;;  %v2874_v12 = vpack.i.b16 %v6705_v53, %v6695_v31 }
 0x183   : > { %v2596_v9 = vunpack.c.l.b16 %v8665_v42  ;;  %v2850_v24 = vpack.i.b16 %v2773_v11, %v2745_v22  ;;  %v2575_v32 = vshrl.u32 %v6566_v61, 16  ;;  %v2576_v46 = vshrl.u32 %v6569_v16, 16 }
 0x184   : > { %v2624_v63 = vunpack.c.l.b16 %v8666_v33  ;;  %v2551_v2 = vshrl.u32 %v6572_v30, 16  ;;  %v2287_v50 = vunpack.c.l.b16 %v2239_v43  ;;  %v1917_v33 = vshrl.u32 %v6563_v19, 16 }
 0x185   : > { %v2852_v45 = vshrl.u32 %v2773_v11, 16  ;;  %v2597_v39 = vpack.c.b16 %v2596_v9, %v2596_v9  ;;  %v6723_v13 = vpack.i.b16 %v2576_v46, %v2575_v32  ;;  %v1916_v29 = vshrl.u32 %v6586_v28, 16 }
 0x186   : > { %v2625_v14 = vpack.c.b16 %v2624_v63, %v2624_v63  ;;  %v2851_v10 = vshrl.u32 %v2745_v22, 16  ;;  %v2926_v51 = vunpack.c.l.b16 %v2874_v12  ;;  %v2875_v43 = vshrl.u32 %v6695_v31, 16 }
 0x187   : > { %3226 = vrot.lane.b32.xlu1 %v3225_v38, %s5159_s17  ;;  %v2552_v38 = vshrl.u32 %v6582_v34, 16  ;;  %v2288_v9 = vpack.c.b16 %v2287_v50, %v2287_v50  ;;  %v1918_v32 = vpack.i.b16 %v1917_v33, %v1916_v29  ;;  %v2876_v46 = vshrl.u32 %v6705_v53, 16 }
 0x188   : > { %3198 = vrot.lane.b32.xlu0 %v3197_v40, %s5159_s17  ;;  %2261 = vrot.lane.b32.xlu2 %v2260_v15, %s5154_s9  ;;  %v762_v40 = vrot.slane %v6216_v58, 4  ;;  %v1056_v63 = vrot.slane %v6258_v4, 4  ;;  %v2898_v22 = vunpack.c.l.b16 %v2850_v24  ;;  %v2240_v4 = vshrl.u32 %v6687_v48, 16 }
 0x189   : > { %v6715_v47 = vpop.permute.xlu1 %726  ;;  %v6725_v23 = vpack.i.b16 %v2552_v38, %v2551_v2  ;;  %v2217_v2 = vshrl.u32 %v6631_v57, 16  ;;  %v2216_v57 = vshrl.u32 %v6621_v20, 16  ;;  %v1940_v12 = vshrl.u32 %v6625_v37, 16 }
 0x18a   : > { %v725_v15 = vpop.permute.xlu0 %724  ;;  %v715_v42 = vpop.permute.xlu2 %714  ;;  %v763_v56 = vsel %vm439_vm3, %v762_v40, %v6440_v21  ;;  %v6739_v21 = vpack.i.b16 %v2852_v45, %v2851_v10  ;;  %v2241_v45 = vshrl.u32 %v6692_v25, 16  ;;  %v1057_v10 = vsel %vm439_vm3, %v1056_v63, %v6492_v60 }
 0x18b   : > { %v756_v27 = vrot.slane %v725_v15, 4  ;;  %v2218_v25 = vpack.i.b16 %v2217_v2, %v2216_v57  ;;  %v2927_v24 = vpack.c.b16 %v2926_v51, %v2926_v51  ;;  %v6768_v40 = vpack.i.b16 %v2876_v46, %v2875_v43 }
 0x18c   : > { %v2242_v38 = vpack.i.b16 %v2241_v45, %v2240_v4  ;;  %v6771_v15 = vperm.slane %v1057_v10, %v5395_v8  ;;  %v2899_v2 = vpack.c.b16 %v2898_v22, %v2898_v22  ;;  %v1140_v43 = vrot.slane %v6308_v44, 4 }
 0x18d   : > { %v757_v58 = vsel %vm439_vm3, %v756_v27, %v709_v26  ;;  %v6742_v27 = vperm.slane %v763_v56, %v5395_v8  ;;  %v1050_v26 = vrot.slane %v6543_v59, 4  ;;  %v1941_v56 = vshrl.u32 %v6612_v17, 16 }
 0x18e   : > { %v6733_v11 = vperm.slane %v757_v58, %v5395_v8  ;;  %v1134_v4 = vrot.slane %v6615_v35, 4  ;;  %v2450_v44 = vrot.slane %v6572_v30, 4  ;;  %v2291_v57 = vunpack.c.l.b16 %v2242_v38 }
 0x18f   : > { %2598 = vrot.lane.b32.xlu1 %v2597_v39, %s5156_s14  ;;  %v846_v39 = vrot.slane %v6260_v62, 4  ;;  %v1961_v62 = vunpack.c.l.b16 %v1918_v32  ;;  %v1078_v10 = vrot.slane %v6618_v0, 4 }
 0x190   : > { %v770_v31 = vrot.slane %v6733_v11, 4  ;;  %2626 = vrot.lane.b32.xlu2 %v2625_v14, %s5156_s14  ;;  %2289 = vrot.lane.b32.xlu0 %v2288_v9, %s5154_s9  ;;  %v1942_v9 = vpack.i.b16 %v1941_v56, %v1940_v12  ;;  %v2478_v56 = vrot.slane %v6582_v34, 4  ;;  %v6806_v30 = vsel %vm439_vm3, 0, %v2450_v44 }
 0x191   : > { %v1003_v29 = vpop.permute.xlu1 %1002  ;;  %v847_v60 = vsel %vm439_vm3, %v846_v39, %v6494_v49  ;;  %v1962_v63 = vpack.c.b16 %v1961_v62, %v1961_v62  ;;  %v8668_v49 = vld [vmem:[#allocation41_spill] sm:$0xff]  ;;  %v1141_v39 = vsel %vm439_vm3, %v1140_v43, %v6545_v7  ;;  %v1881_v34 = vrot.slane %v6625_v37, 4 }
 0x192   : > { %v6757_v59 = vsel %vm439_vm3, %v6742_v27, %v770_v31  ;;  %v731_v14 = vpop.permute.xlu0 %730  ;;  %v1051_v50 = vsel %vm439_vm3, %v1050_v26, %v1003_v29  ;;  %v6760_v48 = vpop.permute.xlu2 %3178  ;;  %v2902_v26 = vunpack.c.l.b16 %v6739_v21  ;;  %v1084_v51 = vrot.slane %v8668_v49, 4  ;;  %v8679_v37 = vld [vmem:[#allocation45_spill] sm:$0xff] }
 0x193   : > { %8667 = vst [vmem:[#allocation61_spill] sm:$0xff] %v6760_v48  ;;  %v840_v53 = vrot.slane %v731_v14, 4  ;;  %v6763_v20 = vperm.slane %v1051_v50, %v5395_v8  ;;  %v6787_v31 = vperm.slane %v847_v60, %v5395_v8  ;;  %v1989_v45 = vunpack.c.l.b16 %v1942_v9 }
 0x194   : > { %v1085_v7 = vsel %vm439_vm3, %v1084_v51, %v6311_v55  ;;  %v6815_v0 = vsel %vm439_vm3, 0, %v2478_v56  ;;  %v1853_v60 = vrot.slane %v6563_v19, 4  ;;  %v6822_v38 = vperm.slane %v1141_v39, %v5395_v8 }
 0x195   : > { %v841_v33 = vsel %vm439_vm3, %v840_v53, %v715_v42  ;;  %v1064_v58 = vrot.slane %v6763_v20, 4  ;;  %v2263_v42 = vunpack.c.l.b16 %v2218_v25  ;;  %v818_v9 = vrot.slane %v6438_v1, 4 }
 0x196   : > { %v6776_v32 = vperm.slane %v841_v33, %v5395_v8  ;;  %v2292_v33 = vpack.c.b16 %v2291_v57, %v2291_v57  ;;  %v2628_v49 = vunpack.c.l.b16 %v6723_v13  ;;  %v2600_v13 = vunpack.c.l.b16 %v6725_v23 }
 0x197   : > { %v6783_v46 = vsel %vm439_vm3, %v6771_v15, %v1064_v58  ;;  %2928 = vrot.lane.b32.xlu1 %v2927_v24, %s5158_s16  ;;  %v2264_v12 = vpack.c.b16 %v2263_v42, %v2263_v42  ;;  %v2556_v24 = vpack.i.b16 %v6815_v0, %v6806_v30  ;;  %v1909_v58 = vrot.slane %v6612_v17, 4  ;;  %v8680_v17 = vld [vmem:[#allocation46_spill] sm:$0xff] }
 0x198   : > { %v854_v22 = vrot.slane %v6776_v32, 4  ;;  %1963 = vrot.lane.b32.xlu2 %v1962_v63, %s5153_s8  ;;  %2900 = vrot.lane.b32.xlu0 %v2899_v2, %s5158_s16  ;;  %v790_v63 = vrot.slane %v6427_v5, 4  ;;  %v1990_v2 = vpack.c.b16 %v1989_v45, %v1989_v45  ;;  %v2506_v42 = vrot.slane %v6566_v61, 4 }
 0x199   : > { %v1009_v29 = vpop.permute.xlu1 %1008  ;;  %v1825_v5 = vrot.slane %v6586_v28, 4  ;;  %v6843_v1 = vsel %vm439_vm3, 0, %v1853_v60  ;;  %v812_v44 = vrot.slane %v6715_v47, 4  ;;  %v6847_v61 = vsel %vm439_vm3, 0, %v1909_v58 }
 0x19a   : > { %v6800_v35 = vsel %vm439_vm3, %v6787_v31, %v854_v22  ;;  %v1007_v14 = vpop.permute.xlu0 %1006  ;;  %v1135_v50 = vsel %vm439_vm3, %v1134_v4, %v1009_v29  ;;  %v6803_v62 = vpop.permute.xlu2 %2908  ;;  %v2534_v4 = vrot.slane %v6569_v16, 4  ;;  %v784_v22 = vrot.slane %v6547_v6, 4 }
 0x19b   : > { %v6811_v53 = vperm.slane %v1135_v50, %v5395_v8  ;;  %v1079_v25 = vsel %vm439_vm3, %v1078_v10, %v1007_v14  ;;  %v6850_v16 = vsel %vm439_vm3, 0, %v2506_v42  ;;  %v819_v23 = vsel %vm439_vm3, %v818_v9, %v6681_v54 }
 0x19c   : > { %v6830_v51 = vperm.slane %v1079_v25, %v5395_v8  ;;  %v6853_v6 = vsel %vm439_vm3, 0, %v2534_v4  ;;  %v791_v29 = vsel %vm439_vm3, %v790_v63, %v6674_v52  ;;  %v2629_v25 = vpack.c.b16 %v2628_v49, %v2628_v49 }
 0x19d   : > { %v1148_v55 = vrot.slane %v6811_v53, 4  ;;  %v2601_v52 = vpack.c.b16 %v2600_v13, %v2600_v13  ;;  %v6876_v60 = vsel %vm439_vm3, 0, %v1881_v34  ;;  %v6888_v63 = vperm.slane %v819_v23, %v5395_v8 }
 0x19e   : > { %v1092_v10 = vrot.slane %v6830_v51, 4  ;;  %v2903_v34 = vpack.c.b16 %v2902_v26, %v2902_v26  ;;  %v1947_v56 = vshrl.u32 %v6847_v61, 16  ;;  %v1946_v28 = vshrl.u32 %v6876_v60, 16 }
 0x19f   : > { %v1149_v43 = vsel %vm439_vm3, %v6822_v38, %v1148_v55  ;;  %2265 = vrot.lane.b32.xlu1 %v2264_v12, %s8555_s13  ;;  %v6873_v12 = vsel %vm439_vm3, 0, %v1825_v5  ;;  %v6879_v55 = vperm.slane %v1085_v7, %v5395_v8  ;;  %v1945_v7 = vpack.i.b16 %v6847_v61, %v6876_v60  ;;  %v8683_v60 = vld [vmem:[#allocation29_spill] sm:$0xff] }
 0x1a0   : > { %2293 = vrot.lane.b32.xlu2 %v2292_v33, %s8555_s13  ;;  %1991 = vrot.lane.b32.xlu0 %v1990_v2, %s5153_s8  ;;  %v6882_v33 = vperm.slane %v791_v29, %v5395_v8  ;;  %v1921_v9 = vpack.i.b16 %v6843_v1, %v6873_v12  ;;  %v6910_v21 = vperm.slane %v1149_v43, %v5852_v18  ;;  %v8671_v29 = vld [vmem:[#allocation19_spill] sm:$0xff]  ;;  %v8673_v43 = vld [vmem:[#allocation21_spill] sm:$0xff] }
 0x1a1   : > { %v713_v39 = vpop.permute.xlu1 %712  ;;  %v1093_v49 = vsel %vm439_vm3, %v6879_v55, %v1092_v10  ;;  %v1993_v23 = vunpack.c.l.b16 %v1945_v7  ;;  %v8675_v10 = vld [vmem:[#allocation22_spill] sm:$0xff]  ;;  %v1923_v7 = vshrl.u32 %v6843_v1, 16  ;;  %v1948_v61 = vpack.i.b16 %v1947_v56, %v1946_v28 }
 0x1a2   : > { %v711_v57 = vpop.permute.xlu0 %710  ;;  %v785_v45 = vsel %vm439_vm3, %v784_v22, %v713_v39  ;;  %v6860_v47 = vpop.permute.xlu2 %2884  ;;  %v1965_v22 = vunpack.c.l.b16 %v1921_v9  ;;  %v6915_v13 = vperm.slane %v1093_v49, %v5852_v18  ;;  %v2930_v39 = vunpack.c.l.b16 %v6768_v40 }
 0x1a3   : > { %v813_v14 = vsel %vm439_vm3, %v812_v44, %v711_v57  ;;  %v6867_v50 = vperm.slane %v785_v45, %v5395_v8  ;;  %v6924_v57 = vperm.slane %v8671_v29, %v5852_v18  ;;  %v6928_v45 = vperm.slane %v8673_v43, %v5852_v18 }
 0x1a4   : > { %v6870_v54 = vperm.slane %v813_v14, %v5395_v8  ;;  %v6932_v14 = vperm.slane %v8675_v10, %v5852_v18  ;;  %v2557_v9 = vshrl.u32 %v6806_v30, 16  ;;  %v2931_v49 = vpack.c.b16 %v2930_v39, %v2930_v39 }
 0x1a5   : > { %v798_v58 = vrot.slane %v6867_v50, 4  ;;  %8672 = vst [vmem:[#allocation19_spill] sm:$0xff] %v6924_v57  ;;  %v1994_v29 = vpack.c.b16 %v1993_v23, %v1993_v23  ;;  %v1622_v10 = vshrl.u32 %v6924_v57, 16  ;;  %v2581_v23 = vshrl.u32 %v6850_v16, 16 }
 0x1a6   : > { %v826_v2 = vrot.slane %v6870_v54, 4  ;;  %8674 = vst [vmem:[#allocation21_spill] sm:$0xff] %v6928_v45  ;;  %v1646_v43 = vshrl.u32 %v6932_v14, 16  ;;  %v8681_v8 = vpack.i.b16 %v8679_v37, %v8680_v17  ;;  %v1997_v56 = vunpack.c.l.b16 %v1948_v61 }
 0x1a7   : > { %v6900_v42 = vsel %vm439_vm3, %v6882_v33, %v798_v58  ;;  %2630 = vrot.lane.b32.xlu1 %v2629_v25, %s5157_s15  ;;  %v6936_v25 = vperm.slane %v6666_v36, %v5852_v18  ;;  %v6944_v58 = vperm.slane %v6783_v46, %v5852_v18  ;;  %v2604_v46 = vunpack.c.l.b16 %v2556_v24 }
 0x1a8   : > { %v6905_v4 = vsel %vm439_vm3, %v6888_v63, %v826_v2  ;;  %2904 = vrot.lane.b32.xlu2 %v2903_v34, %s5159_s17  ;;  %2602 = vrot.lane.b32.xlu0 %v2601_v52, %s5157_s15  ;;  %v8676_v52 = vld [vmem:[#allocation25_spill] sm:$0xff]  ;;  %v2558_v2 = vshrl.u32 %v6815_v0, 16  ;;  %v1966_v34 = vpack.c.b16 %v1965_v22, %v1965_v22  ;;  %v1623_v22 = vshrl.u32 %v6928_v45, 16  ;;  %v8677_v0 = vld [vmem:[#allocation44_spill] sm:$0xff] }
 0x1a9   : > { %v6912_v26 = vpop.permute.xlu1 %3202  ;;  %v6940_v40 = vperm.slane %v8676_v52, %v5852_v18  ;;  %v2582_v52 = vshrl.u32 %v6853_v6, 16  ;;  %v8678_v24 = vpack.i.b16 %v6332_v41, %v8677_v0  ;;  %v2267_v48 = vunpack.c.l.b16 %v8681_v8 }
 0x1aa   : > { %v6917_v5 = vpop.permute.xlu0 %3174  ;;  %v6919_v44 = vpop.permute.xlu2 %3214  ;;  %v2605_v41 = vpack.c.b16 %v2604_v46, %v2604_v46  ;;  %v8682_v8 = vpack.i.b16 %v6853_v6, %v6850_v16  ;;  %v2271_v46 = vunpack.c.l.b16 %v8683_v60  ;;  %v8685_v16 = vld [vmem:[#allocation37_spill] sm:$0xff]  ;;  %v1177_v61 = vshrl.u32 %v6944_v58, 16 }
 0x1ab   : > { %8669 = vst [vmem:[#allocation41_spill] sm:$0xff] %v6917_v5  ;;  %v1647_v39 = vshrl.u32 %v6940_v40, 16  ;;  %v2295_v36 = vunpack.c.l.b16 %v8678_v24  ;;  %v2268_v1 = vpack.c.b16 %v2267_v48, %v2267_v48 }
 0x1ac   : > { %8670 = vst [vmem:[#allocation62_spill] sm:$0xff] %v6919_v44  ;;  %v6976_v44 = vpack.i.b16 %v2582_v52, %v2581_v23  ;;  %v2632_v17 = vunpack.c.l.b16 %v8682_v8 }
 0x1ad   : > { %v1648_v0 = vpack.i.b16 %v1647_v39, %v1646_v43  ;;  %v2296_v24 = vpack.c.b16 %v2295_v36, %v2295_v36  ;;  %v1118_v43 = vrot.slane %v6648_v3, 4  ;;  %v1146_v3 = vrot.slane %v6822_v38, 4 }
 0x1ae   : > { %v2633_v23 = vpack.c.b16 %v2632_v17, %v2632_v17  ;;  %v796_v17 = vrot.slane %v6882_v33, 4  ;;  %v7016_v38 = vperm.slane %v6900_v42, %v5852_v18 }
 0x1af   : > { %1967 = vrot.lane.b32.xlu1 %v1966_v34, %s5154_s9  ;;  %v6964_v34 = vpack.i.b16 %v2558_v2, %v2557_v9  ;;  %v1624_v9 = vpack.i.b16 %v1623_v22, %v1622_v10  ;;  %v1922_v2 = vshrl.u32 %v6873_v12, 16  ;;  %v1695_v37 = vunpack.c.l.b16 %v1648_v0  ;;  %v8684_v22 = vld [vmem:[#allocation36_spill] sm:$0xff]  ;;  %v8688_v0 = vld [vmem:[#allocation10_spill] sm:$0xff] }
 0x1b0   : > { %2932 = vrot.lane.b32.xlu0 %v2931_v49, %s5159_s17  ;;  %1995 = vrot.lane.b32.xlu2 %v1994_v29, %s5154_s9  ;;  %v8686_v6 = vpack.i.b16 %v8684_v22, %v8685_v16  ;;  %v1587_v16 = vrot.slane %v6932_v14, 4 }
 0x1b1   : > { %v2881_v30 = vpop.permute.xlu1 %2880  ;;  %v1924_v19 = vpack.i.b16 %v1923_v7, %v1922_v2  ;;  %v1667_v5 = vunpack.c.l.b16 %v1624_v9  ;;  %v1090_v7 = vrot.slane %v6879_v55, 4  ;;  %v1696_v52 = vpack.c.b16 %v1695_v37, %v1695_v37  ;;  %v8687_v9 = vld [vmem:[#allocation40_spill] sm:$0xff] }
 0x1b2   : > { %v6971_v49 = vpop.permute.xlu0 %3206  ;;  %v2889_v29 = vpop.permute.xlu2 %2888  ;;  %v2936_v39 = vsel %vm655_vm7, %v8686_v6, %v2881_v30  ;;  %v2299_v2 = vunpack.c.l.b16 %v8687_v9  ;;  %v1132_v55 = vrot.slane %v6936_v25, 4  ;;  %v1147_v37 = vsel %vm439_vm3, %v1146_v3, %v6811_v53 }
 0x1b3   : > { %v1969_v28 = vunpack.c.l.b16 %v1924_v19  ;;  %v1668_v10 = vpack.c.b16 %v1667_v5, %v1667_v5  ;;  %v1119_v19 = vsel %vm439_vm3, %v1118_v43, %v8688_v0  ;;  %v2938_v30 = vsel %vm659_vm8, %v2936_v39, %v6860_v47 }
 0x1b4   : > { %v7011_v8 = vperm.slane %v1119_v19, %v5852_v18  ;;  %v1201_v47 = vshrl.u32 %v6936_v25, 16  ;;  %v7029_v33 = vsel %vm439_vm3, 0, %v1132_v55  ;;  %v1091_v42 = vsel %vm439_vm3, %v1090_v7, %v6830_v51 }
 0x1b5   : > { %v1970_v5 = vpack.c.b16 %v1969_v28, %v1969_v28  ;;  %v1202_v28 = vshrl.u32 %v6910_v21, 16  ;;  %8690 = vst [vmem:[#allocation25_spill] sm:$0xff] %v7029_v33  ;;  %v7038_v53 = vperm.slane %v6757_v59, %v5852_v18  ;;  %v1615_v6 = vrot.slane %v6940_v40, 4 }
 0x1b6   : > { %8689 = vst [vmem:[#allocation22_spill] sm:$0xff] %v7011_v8  ;;  %v1531_v39 = vrot.slane %v6924_v57, 4  ;;  %v1559_v51 = vrot.slane %v6928_v45, 4  ;;  %v1076_v0 = vrot.slane %v6944_v58, 4  ;;  %v1104_v19 = vrot.slane %v6915_v13, 4 }
 0x1b7   : > { %2297 = vrot.lane.b32.xlu1 %v2296_v24, %s5156_s14  ;;  %v2272_v24 = vpack.c.b16 %v2271_v46, %v2271_v46  ;;  %v7060_v55 = vperm.slane %v1091_v42, %v5852_v18  ;;  %v7064_v3 = vperm.slane %v6905_v4, %v5852_v18  ;;  %v852_v42 = vrot.slane %v6787_v31, 4 }
 0x1b8   : > { %2269 = vrot.lane.b32.xlu0 %v2268_v1, %s5156_s14  ;;  %2606 = vrot.lane.b32.xlu2 %v2605_v41, %s5158_s16  ;;  %v1062_v41 = vrot.slane %v6771_v15, 4  ;;  %v1998_v1 = vpack.c.b16 %v1997_v56, %v1997_v56  ;;  %v1178_v15 = vshrl.u32 %v6915_v13, 16  ;;  %v2940_v56 = vsel %vm662_vm9, %v2938_v30, %v2889_v29 }
 0x1b9   : > { %v6986_v12 = vpop.permute.xlu1 %3210  ;;  %v7047_v29 = vpack.i.b16 %v1202_v28, %v1201_v47  ;;  %8692 = vst [vmem:[#allocation45_spill] sm:$0xff] %v7060_v55  ;;  %v2608_v30 = vunpack.c.l.b16 %v6964_v34  ;;  %v7083_v4 = vsel %vm439_vm3, 0, %v1531_v39  ;;  %v7086_v34 = vsel %vm439_vm3, 0, %v1559_v51 }
 0x1ba   : > { %v6989_v36 = vpop.permute.xlu0 %3182  ;;  %v6991_v48 = vpop.permute.xlu2 %3218  ;;  %v7025_v46 = vpack.i.b16 %v1178_v15, %v1177_v61  ;;  %v1063_v59 = vsel %vm439_vm3, %v1062_v41, %v6763_v20  ;;  %8693 = vst [vmem:[#allocation46_spill] sm:$0xff] %v7064_v3  ;;  %v2636_v20 = vunpack.c.l.b16 %v6976_v44  ;;  %v7073_v41 = vsel %vm439_vm3, 0, %v1587_v16 }
 0x1bb   : > { %v7076_v15 = vsel %vm439_vm3, 0, %v1615_v6  ;;  %v7089_v44 = vsel %vm439_vm3, 0, %v1076_v0  ;;  %v7096_v28 = vperm.slane %v1063_v59, %v5852_v18  ;;  %v7110_v16 = vperm.slane %v6800_v35, %v5852_v18 }
 0x1bc   : > { %8695 = vst [vmem:[#allocation36_spill] sm:$0xff] %v7089_v44  ;;  %v884_v6 = vshrl.u32 %v7016_v38, 16  ;;  %v2609_v39 = vpack.c.b16 %v2608_v30, %v2608_v30  ;;  %v1651_v51 = vpack.i.b16 %v7076_v15, %v7073_v41  ;;  %v2637_v59 = vpack.c.b16 %v2636_v20, %v2636_v20 }
 0x1bd   : > { %8697 = vst [vmem:[#allocation40_spill] sm:$0xff] %v7096_v28  ;;  %v2300_v20 = vpack.c.b16 %v2299_v2, %v2299_v2  ;;  %v1183_v35 = vshrl.u32 %v7089_v44, 16  ;;  %v782_v9 = vrot.slane %v7038_v53, 4  ;;  %v866_v2 = vrot.slane %v7110_v16, 4 }
 0x1be   : > { %8698 = vst [vmem:[#allocation10_spill] sm:$0xff] %v7110_v16  ;;  %v908_v7 = vshrl.u32 %v7110_v16, 16 }
 0x1bf   : > { %1669 = vrot.lane.b32.xlu1 %v1668_v10, %s5153_s8  ;;  %v7183_v31 = vsel %vm439_vm3, 0, %v866_v2  ;;  %v8714_v2 = vld [vmem:[#allocation20_spill] sm:$0xff] }
 0x1c0   : > { %2634 = vrot.lane.b32.xlu0 %v2633_v23, %s5158_s16  ;;  %1697 = vrot.lane.b32.xlu2 %v1696_v52, %s5153_s8  ;;  %v1160_v23 = vrot.slane %v6910_v21, 4  ;;  %v7055_v52 = vperm.slane %v1147_v37, %v5852_v18  ;;  %v768_v37 = vrot.slane %v6742_v27, 4  ;;  %v883_v27 = vshrl.u32 %v7038_v53, 16  ;;  %8711 = vst [vmem:[#allocation70_spill] sm:$0xff] %v7183_v31 }
 0x1c1   : > { %v7023_v60 = vpop.permute.xlu1 %3186 }
 0x1c2   : > { %v7034_v43 = vpop.permute.xlu0 %2912  ;;  %v2893_v10 = vpop.permute.xlu2 %2892  ;;  %8691 = vst [vmem:[#allocation44_spill] sm:$0xff] %v7055_v52  ;;  %v7068_v61 = vsel %vm439_vm3, 0, %v1160_v23  ;;  %v1627_v23 = vpack.i.b16 %v7086_v34, %v7083_v4  ;;  %v7124_v0 = vpack.i.b16 %v884_v6, %v883_v27  ;;  %v1699_v6 = vunpack.c.l.b16 %v1651_v51  ;;  %v8704_v51 = vld [vmem:[#allocation55_spill] sm:$0xff] }
 0x1c3   : > { %v7041_v22 = vsel %vm665_vm10, %v2940_v56, %v2893_v10  ;;  %8694 = vst [vmem:[#allocation29_spill] sm:$0xff] %v7068_v61  ;;  %v1208_v30 = vshrl.u32 %v7068_v61, 16  ;;  %v1190_v16 = vshrl.u32 %v7055_v52, 16  ;;  %v8724_v61 = vld [vmem:[#allocation39_spill] sm:$0xff] }
 0x1c4   : > { %8699 = vst [vmem:[#allocation63_spill] sm:$0xff] %v7124_v0  ;;  %v8720_v0 = vld [vmem:[#allocation48_spill] sm:$0xff] }
 0x1c7   : > { %1999 = vrot.lane.b32.xlu1 %v1998_v1, %s8555_s13  ;;  %v7092_v1 = vsel %vm439_vm3, 0, %v1104_v19 }
 0x1c8   : > { %1971 = vrot.lane.b32.xlu0 %v1970_v5, %s8555_s13  ;;  %2273 = vrot.lane.b32.xlu2 %v2272_v24, %s5157_s15  ;;  %8696 = vst [vmem:[#allocation37_spill] sm:$0xff] %v7092_v1  ;;  %v797_v24 = vsel %vm439_vm3, %v796_v17, %v6867_v50  ;;  %v769_v17 = vsel %vm439_vm3, %v768_v37, %v6733_v11  ;;  %v1207_v11 = vshrl.u32 %v7029_v33, 16  ;;  %v824_v37 = vrot.slane %v6888_v63, 4 }
 0x1c9   : > { %v7100_v5 = vpop.permute.xlu1 %2614  ;;  %v7129_v50 = vperm.slane %v797_v24, %v5852_v18  ;;  %v7135_v47 = vperm.slane %v769_v17, %v5852_v18  ;;  %v1184_v27 = vshrl.u32 %v7092_v1, 16  ;;  %v1671_v24 = vunpack.c.l.b16 %v1627_v23  ;;  %v8729_v1 = vld [vmem:[#allocation24_spill] sm:$0xff] }
 0x1ca   : > { %v7104_v56 = vpop.permute.xlu0 %2586  ;;  %v7106_v10 = vpop.permute.xlu2 %3222  ;;  %v7142_v19 = vpack.i.b16 %v1208_v30, %v1207_v11  ;;  %v825_v63 = vsel %vm439_vm3, %v824_v37, %v6870_v54  ;;  %v853_v54 = vsel %vm439_vm3, %v852_v42, %v6776_v32  ;;  %v7177_v32 = vsel %vm439_vm3, 0, %v782_v9 }
 0x1cb   : > { %8700 = vst [vmem:[#allocation64_spill] sm:$0xff] %v7129_v50  ;;  %v7157_v30 = vpack.i.b16 %v1184_v27, %v1183_v35  ;;  %v1700_v35 = vpack.c.b16 %v1699_v6, %v1699_v6  ;;  %v1672_v27 = vpack.c.b16 %v1671_v24, %v1671_v24 }
 0x1cc   : > { %8701 = vst [vmem:[#allocation65_spill] sm:$0xff] %v7135_v47 }
 0x1cd   : > { %8702 = vst [vmem:[#allocation66_spill] sm:$0xff] %v7142_v19  ;;  %v810_v19 = vrot.slane %v7016_v38, 4 }
 0x1ce   : > { %8709 = vst [vmem:[#allocation68_spill] sm:$0xff] %v7177_v32 }
 0x1cf   : > { %2610 = vrot.lane.b32.xlu1 %v2609_v39, %s5159_s17  ;;  %v8703_v39 = vld [vmem:[#allocation50_spill] sm:$0xff]  ;;  %v7180_v42 = vsel %vm439_vm3, 0, %v810_v19  ;;  %v914_v19 = vshrl.u32 %v7183_v31, 16  ;;  %v8717_v31 = vld [vmem:[#allocation16_spill] sm:$0xff] }
 0x1d0   : > { %2301 = vrot.lane.b32.xlu0 %v2300_v20, %s5157_s15  ;;  %2638 = vrot.lane.b32.xlu2 %v2637_v59, %s5159_s17  ;;  %v8705_v23 = vpack.i.b16 %v8703_v39, %v8704_v51  ;;  %8706 = vst [vmem:[#allocation50_spill] sm:$0xff] %v7157_v30  ;;  %v907_v20 = vshrl.u32 %v7064_v3, 16  ;;  %v7171_v39 = vperm.slane %v825_v63, %v5852_v18  ;;  %v838_v51 = vrot.slane %v7064_v3, 4 }
 0x1d1   : > { %v7152_v17 = vpop.permute.xlu1 %3190  ;;  %8710 = vst [vmem:[#allocation69_spill] sm:$0xff] %v7180_v42  ;;  %v7186_v30 = vperm.slane %v853_v54, %v5852_v18  ;;  %v889_v54 = vshrl.u32 %v7177_v32, 16  ;;  %v890_v6 = vshrl.u32 %v7180_v42, 16  ;;  %v8718_v32 = vld [vmem:[#allocation13_spill] sm:$0xff] }
 0x1d2   : > { %v1973_v11 = vunpack.c.l.b16 %v8705_v23  ;;  %v7163_v37 = vpop.permute.xlu0 %2916  ;;  %v7165_v59 = vpop.permute.xlu2 %2594  ;;  %8707 = vst [vmem:[#allocation55_spill] sm:$0xff] %v7171_v39  ;;  %v7174_v23 = vpack.i.b16 %v908_v7, %v907_v20  ;;  %v7191_v24 = vsel %vm439_vm3, 0, %v838_v51  ;;  %v7199_v20 = vperm.slane %v8714_v2, %v5852_v18  ;;  %v8715_v51 = vld [vmem:[#allocation23_spill] sm:$0xff] }
 0x1d3   : > { %8712 = vst [vmem:[#allocation71_spill] sm:$0xff] %v7186_v30  ;;  %v913_v9 = vshrl.u32 %v7191_v24, 16  ;;  %v7208_v63 = vperm.slane %v8715_v51, %v5852_v18  ;;  %v1628_v2 = vshrl.u32 %v7083_v4, 16  ;;  %v2538_v42 = vpack.i.b16 %v8718_v32, %v8717_v31  ;;  %v8723_v4 = vld [vmem:[#allocation47_spill] sm:$0xff] }
 0x1d4   : > { %8708 = vst [vmem:[#allocation67_spill] sm:$0xff] %v7174_v23  ;;  %v1974_v7 = vpack.c.b16 %v1973_v11, %v1973_v11  ;;  %v8719_v11 = vld [vmem:[#allocation49_spill] sm:$0xff]  ;;  %v1166_v32 = vshrl.u32 %v7060_v55, 16 }
 0x1d5   : > { %8713 = vst [vmem:[#allocation72_spill] sm:$0xff] %v7191_v24  ;;  %v1629_v24 = vshrl.u32 %v7086_v34, 16  ;;  %v8721_v3 = vpack.i.b16 %v8719_v11, %v8720_v0  ;;  %v8725_v34 = vpack.i.b16 %v8723_v4, %v8724_v61  ;;  %v7235_v0 = vperm.slane %v8729_v1, %v5852_v18 }
 0x1d6   : > { %v1165_v61 = vshrl.u32 %v7096_v28, 16  ;;  %v2642_v4 = vsel %vm655_vm7, %v2538_v42, %v7104_v56  ;;  %v1652_v42 = vshrl.u32 %v7073_v41, 16 }
 0x1d7   : > { %1701 = vrot.lane.b32.xlu1 %v1700_v35, %s5154_s9  ;;  %v7214_v35 = vpack.i.b16 %v914_v19, %v913_v9  ;;  %v2275_v51 = vunpack.c.l.b16 %v8721_v3  ;;  %v2303_v9 = vunpack.c.l.b16 %v8725_v34  ;;  %v8726_v19 = vld [vmem:[#allocation51_spill] sm:$0xff]  ;;  %v8730_v3 = vld [vmem:[#allocation26_spill] sm:$0xff]  ;;  %v1630_v11 = vpack.i.b16 %v1629_v24, %v1628_v2  ;;  %v8731_v2 = vld [vmem:[#allocation33_spill] sm:$0xff] }
 0x1d8   : > { %1975 = vrot.lane.b32.xlu2 %v1974_v7, %s5156_s14  ;;  %1673 = vrot.lane.b32.xlu0 %v1672_v27, %s5154_s9  ;;  %v7224_v7 = vpack.i.b16 %v890_v6, %v889_v54  ;;  %v7239_v6 = vperm.slane %v8730_v3, %v5852_v18  ;;  %v1189_v54 = vshrl.u32 %v7011_v8, 16  ;;  %v1633_v34 = vpack.i.b16 %v7208_v63, %v7199_v20  ;;  %v8732_v3 = vld [vmem:[#allocation30_spill] sm:$0xff] }
 0x1d9   : > { %8716 = vst [vmem:[#allocation20_spill] sm:$0xff] %v7214_v35  ;;  %v7218_v23 = vpop.permute.xlu1 %2618  ;;  %v8727_v35 = vld [vmem:[#allocation54_spill] sm:$0xff]  ;;  %v1167_v45 = vpack.i.b16 %v1166_v32, %v1165_v61  ;;  %v8733_v57 = vpack.i.b16 %v8731_v2, %v8732_v3  ;;  %v8736_v3 = vld [vmem:[#allocation28_spill] sm:$0xff] }
 0x1da   : > { %8722 = vst [vmem:[#allocation23_spill] sm:$0xff] %v7224_v7  ;;  %v2591_v27 = vpop.permute.xlu0 %2590  ;;  %v2925_v33 = vpop.permute.xlu2 %2924  ;;  %v8728_v44 = vpack.i.b16 %v8726_v19, %v8727_v35  ;;  %v2276_v35 = vpack.c.b16 %v2275_v51, %v2275_v51  ;;  %v2304_v19 = vpack.c.b16 %v2303_v9, %v2303_v9  ;;  %v1657_v24 = vpack.i.b16 %v7239_v6, %v7235_v0  ;;  %v8735_v2 = vld [vmem:[#allocation38_spill] sm:$0xff] }
 0x1db   : > { %v2644_v1 = vsel %vm659_vm8, %v2642_v4, %v2591_v27  ;;  %v2951_v56 = vsel %vm655_vm7, %v8733_v57, %v6803_v62  ;;  %v1653_v51 = vshrl.u32 %v7076_v15, 16 }
 0x1dc   : > { %v2001_v31 = vunpack.c.l.b16 %v8728_v44  ;;  %v1191_v44 = vpack.i.b16 %v1190_v16, %v1189_v54  ;;  %v1675_v16 = vunpack.c.l.b16 %v1630_v11  ;;  %v2953_v27 = vsel %vm659_vm8, %v2951_v56, %v7034_v43 }
 0x1dd   : > { %v7266_v32 = vsel %vm662_vm9, %v2644_v1, %v7165_v59  ;;  %v2955_v62 = vsel %vm662_vm9, %v2953_v27, %v7163_v37  ;;  %v1210_v54 = vunpack.c.l.b16 %v1167_v45  ;;  %v1654_v15 = vpack.i.b16 %v1653_v51, %v1652_v42  ;;  %v8738_v51 = vld [vmem:[#allocation15_spill] sm:$0xff] }
 0x1de   : > { %v2002_v7 = vpack.c.b16 %v2001_v31, %v2001_v31  ;;  %v1238_v31 = vunpack.c.l.b16 %v1191_v44  ;;  %v1676_v11 = vpack.c.b16 %v1675_v16, %v1675_v16  ;;  %v1102_v43 = vrot.slane %v7060_v55, 4 }
 0x1df   : > { %2277 = vrot.lane.b32.xlu1 %v2276_v35, %s5158_s16  ;;  %v1211_v4 = vpack.c.b16 %v1210_v54, %v1210_v54  ;;  %v1703_v59 = vunpack.c.l.b16 %v1654_v15  ;;  %v8734_v35 = vld [vmem:[#allocation17_spill] sm:$0xff]  ;;  %v1074_v45 = vrot.slane %v7096_v28, 4  ;;  %v8737_v56 = vpack.i.b16 %v8735_v2, %v8736_v3  ;;  %v8743_v2 = vld [vmem:[#allocation35_spill] sm:$0xff] }
 0x1e0   : > { %2305 = vrot.lane.b32.xlu2 %v2304_v19, %s5158_s16  ;;  %2003 = vrot.lane.b32.xlu0 %v2002_v7, %s5156_s14  ;;  %v1239_v61 = vpack.c.b16 %v1238_v31, %v1238_v31  ;;  %v1977_v44 = vunpack.c.l.b16 %v8734_v35  ;;  %v2005_v27 = vunpack.c.l.b16 %v8738_v51  ;;  %v8739_v31 = vld [vmem:[#allocation42_spill] sm:$0xff]  ;;  %v8742_v35 = vld [vmem:[#allocation32_spill] sm:$0xff] }
 0x1e1   : > { %v7262_v9 = vpop.permute.xlu1 %3194  ;;  %v7297_v15 = vsel %vm439_vm3, 0, %v1074_v45  ;;  %v8744_v3 = vpack.i.b16 %v8742_v35, %v8743_v2 }
 0x1e2   : > { %v2921_v57 = vpop.permute.xlu0 %2920  ;;  %v2262_v7 = vpop.permute.xlu2 %2261 }
 0x1e3   : > { %v2957_v41 = vsel %vm665_vm10, %v2955_v62, %v2921_v57  ;;  %v8740_v62 = vld [vmem:[#allocation43_spill] sm:$0xff] }
 0x1e4   : > { %v7278_v1 = vsel %vm668_vm11, %v2957_v41, %v2925_v33  ;;  %v8741_v57 = vpack.i.b16 %v8739_v31, %v8740_v62  ;;  %v1704_v33 = vpack.c.b16 %v1703_v59, %v1703_v59  ;;  %v1978_v41 = vpack.c.b16 %v1977_v44, %v1977_v44  ;;  %v8747_v62 = vld [vmem:[#allocation41_spill] sm:$0xff] }
 0x1e5   : > { %v1130_v59 = vrot.slane %v7011_v8, 4 }
 0x1e7   : > { %1240 = vrot.lane.b32.xlu1 %v1239_v61, %s5153_s8  ;;  %v2006_v61 = vpack.c.b16 %v2005_v27, %v2005_v27  ;;  %v8746_v27 = vld [vmem:[#allocation53_spill] sm:$0xff] }
 0x1e8   : > { %1677 = vrot.lane.b32.xlu2 %v1676_v11, %s8555_s13  ;;  %1212 = vrot.lane.b32.xlu0 %v1211_v4, %s5153_s8  ;;  %v7294_v11 = vsel %vm439_vm3, 0, %v1102_v43  ;;  %v2279_v31 = vunpack.c.l.b16 %v8746_v27  ;;  %v1659_v27 = vshrl.u32 %v7239_v6, 16 }
 0x1e9   : > { %v2286_v37 = vpop.permute.xlu1 %2285  ;;  %v1170_v4 = vpack.i.b16 %v7294_v11, %v7297_v15 }
 0x1ea   : > { %v2258_v19 = vpop.permute.xlu0 %2257  ;;  %v7284_v16 = vsel %vm655_vm7, %v8737_v56, %v2286_v37  ;;  %v7286_v42 = vpop.permute.xlu2 %2626  ;;  %v1158_v37 = vrot.slane %v7055_v52, 4  ;;  %v8745_v56 = vld [vmem:[#allocation52_spill] sm:$0xff] }
 0x1eb   : > { %v2313_v54 = vsel %vm655_vm7, %v8741_v57, %v2258_v19  ;;  %v3245_v19 = vsel %vm655_vm7, %v8744_v3, %v6912_v26  ;;  %v2307_v51 = vunpack.c.l.b16 %v8745_v56  ;;  %v8748_v57 = vld [vmem:[#allocation34_spill] sm:$0xff]  ;;  %v1214_v2 = vunpack.c.l.b16 %v1170_v4 }
 0x1ec   : > { %v3247_v43 = vsel %vm659_vm8, %v3245_v19, %v6971_v49  ;;  %v7318_v26 = vsel %vm659_vm8, %v2313_v54, %v2262_v7  ;;  %v8749_v49 = vld [vmem:[#allocation31_spill] sm:$0xff]  ;;  %v7332_v3 = vsel %vm439_vm3, 0, %v1158_v37  ;;  %v8752_v7 = vld [vmem:[#allocation9_spill] sm:$0xff]  ;;  %v1658_v56 = vshrl.u32 %v7235_v0, 16 }
 0x1ed   : > { %v3249_v44 = vsel %vm662_vm9, %v3247_v43, %v6986_v12  ;;  %v8751_v19 = vld [vmem:[#allocation11_spill] sm:$0xff]  ;;  %v2308_v37 = vpack.c.b16 %v2307_v51, %v2307_v51 }
 0x1ee   : > { %v8753_v54 = vpack.i.b16 %v8751_v19, %v8752_v7  ;;  %v1215_v19 = vpack.c.b16 %v1214_v2, %v1214_v2  ;;  %v2280_v7 = vpack.c.b16 %v2279_v31, %v2279_v31 }
 0x1ef   : > { %1979 = vrot.lane.b32.xlu1 %v1978_v41, %s5157_s15  ;;  %v8750_v41 = vpack.i.b16 %v8748_v57, %v8749_v49 }
 0x1f0   : > { %2007 = vrot.lane.b32.xlu2 %v2006_v61, %s5157_s15  ;;  %1705 = vrot.lane.b32.xlu0 %v1704_v33, %s8555_s13 }
 0x1f1   : > { %v2897_v45 = vpop.permute.xlu1 %2896  ;;  %v3230_v61 = vsel %vm655_vm7, %v8750_v41, %v8747_v62  ;;  %v8754_v62 = vld [vmem:[#allocation62_spill] sm:$0xff]  ;;  %v7348_v41 = vpack.i.b16 %v1659_v27, %v1658_v56 }
 0x1f2   : > { %v7325_v33 = vpop.permute.xlu0 %2622  ;;  %v7329_v35 = vsel %vm668_vm11, %v7041_v22, %v2897_v45  ;;  %v1964_v12 = vpop.permute.xlu2 %1963  ;;  %v3251_v57 = vsel %vm665_vm10, %v3249_v44, %v8754_v62  ;;  %v1131_v22 = vsel %vm439_vm3, 0, %v1130_v59  ;;  %v8755_v45 = vld [vmem:[#allocation61_spill] sm:$0xff]  ;;  %v1679_v44 = vunpack.c.l.b16 %v1633_v34 }
 0x1f3   : > { %v7338_v43 = vsel %vm655_vm7, %v8753_v54, %v1964_v12  ;;  %v3232_v4 = vsel %vm659_vm8, %v3230_v61, %v8755_v45  ;;  %v1194_v49 = vpack.i.b16 %v7332_v3, %v1131_v22  ;;  %v3253_v54 = vsel %vm668_vm11, %v3251_v57, %v6991_v48 }
 0x1f4   : > { %v3234_v12 = vsel %vm662_vm9, %v3232_v4, %v6989_v36  ;;  %v1707_v36 = vunpack.c.l.b16 %v1657_v24  ;;  %v1634_v48 = vshrl.u32 %v7199_v20, 16  ;;  %v3255_v51 = vsel %vm671_vm12, %v3253_v54, %v7106_v10  ;;  %v8757_v54 = vld [vmem:[#allocation8_spill] sm:$0xff] }
 0x1f5   : > { %v3236_v59 = vsel %vm665_vm10, %v3234_v12, %v7023_v60  ;;  %v1635_v60 = vshrl.u32 %v7208_v63, 16  ;;  %v1242_v61 = vunpack.c.l.b16 %v1194_v49  ;;  %v872_v24 = vshrl.u32 %v7129_v50, 16 }
 0x1f6   : > { %v3238_v31 = vsel %vm668_vm11, %v3236_v59, %v7152_v17  ;;  %v1680_v4 = vpack.c.b16 %v1679_v44, %v1679_v44  ;;  %v871_v49 = vshrl.u32 %v7135_v47, 16 }
 0x1f7   : > { %2309 = vrot.lane.b32.xlu1 %v2308_v37, %s5159_s17  ;;  %v3240_v2 = vsel %vm671_vm12, %v3238_v31, %v7262_v9  ;;  %v7375_v57 = vpack.i.b16 %v1635_v60, %v1634_v48  ;;  %v1708_v37 = vpack.c.b16 %v1707_v36, %v1707_v36  ;;  %v1243_v9 = vpack.c.b16 %v1242_v61, %v1242_v61  ;;  %v8759_v31 = vld [vmem:[#allocation58_spill] sm:$0xff] }
 0x1f8   : > { %1216 = vrot.lane.b32.xlu2 %v1215_v19, %s5154_s9  ;;  %2281 = vrot.lane.b32.xlu0 %v2280_v7, %s5159_s17  ;;  %v873_v12 = vpack.i.b16 %v872_v24, %v871_v49  ;;  %v8756_v7 = vld [vmem:[#allocation57_spill] sm:$0xff]  ;;  %v1172_v48 = vshrl.u32 %v7294_v11, 16  ;;  %v1195_v11 = vshrl.u32 %v1131_v22, 16  ;;  %v5071_v22 = vld [vmem:[%s5283_s22 + $0x4c] sm:$0xf] }
 0x1f9   : > { %v3227_v34 = vpop.permute.xlu1 %3226  ;;  %v8758_v59 = vpack.i.b16 %v8756_v7, %v8757_v54  ;;  %v5069_v7 = vld [vmem:[%s5283_s22 + $0x58] sm:$0xf]  ;;  %v1533_v54 = vrot.slane %v7199_v20, 4 }
 0x1fa   : > { %v3199_v56 = vpop.permute.xlu0 %3198  ;;  %v2294_v27 = vpop.permute.xlu2 %2293  ;;  %v3257_v62 = vsel %vm674_vm13, %v3255_v51, %v3227_v34  ;;  %v916_v51 = vunpack.c.l.b16 %v873_v12  ;;  %v8760_v34 = vld [vmem:[#allocation56_spill] sm:$0xff] }
 0x1fb   : > { %v3242_v45 = vsel %vm674_vm13, %v3240_v2, %v3199_v56  ;;  %v3390_v10 = vsel %vm3274_vm14, %v3257_v62, 0  ;;  %v2009_v44 = vunpack.c.l.b16 %v8758_v59  ;;  %v8761_v61 = vpack.i.b16 %v8759_v31, %v8760_v34  ;;  %v7406_v59 = vld [vmem:[%s5283_s22 + $0x54] sm:$0xf] }
 0x1fc   : > { %v3388_v17 = vsel %vm3274_vm14, %v3242_v45, 0  ;;  %3424 = vmatpush.bf16.msra.mxu1 %v3390_v10  ;;  %v1196_v56 = vshrl.u32 %v7332_v3, 16  ;;  %v895_v62 = vshrl.u32 %v7171_v39, 16  ;;  %v1171_v45 = vshrl.u32 %v7297_v15, 16  ;;  %v8762_v15 = vld [vmem:[#allocation60_spill] sm:$0xff] }
 0x1fd   : > { %3395 = vmatpush.bf16.msra.mxu0 %v3388_v17  ;;  %v1981_v2 = vunpack.c.l.b16 %v8761_v61  ;;  %v896_v10 = vshrl.u32 %v7186_v30, 16  ;;  %v529_v3 = vrot.slane %v5069_v7, 4 }
 0x1fe   : > { %v1173_v17 = vpack.i.b16 %v1172_v48, %v1171_v45  ;;  %v808_v48 = vrot.slane %v7129_v50, 4  ;;  %v864_v45 = vrot.slane %v7186_v30, 4  ;;  %v1985_v30 = vunpack.c.l.b16 %v8762_v15 }
 0x1ff   : > { %1681 = vrot.lane.b32.xlu1 %v1680_v4, %s5156_s14  ;;  %v2010_v4 = vpack.c.b16 %v2009_v44, %v2009_v44  ;;  %v1982_v49 = vpack.c.b16 %v1981_v2, %v1981_v2  ;;  %v897_v12 = vpack.i.b16 %v896_v10, %v895_v62  ;;  %v780_v44 = vrot.slane %v7135_v47, 4  ;;  %v5072_v10 = vld [vmem:[%s5283_s22 + $0x48] sm:$0xf] }
 0x200   : > { %1709 = vrot.lane.b32.xlu2 %v1708_v37, %s5156_s14  ;;  %1244 = vrot.lane.b32.xlu0 %v1243_v9, %s5154_s9  ;;  %v917_v37 = vpack.c.b16 %v916_v51, %v916_v51  ;;  %v1197_v9 = vpack.i.b16 %v1196_v56, %v1195_v11  ;;  %v1218_v20 = vunpack.c.l.b16 %v1173_v17  ;;  %v5073_v17 = vld [vmem:[%s5283_s22 + $0x30] sm:$0xf] }
 0x201   : > { %v7384_v19 = vpop.permute.xlu1 %2598  ;;  %v944_v62 = vunpack.c.l.b16 %v897_v12  ;;  %v7439_v12 = vsel %vm439_vm3, 0, %v808_v48  ;;  %v5078_v48 = vld [vmem:[%s5283_s22 + $0x28] sm:$0xf] }
 0x202   : > { %v2290_v36 = vpop.permute.xlu0 %2289  ;;  %v7390_v60 = vpop.permute.xlu2 %2904  ;;  %v1246_v56 = vunpack.c.l.b16 %v1197_v9  ;;  %v1219_v11 = vpack.c.b16 %v1218_v20, %v1218_v20  ;;  %v1683_v20 = vunpack.c.l.b16 %v7375_v57  ;;  %v1589_v57 = vrot.slane %v7235_v0, 4 }
 0x203   : > { %v2330_v24 = vsel %vm659_vm8, %v7284_v16, %v2290_v36  ;;  %v1561_v16 = vrot.slane %v7208_v63, 4  ;;  %v501_v36 = vrot.slane %v5071_v22, 4  ;;  %v7417_v63 = vsel %vm439_vm3, 0, %v1533_v54  ;;  %v5075_v54 = vld [vmem:[%s5283_s22 + $0x40] sm:$0xf] }
 0x204   : > { %v7423_v34 = vsel %vm662_vm9, %v2330_v24, %v2294_v27  ;;  %v1711_v27 = vunpack.c.l.b16 %v7348_v41  ;;  %v836_v24 = vrot.slane %v7171_v39, 4  ;;  %v523_v9 = vrot.slane %v5075_v54, 4  ;;  %v5077_v41 = vld [vmem:[%s5283_s22 + $0x1c] sm:$0xf] }
 0x205   : > { %v7420_v31 = vsel %vm439_vm3, 0, %v1561_v16  ;;  %v5076_v16 = vld [vmem:[%s5283_s22 + $0x34] sm:$0xf]  ;;  %v1247_v39 = vpack.c.b16 %v1246_v56, %v1246_v56  ;;  %v945_v47 = vpack.c.b16 %v944_v62, %v944_v62  ;;  %v530_v54 = vsel %vm439_vm3, %v529_v3, %v5078_v48  ;;  %v5079_v56 = vld [vmem:[%s5283_s22 + $0x4] sm:$0xf] }
 0x206   : > { %v495_v22 = vrot.slane %v5076_v16, 4  ;;  %v1712_v15 = vpack.c.b16 %v1711_v27, %v1711_v27  ;;  %v8763_v62 = vld [vmem:[#allocation6_spill] sm:$0xff]  ;;  %v5080_v16 = vld [vmem:[%s5283_s22 + $0x10] sm:$0xf]  ;;  %v5082_v48 = vld [vmem:[%s5283_s22 + $0x18] sm:$0xf] }
 0x207   : > { %2011 = vrot.lane.b32.xlu1 %v2010_v4, %s5158_s16  ;;  %v445_v4 = vrot.slane %v5072_v10, 4  ;;  %v7444_v10 = vsel %vm439_vm3, 0, %v780_v44 }
 0x208   : > { %918 = vrot.lane.b32.xlu2 %v917_v37, %s5153_s8  ;;  %1983 = vrot.lane.b32.xlu0 %v1982_v49, %s5158_s16  ;;  %v438_v37 = vrot.slane %v5073_v17, 4  ;;  %v5074_v49 = vld [vmem:[%s5283_s22 + $0x3c] sm:$0xf]  ;;  %v502_v17 = vsel %vm439_vm3, %v501_v36, %v5077_v41  ;;  %v876_v44 = vpack.i.b16 %v7439_v12, %v7444_v10  ;;  %v7458_v36 = vsel %vm439_vm3, 0, %v836_v24 }
 0x209   : > { %v7414_v51 = vpop.permute.xlu1 %2928  ;;  %v467_v7 = vrot.slane %v5074_v49, 4  ;;  %v7449_v49 = vsel %vm439_vm3, 0, %v864_v45  ;;  %v496_v3 = vsel %vm439_vm3, %v495_v22, %v5079_v56  ;;  %v7465_v45 = vperm.slane %v502_v17, %v8763_v62 }
 0x20a   : > { %v7425_v61 = vpop.permute.xlu0 %2900  ;;  %v7427_v2 = vpop.permute.xlu2 %1995  ;;  %v524_v24 = vsel %vm439_vm3, %v523_v9, %v5080_v16  ;;  %v7472_v41 = vperm.slane %v530_v54, %v8763_v62  ;;  %v446_v22 = vsel %vm439_vm3, %v445_v4, %v5082_v48  ;;  %v7485_v56 = vsel %vm439_vm3, 0, %v1589_v57  ;;  %v5083_v54 = vld [vmem:[%s5283_s22 + $0xc] sm:$0xf]  ;;  %v8766_v16 = vld [vmem:[#allocation12_spill] sm:$0xff] }
 0x20b   : > { %8764 = vst [vmem:[#allocation16_spill] sm:$0xff] %v7465_v45  ;;  %v1684_v48 = vpack.c.b16 %v1683_v20, %v1683_v20  ;;  %v507_v57 = vrot.slane %v7465_v45, 4  ;;  %v7506_v28 = vperm.slane %v446_v22, %v8763_v62  ;;  %v7513_v20 = vperm.slane %v524_v24, %v8763_v62 }
 0x20c   : > { %8765 = vst [vmem:[#allocation13_spill] sm:$0xff] %v7472_v41  ;;  %v900_v22 = vpack.i.b16 %v7449_v49, %v7458_v36 }
 0x20d   : > { %8769 = vst [vmem:[#allocation49_spill] sm:$0xff] %v7506_v28 }
 0x20f   : > { %1220 = vrot.lane.b32.xlu1 %v1219_v11, %s8555_s13  ;;  %v1617_v11 = vrot.slane %v7239_v6, 4 }
 0x210   : > { %1248 = vrot.lane.b32.xlu2 %v1247_v39, %s8555_s13  ;;  %946 = vrot.lane.b32.xlu0 %v945_v47, %s5153_s8  ;;  %v5081_v39 = vld [vmem:[%s5283_s22] sm:$0xf] }
 0x211   : > { %v2266_v27 = vpop.permute.xlu1 %2265  ;;  %v440_v47 = vsel %vm439_vm3, %v438_v37, %v5081_v39  ;;  %v7488_v9 = vsel %vm439_vm3, 0, %v1617_v11  ;;  %v468_v37 = vsel %vm439_vm3, %v467_v7, %v5083_v54  ;;  %v8767_v39 = vld [vmem:[#allocation7_spill] sm:$0xff]  ;;  %v5084_v7 = vld [vmem:[%s5283_s22 + $0x24] sm:$0xf]  ;;  %v8770_v54 = vrot.slane %v7406_v59, 4 }
 0x212   : > { %v7480_v17 = vsel %vm662_vm9, %v7318_v26, %v2266_v27  ;;  %v1992_v0 = vpop.permute.xlu0 %1991  ;;  %v7482_v6 = vpop.permute.xlu2 %2606  ;;  %v8768_v50 = vpack.i.b16 %v8766_v16, %v8767_v39  ;;  %v7497_v26 = vperm.slane %v496_v3, %v8763_v62  ;;  %v7503_v11 = vperm.slane %v440_v47, %v8763_v62  ;;  %v8773_v27 = vld [vmem:[#allocation59_spill] sm:$0xff] }
 0x213   : > { %v535_v3 = vrot.slane %v7472_v41, 4  ;;  %v1986_v47 = vpack.c.b16 %v1985_v30, %v1985_v30  ;;  %v451_v39 = vrot.slane %v7506_v28, 4 }
 0x214   : > { %v2034_v4 = vsel %vm655_vm7, %v8768_v50, %v1992_v0  ;;  %v474_v50 = vsel %vm439_vm3, %v8770_v54, %v5084_v7  ;;  %v7517_v0 = vperm.slane %v468_v37, %v8763_v62  ;;  %v508_v24 = vsel %vm439_vm3, %v507_v57, %v7497_v26 }
 0x215   : > { %v7520_v16 = vperm.slane %v474_v50, %v8763_v62  ;;  %v452_v37 = vsel %vm439_vm3, %v451_v39, %v7503_v11  ;;  %v920_v7 = vunpack.c.l.b16 %v876_v44  ;;  %v536_v54 = vsel %vm439_vm3, %v535_v3, %v7513_v20 }
 0x216   : > { %8771 = vst [vmem:[#allocation48_spill] sm:$0xff] %v7517_v0  ;;  %v2013_v62 = vunpack.c.l.b16 %v8773_v27  ;;  %v7545_v57 = vperm.slane %v508_v24, %v5852_v18  ;;  %v7548_v39 = vperm.slane %v452_v37, %v5852_v18  ;;  %v7554_v3 = vperm.slane %v536_v54, %v5852_v18 }
 0x217   : > { %8772 = vst [vmem:[#allocation47_spill] sm:$0xff] %v7520_v16  ;;  %1713 = vrot.lane.b32.xlu1 %v1712_v15, %s5157_s15  ;;  %v479_v59 = vrot.slane %v7520_v16, 4  ;;  %v1665_v27 = vshrl.u32 %v7488_v9, 16  ;;  %v921_v55 = vpack.c.b16 %v920_v7, %v920_v7  ;;  %v8774_v37 = vpack.i.b16 %v7420_v31, %v7417_v63 }
 0x218   : > { %1987 = vrot.lane.b32.xlu2 %v1986_v47, %s5159_s17  ;;  %1685 = vrot.lane.b32.xlu0 %v1684_v48, %s5157_s15  ;;  %v948_v48 = vunpack.c.l.b16 %v900_v22  ;;  %v1664_v22 = vshrl.u32 %v7485_v56, 16  ;;  %v2014_v8 = vpack.c.b16 %v2013_v62, %v2013_v62  ;;  %v579_v62 = vshrl.u32 %v7554_v3, 16 }
 0x219   : > { %v7533_v30 = vpop.permute.xlu1 %2630  ;;  %v480_v15 = vsel %vm439_vm3, %v479_v59, %v7517_v0  ;;  %v7558_v59 = vsel %vm659_vm8, %v2034_v4, %v7427_v2  ;;  %v1687_v54 = vunpack.c.l.b16 %v8774_v37  ;;  %v578_v4 = vshrl.u32 %v7545_v57, 16 }
 0x21a   : > { %v7539_v50 = vpop.permute.xlu0 %2602  ;;  %v7541_v47 = vpop.permute.xlu2 %1697  ;;  %v7551_v44 = vperm.slane %v480_v15, %v5852_v18  ;;  %v949_v24 = vpack.c.b16 %v948_v48, %v948_v48  ;;  %v7562_v52 = vpack.i.b16 %v1665_v27, %v1664_v22  ;;  %v554_v15 = vshrl.u32 %v7548_v39, 16 }
 0x21b   : > { %v1640_v7 = vshrl.u32 %v7417_v63, 16  ;;  %v8775_v22 = vpack.i.b16 %v6910_v21, %v6936_v25  ;;  %v1688_v41 = vpack.c.b16 %v1687_v54, %v1687_v54  ;;  %v8777_v25 = vld [vmem:[#allocation14_spill] sm:$0xff]  ;;  %v901_v54 = vshrl.u32 %v7458_v36, 16 }
 0x21c   : > { %v555_v2 = vshrl.u32 %v7551_v44, 16  ;;  %v877_v36 = vshrl.u32 %v7444_v10, 16 }
 0x21d   : > { %v1250_v27 = vunpack.c.l.b16 %v8775_v22  ;;  %v8778_v22 = vld [vmem:[#allocation18_spill] sm:$0xff] }
 0x21e   : > { %v556_v63 = vpack.i.b16 %v555_v2, %v554_v15 }
 0x21f   : > { %922 = vrot.lane.b32.xlu1 %v921_v55, %s5154_s9  ;;  %v1641_v55 = vshrl.u32 %v7420_v31, 16  ;;  %v580_v31 = vpack.i.b16 %v579_v62, %v578_v4  ;;  %v1251_v45 = vpack.c.b16 %v1250_v27, %v1250_v27  ;;  %v878_v4 = vshrl.u32 %v7439_v12, 16 }
 0x220   : > { %950 = vrot.lane.b32.xlu2 %v949_v24, %s5154_s9  ;;  %2015 = vrot.lane.b32.xlu0 %v2014_v8, %s5159_s17  ;;  %v8776_v8 = vpack.i.b16 %v6915_v13, %v6944_v58  ;;  %v599_v21 = vunpack.c.l.b16 %v556_v63  ;;  %v8779_v13 = vpack.i.b16 %v7488_v9, %v7485_v56  ;;  %v902_v62 = vshrl.u32 %v7449_v49, 16 }
 0x221   : > { %v1968_v48 = vpop.permute.xlu1 %1967  ;;  %v7586_v28 = vpack.i.b16 %v1641_v55, %v1640_v7  ;;  %v879_v27 = vpack.i.b16 %v878_v4, %v877_v36 }
 0x222   : > { %v7581_v37 = vsel %vm659_vm8, %v7338_v43, %v1968_v48  ;;  %v2933_v24 = vpop.permute.xlu0 %2932  ;;  %v2274_v18 = vpop.permute.xlu2 %2273  ;;  %v1222_v16 = vunpack.c.l.b16 %v8776_v8  ;;  %v2562_v43 = vpack.i.b16 %v8778_v22, %v8777_v25  ;;  %v627_v48 = vunpack.c.l.b16 %v580_v31 }
 0x223   : > { %v1715_v58 = vunpack.c.l.b16 %v8779_v13  ;;  %v903_v55 = vpack.i.b16 %v902_v62, %v901_v54  ;;  %v924_v63 = vunpack.c.l.b16 %v879_v27  ;;  %v519_v25 = vrot.slane %v7545_v57, 4 }
 0x224   : > { %v1223_v0 = vpack.c.b16 %v1222_v16, %v1222_v16  ;;  %v2657_v56 = vsel %vm655_vm7, %v2562_v43, %v7100_v5  ;;  %v628_v9 = vpack.c.b16 %v627_v48, %v627_v48  ;;  %v463_v48 = vrot.slane %v7548_v39, 4 }
 0x225   : > { %v1716_v7 = vpack.c.b16 %v1715_v58, %v1715_v58  ;;  %v952_v49 = vunpack.c.l.b16 %v903_v55  ;;  %v1691_v58 = vunpack.c.l.b16 %v7586_v28  ;;  %v520_v54 = vsel %vm439_vm3, 0, %v519_v25 }
 0x226   : > { %v464_v4 = vsel %vm439_vm3, 0, %v463_v48  ;;  %v2648_v55 = vsel %vm665_vm10, %v7266_v32, %v7384_v19  ;;  %v584_v25 = vshrl.u32 %v520_v54, 16 }
 0x227   : > { %1252 = vrot.lane.b32.xlu1 %v1251_v45, %s5156_s14  ;;  %v953_v43 = vpack.c.b16 %v952_v49, %v952_v49 }
 0x228   : > { %1689 = vrot.lane.b32.xlu2 %v1688_v41, %s5158_s16  ;;  %1224 = vrot.lane.b32.xlu0 %v1223_v0, %s5156_s14  ;;  %v600_v0 = vpack.c.b16 %v599_v21, %v599_v21 }
 0x229   : > { %v2298_v15 = vpop.permute.xlu1 %2297 }
 0x22a   : > { %v7599_v16 = vsel %vm665_vm10, %v7423_v34, %v2298_v15  ;;  %v2270_v45 = vpop.permute.xlu0 %2269  ;;  %v2639_v2 = vpop.permute.xlu2 %2638  ;;  %v2659_v34 = vsel %vm659_vm8, %v2657_v56, %v7218_v23  ;;  %v1719_v15 = vunpack.c.l.b16 %v7562_v52  ;;  %v1254_v56 = vunpack.c.l.b16 %v7047_v29 }
 0x22b   : > { %v2319_v41 = vsel %vm665_vm10, %v7480_v17, %v2270_v45  ;;  %v2661_v12 = vsel %vm662_vm9, %v2659_v34, %v7325_v33  ;;  %v2961_v17 = vsel %vm671_vm12, %v7278_v1, %v7414_v51  ;;  %v2946_v52 = vsel %vm671_vm12, %v7329_v35, %v7425_v61 }
 0x22c   : > { %v2963_v5 = vsel %vm674_vm13, %v2961_v17, %v2933_v24  ;;  %v7620_v10 = vsel %vm668_vm11, %v2319_v41, %v2274_v18  ;;  %v2663_v23 = vsel %vm665_vm10, %v2661_v12, %v7286_v42  ;;  %v1226_v24 = vunpack.c.l.b16 %v7025_v46 }
 0x22d   : > { %v2665_v1 = vsel %vm668_vm11, %v2663_v23, %v7533_v30  ;;  %v3273_v31 = vrot.slane %v2963_v5, 4  ;;  %v547_v42 = vrot.slane %v7554_v3, 4  ;;  %v491_v30 = vrot.slane %v7551_v44, 4 }
 0x22e   : > { %v1227_v13 = vpack.c.b16 %v1226_v24, %v1226_v24  ;;  %v925_v46 = vpack.c.b16 %v924_v63, %v924_v63  ;;  %v1720_v36 = vpack.c.b16 %v1719_v15, %v1719_v15  ;;  %v2650_v29 = vsel %vm668_vm11, %v2648_v55, %v7539_v50  ;;  %v8781_v63 = vld [vmem:[#allocation19_spill] sm:$0xff] }
 0x22f   : > { %601 = vrot.lane.b32.xlu1 %v600_v0, %s5153_s8  ;;  %v548_v45 = vsel %vm439_vm3, 0, %v547_v42  ;;  %v492_v41 = vsel %vm439_vm3, 0, %v491_v30  ;;  %v1255_v27 = vpack.c.b16 %v1254_v56, %v1254_v56  ;;  %v8780_v23 = vpack.i.b16 %v7016_v38, %v7038_v53 }
 0x230   : > { %629 = vrot.lane.b32.xlu2 %v628_v9, %s5153_s8  ;;  %1717 = vrot.lane.b32.xlu0 %v1716_v7, %s5158_s16  ;;  %v1692_v9 = vpack.c.b16 %v1691_v58, %v1691_v58  ;;  %v583_v7 = vpack.i.b16 %v548_v45, %v520_v54  ;;  %v559_v34 = vpack.i.b16 %v492_v41, %v464_v4  ;;  %v585_v38 = vshrl.u32 %v548_v45, 16  ;;  %v8786_v54 = vld [vmem:[#allocation29_spill] sm:$0xff] }
 0x231   : > { %v7624_v33 = vpop.permute.xlu1 %1669  ;;  %v928_v49 = vunpack.c.l.b16 %v8780_v23  ;;  %v560_v53 = vshrl.u32 %v464_v4, 16  ;;  %v8787_v45 = vld [vmem:[#allocation25_spill] sm:$0xff]  ;;  %v8789_v4 = vld [vmem:[#allocation10_spill] sm:$0xff] }
 0x232   : > { %v2635_v51 = vpop.permute.xlu0 %2634  ;;  %v1976_v8 = vpop.permute.xlu2 %1975  ;;  %v631_v35 = vunpack.c.l.b16 %v583_v7  ;;  %v603_v61 = vunpack.c.l.b16 %v559_v34 }
 0x233   : > { %v2667_v21 = vsel %vm671_vm12, %v2665_v1, %v2635_v51 }
 0x234   : > { %v2669_v18 = vsel %vm674_vm13, %v2667_v21, %v2639_v2  ;;  %v604_v24 = vpack.c.b16 %v603_v61, %v603_v61 }
 0x235   : > { %v3297_v22 = vsel %vm3274_vm14, %v2669_v18, %v3273_v31  ;;  %v8782_v31 = vld [vmem:[#allocation21_spill] sm:$0xff]  ;;  %v929_v18 = vpack.c.b16 %v928_v49, %v928_v49 }
 0x236   : > { %3425 = vmatpush.bf16.msra.mxu1 %v3297_v22  ;;  %v1621_v21 = vpack.i.b16 %v8782_v31, %v8781_v63  ;;  %v8798_v31 = vld [vmem:[#allocation27_spill] sm:$0xff] }
 0x237   : > { %954 = vrot.lane.b32.xlu1 %v953_v43, %s8555_s13  ;;  %v8783_v43 = vld [vmem:[#allocation37_spill] sm:$0xff] }
 0x238   : > { %1228 = vrot.lane.b32.xlu2 %v1227_v13, %s5157_s15  ;;  %926 = vrot.lane.b32.xlu0 %v925_v46, %s8555_s13  ;;  %v1725_v13 = vsel %vm655_vm7, %v1621_v21, %v7624_v33 }
 0x239   : > { %v2000_v2 = vpop.permute.xlu1 %1999 }
 0x23a   : > { %v1972_v0 = vpop.permute.xlu0 %1971  ;;  %v2306_v62 = vpop.permute.xlu2 %2305  ;;  %v7647_v28 = vsel %vm662_vm9, %v7558_v59, %v2000_v2  ;;  %v2948_v59 = vsel %vm674_vm13, %v2946_v52, %v7390_v60  ;;  %v8788_v2 = vpack.i.b16 %v8786_v54, %v8787_v45  ;;  %v8804_v45 = vld [vmem:[#allocation67_spill] sm:$0xff] }
 0x23b   : > { %v2023_v12 = vsel %vm662_vm9, %v7581_v37, %v1972_v0  ;;  %v3272_v19 = vrot.slane %v2948_v59, 4  ;;  %v2652_v37 = vsel %vm671_vm12, %v2650_v29, %v7482_v6  ;;  %v1645_v6 = vpack.i.b16 %v6940_v40, %v6932_v14  ;;  %v8784_v14 = vld [vmem:[#allocation36_spill] sm:$0xff] }
 0x23c   : > { %v7666_v32 = vsel %vm665_vm10, %v2023_v12, %v1976_v8  ;;  %v632_v8 = vpack.c.b16 %v631_v35, %v631_v35  ;;  %v8785_v40 = vpack.i.b16 %v8783_v43, %v8784_v14  ;;  %v509_v12 = vrot.slane %v7497_v26, 4  ;;  %v8792_v35 = vld [vmem:[#allocation48_spill] sm:$0xff]  ;;  %v8801_v43 = vld [vmem:[#allocation22_spill] sm:$0xff] }
 0x23d   : > { %v1740_v42 = vsel %vm655_vm7, %v1645_v6, %v7541_v47  ;;  %v1258_v47 = vunpack.c.l.b16 %v8788_v2  ;;  %v537_v59 = vrot.slane %v7513_v20, 4  ;;  %v481_v61 = vrot.slane %v8792_v35, 4 }
 0x23e   : > { %v1230_v48 = vunpack.c.l.b16 %v8785_v40  ;;  %v960_v2 = vunpack.c.l.b16 %v8804_v45 }
 0x23f   : > { %1693 = vrot.lane.b32.xlu1 %v1692_v9, %s5159_s17 }
 0x240   : > { %1721 = vrot.lane.b32.xlu2 %v1720_v36, %s5159_s17  ;;  %1256 = vrot.lane.b32.xlu0 %v1255_v27, %s5157_s15  ;;  %v1231_v7 = vpack.c.b16 %v1230_v48, %v1230_v48  ;;  %v1259_v36 = vpack.c.b16 %v1258_v47, %v1258_v47  ;;  %v453_v27 = vrot.slane %v7503_v11, 4  ;;  %v8805_v47 = vld [vmem:[#allocation45_spill] sm:$0xff] }
 0x241   : > { %v2611_v60 = vpop.permute.xlu1 %2610 }
 0x242   : > { %v2302_v17 = vpop.permute.xlu0 %2301  ;;  %v2654_v50 = vsel %vm674_vm13, %v2652_v37, %v2611_v60  ;;  %v1678_v5 = vpop.permute.xlu2 %1677 }
 0x243   : > { %v2336_v1 = vsel %vm668_vm11, %v7599_v16, %v2302_v17  ;;  %v3294_v51 = vsel %vm3274_vm14, %v2654_v50, %v3272_v19  ;;  %v561_v16 = vshrl.u32 %v492_v41, 16  ;;  %v8790_v41 = vld [vmem:[#allocation46_spill] sm:$0xff]  ;;  %v8793_v17 = vld [vmem:[#allocation63_spill] sm:$0xff] }
 0x244   : > { %3396 = vmatpush.bf16.msra.mxu0 %v3294_v51  ;;  %v7690_v30 = vsel %vm671_vm12, %v2336_v1, %v2306_v62  ;;  %v8791_v0 = vpack.i.b16 %v8789_v4, %v8790_v41  ;;  %v586_v62 = vpack.i.b16 %v585_v38, %v584_v25  ;;  %v932_v50 = vunpack.c.l.b16 %v8793_v17  ;;  %v8794_v1 = vld [vmem:[#allocation16_spill] sm:$0xff]  ;;  %v8795_v51 = vld [vmem:[#allocation13_spill] sm:$0xff] }
 0x245   : > { %v562_v9 = vpack.i.b16 %v561_v16, %v560_v53  ;;  %v510_v26 = vsel %vm439_vm3, %v8794_v1, %v509_v12  ;;  %v538_v20 = vsel %vm439_vm3, %v8795_v51, %v537_v59  ;;  %v8799_v16 = vld [vmem:[#allocation50_spill] sm:$0xff]  ;;  %v8806_v4 = vld [vmem:[#allocation40_spill] sm:$0xff]  ;;  %v8812_v1 = vld [vmem:[#allocation65_spill] sm:$0xff] }
 0x246   : > { %v956_v56 = vunpack.c.l.b16 %v8791_v0  ;;  %v635_v34 = vunpack.c.l.b16 %v586_v62  ;;  %v933_v63 = vpack.c.b16 %v932_v50, %v932_v50  ;;  %v7729_v21 = vperm.slane %v510_v26, %v8798_v31 }
 0x247   : > { %633 = vrot.lane.b32.xlu1 %v632_v8, %s5154_s9  ;;  %v607_v55 = vunpack.c.l.b16 %v562_v9  ;;  %v8796_v8 = vld [vmem:[#allocation49_spill] sm:$0xff]  ;;  %v8807_v41 = vpack.i.b16 %v8805_v47, %v8806_v4  ;;  %v961_v9 = vpack.c.b16 %v960_v2, %v960_v2 }
 0x248   : > { %930 = vrot.lane.b32.xlu2 %v929_v18, %s5156_s14  ;;  %605 = vrot.lane.b32.xlu0 %v604_v24, %s5154_s9  ;;  %v957_v33 = vpack.c.b16 %v956_v56, %v956_v56  ;;  %v636_v23 = vpack.c.b16 %v635_v34, %v635_v34  ;;  %v454_v11 = vsel %vm439_vm3, %v8796_v8, %v453_v27  ;;  %v8797_v24 = vld [vmem:[#allocation47_spill] sm:$0xff]  ;;  %v521_v4 = vrot.slane %v7729_v21, 4 }
 0x249   : > { %v1702_v22 = vpop.permute.xlu1 %1701  ;;  %v608_v49 = vpack.c.b16 %v607_v55, %v607_v55  ;;  %v482_v6 = vsel %vm439_vm3, %v8797_v24, %v481_v61  ;;  %v7732_v18 = vperm.slane %v538_v20, %v8798_v31  ;;  %v462_v25 = vperm.slane %v454_v11, %v8798_v31  ;;  %v8808_v61 = vld [vmem:[#allocation69_spill] sm:$0xff] }
 0x24a   : > { %v7695_v46 = vsel %vm659_vm8, %v1740_v42, %v1702_v22  ;;  %v2008_v58 = vpop.permute.xlu2 %2007  ;;  %v1674_v15 = vpop.permute.xlu0 %1673  ;;  %v490_v38 = vperm.slane %v482_v6, %v8798_v31  ;;  %v8800_v22 = vld [vmem:[#allocation44_spill] sm:$0xff]  ;;  %v590_v55 = vshrl.u32 %v7729_v21, 16 }
 0x24b   : > { %v1727_v52 = vsel %vm659_vm8, %v1725_v13, %v1674_v15  ;;  %v8802_v14 = vpack.i.b16 %v8800_v22, %v8801_v43  ;;  %v8803_v15 = vld [vmem:[#allocation66_spill] sm:$0xff]  ;;  %v591_v12 = vshrl.u32 %v7732_v18, 16 }
 0x24c   : > { %v7714_v19 = vsel %vm662_vm9, %v1727_v52, %v1678_v5  ;;  %v1262_v54 = vunpack.c.l.b16 %v8803_v15  ;;  %v565_v56 = vpack.i.b16 %v490_v38, %v462_v25 }
 0x24d   : > { %v592_v6 = vpack.i.b16 %v591_v12, %v590_v55 }
 0x24e   : > { %v1263_v62 = vpack.c.b16 %v1262_v54, %v1262_v54  ;;  %v611_v34 = vunpack.c.l.b16 %v565_v56 }
 0x24f   : > { %1232 = vrot.lane.b32.xlu1 %v1231_v7, %s5158_s16 }
 0x250   : > { %1260 = vrot.lane.b32.xlu2 %v1259_v36, %s5158_s16  ;;  %958 = vrot.lane.b32.xlu0 %v957_v33, %s5156_s14  ;;  %v566_v36 = vshrl.u32 %v462_v25, 16  ;;  %v567_v33 = vshrl.u32 %v490_v38, 16  ;;  %v612_v24 = vpack.c.b16 %v611_v34, %v611_v34  ;;  %v8818_v34 = vld [vmem:[#allocation23_spill] sm:$0xff] }
 0x251   : > { %v7709_v29 = vpop.permute.xlu1 %2277  ;;  %v940_v55 = vunpack.c.l.b16 %v8818_v34 }
 0x252   : > { %v1217_v37 = vpop.permute.xlu2 %1216  ;;  %v2004_v60 = vpop.permute.xlu0 %2003  ;;  %v568_v11 = vpack.i.b16 %v567_v33, %v566_v36 }
 0x253   : > { %v2040_v5 = vsel %vm665_vm10, %v7647_v28, %v2004_v60  ;;  %v1234_v28 = vunpack.c.l.b16 %v8799_v16  ;;  %v8809_v60 = vld [vmem:[#allocation68_spill] sm:$0xff]  ;;  %v643_v16 = vunpack.c.l.b16 %v592_v6 }
 0x254   : > { %v7740_v42 = vsel %vm668_vm11, %v2040_v5, %v2008_v58  ;;  %v589_v58 = vpack.i.b16 %v7732_v18, %v7729_v21  ;;  %v8810_v17 = vpack.i.b16 %v8808_v61, %v8809_v60 }
 0x255   : > { %v1235_v52 = vpack.c.b16 %v1234_v28, %v1234_v28  ;;  %v644_v2 = vpack.c.b16 %v643_v16, %v643_v16 }
 0x256   : > { %v639_v7 = vunpack.c.l.b16 %v589_v58  ;;  %v936_v50 = vunpack.c.l.b16 %v8810_v17 }
 0x257   : > { %637 = vrot.lane.b32.xlu1 %v636_v23, %s8555_s13 }
 0x258   : > { %934 = vrot.lane.b32.xlu2 %v933_v63, %s5157_s15  ;;  %609 = vrot.lane.b32.xlu0 %v608_v49, %s8555_s13  ;;  %v8811_v49 = vld [vmem:[#allocation64_spill] sm:$0xff]  ;;  %v640_v8 = vpack.c.b16 %v639_v7, %v639_v7  ;;  %v937_v5 = vpack.c.b16 %v936_v50, %v936_v50  ;;  %v615_v63 = vunpack.c.l.b16 %v568_v11  ;;  %v522_v7 = vsel %vm439_vm3, 0, %v521_v4 }
 0x259   : > { %v1241_v53 = vpop.permute.xlu1 %1240  ;;  %v8813_v26 = vpack.i.b16 %v8811_v49, %v8812_v1  ;;  %v596_v17 = vshrl.u32 %v522_v7, 16  ;;  %v941_v49 = vpack.c.b16 %v940_v55, %v940_v55  ;;  %v2323_v1 = vsel %vm671_vm12, %v7620_v10, %v7709_v29 }
 0x25a   : > { %v7746_v40 = vsel %vm655_vm7, %v8802_v14, %v1241_v53  ;;  %v1710_v48 = vpop.permute.xlu2 %1709  ;;  %v1213_v13 = vpop.permute.xlu0 %1212  ;;  %v465_v53 = vrot.slane %v462_v25, 4  ;;  %v8814_v14 = vld [vmem:[#allocation70_spill] sm:$0xff]  ;;  %v616_v45 = vpack.c.b16 %v615_v63, %v615_v63 }
 0x25b   : > { %v1268_v0 = vsel %vm655_vm7, %v8807_v41, %v1213_v13  ;;  %v8815_v13 = vld [vmem:[#allocation72_spill] sm:$0xff]  ;;  %v549_v41 = vrot.slane %v7732_v18, 4 }
 0x25c   : > { %v7767_v23 = vsel %vm659_vm8, %v1268_v0, %v1217_v37  ;;  %v493_v37 = vrot.slane %v490_v38, 4  ;;  %v8816_v15 = vpack.i.b16 %v8814_v14, %v8815_v13  ;;  %v466_v25 = vsel %vm439_vm3, 0, %v465_v53 }
 0x25d   : > { %v550_v36 = vsel %vm439_vm3, 0, %v549_v41 }
 0x25e   : > { %v964_v54 = vunpack.c.l.b16 %v8816_v15  ;;  %v494_v38 = vsel %vm439_vm3, 0, %v493_v37  ;;  %v597_v50 = vshrl.u32 %v550_v36, 16  ;;  %v8819_v15 = vld [vmem:[#allocation71_spill] sm:$0xff] }
 0x25f   : > { %1236 = vrot.lane.b32.xlu1 %v1235_v52, %s5159_s17  ;;  %v571_v47 = vpack.i.b16 %v494_v38, %v466_v25  ;;  %v573_v58 = vshrl.u32 %v494_v38, 16 }
 0x260   : > { %1264 = vrot.lane.b32.xlu2 %v1263_v62, %s5159_s17  ;;  %962 = vrot.lane.b32.xlu0 %v961_v9, %s5157_s15  ;;  %v965_v0 = vpack.c.b16 %v964_v54, %v964_v54  ;;  %v8817_v62 = vld [vmem:[#allocation20_spill] sm:$0xff]  ;;  %v8820_v54 = vld [vmem:[#allocation55_spill] sm:$0xff] }
 0x261   : > { %v7761_v59 = vpop.permute.xlu1 %1979  ;;  %v619_v56 = vunpack.c.l.b16 %v571_v47  ;;  %v968_v9 = vunpack.c.l.b16 %v8817_v62 }
 0x262   : > { %v919_v27 = vpop.permute.xlu2 %918  ;;  %v1706_v35 = vpop.permute.xlu0 %1705  ;;  %v2027_v6 = vsel %vm668_vm11, %v7666_v32, %v7761_v59 }
 0x263   : > { %v7773_v51 = vsel %vm655_vm7, %v8813_v26, %v919_v27  ;;  %v1744_v20 = vsel %vm662_vm9, %v7695_v46, %v1706_v35  ;;  %v595_v35 = vpack.i.b16 %v550_v36, %v522_v7  ;;  %v620_v61 = vpack.c.b16 %v619_v56, %v619_v56 }
 0x264   : > { %v7783_v22 = vsel %vm665_vm10, %v1744_v20, %v1710_v48  ;;  %v572_v48 = vshrl.u32 %v466_v25, 16  ;;  %v969_v60 = vpack.c.b16 %v968_v9, %v968_v9  ;;  %v598_v26 = vpack.i.b16 %v597_v50, %v596_v17 }
 0x266   : > { %v574_v27 = vpack.i.b16 %v573_v58, %v572_v48  ;;  %v651_v11 = vunpack.c.l.b16 %v598_v26 }
 0x267   : > { %641 = vrot.lane.b32.xlu1 %v640_v8, %s5156_s14 }
 0x268   : > { %938 = vrot.lane.b32.xlu2 %v937_v5, %s5158_s16  ;;  %613 = vrot.lane.b32.xlu0 %v612_v24, %s5156_s14 }
 0x269   : > { %v7780_v28 = vpop.permute.xlu1 %2309 }
 0x26a   : > { %v1249_v46 = vpop.permute.xlu2 %1248  ;;  %v2282_v43 = vpop.permute.xlu0 %2281 }
 0x26b   : > { %v2325_v20 = vsel %vm674_vm13, %v2323_v1, %v2282_v43  ;;  %v652_v43 = vpack.c.b16 %v651_v11, %v651_v11 }
 0x26c   : > { %v3268_v5 = vrot.slane %v2325_v20, 4 }
 0x26f   : > { %617 = vrot.lane.b32.xlu1 %v616_v45, %s5157_s15  ;;  %v8821_v45 = vpack.i.b16 %v8819_v15, %v8820_v54  ;;  %v5160_v54 = vmov 0  }
 0x270   : > { %966 = vrot.lane.b32.xlu0 %v965_v0, %s5158_s16  ;;  %645 = vrot.lane.b32.xlu2 %v644_v2, %s5157_s15  ;;  %v2340_v0 = vsel %vm674_vm13, %v7690_v30, %v7780_v28 }
 0x271   : > { %v1682_v52 = vpop.permute.xlu1 %1681  ;;  %v3269_v48 = vrot.slane %v2340_v0, 4  ;;  %5067 = vset.pattern.permute.xlu1 %v5160_v54  ;;  %5068 = vset.pattern.permute.xlu2 %v5160_v54 }
 0x272   : > { %v1731_v21 = vsel %vm665_vm10, %v7714_v19, %v1682_v52  ;;  %v1988_v18 = vpop.permute.xlu2 %1987  ;;  %v1245_v33 = vpop.permute.xlu0 %1244  ;;  %v623_v19 = vunpack.c.l.b16 %v574_v27  ;;  %5066 = vset.pattern.permute.xlu0 %v5160_v54 }
 0x273   : > { %v1285_v12 = vsel %vm659_vm8, %v7746_v40, %v1245_v33  ;;  %v647_v40 = vunpack.c.l.b16 %v595_v35 }
 0x274   : > { %v1287_v24 = vsel %vm662_vm9, %v1285_v12, %v1249_v46  ;;  %v624_v53 = vpack.c.b16 %v623_v19, %v623_v19 }
 0x275   : > { %v648_v16 = vpack.c.b16 %v647_v40, %v647_v40 }
 0x277   : > { %970 = vrot.lane.b32.xlu1 %v969_v60, %s5159_s17 }
 0x278   : > { %942 = vrot.lane.b32.xlu0 %v941_v49, %s5159_s17  ;;  %621 = vrot.lane.b32.xlu2 %v620_v61, %s5158_s16 }
 0x279   : > { %v2012_v8 = vpop.permute.xlu1 %2011 }
 0x27a   : > { %v951_v10 = vpop.permute.xlu2 %950  ;;  %v1984_v29 = vpop.permute.xlu0 %1983  ;;  %v2044_v58 = vsel %vm671_vm12, %v7740_v42, %v2012_v8 }
 0x27b   : > { %v2029_v63 = vsel %vm671_vm12, %v2027_v6, %v1984_v29 }
 0x27c   : > { %v2031_v37 = vsel %vm674_vm13, %v2029_v63, %v1988_v18 }
 0x27d   : > { %v3288_v14 = vsel %vm3274_vm14, %v2031_v37, %v3268_v5 }
 0x27e   : > { %3397 = vmatpush.bf16.msra.mxu0 %v3288_v14 }
 0x27f   : > { %625 = vrot.lane.b32.xlu1 %v624_v53, %s5159_s17 }
 0x280   : > { %649 = vrot.lane.b32.xlu0 %v648_v16, %s5158_s16  ;;  %653 = vrot.lane.b32.xlu2 %v652_v43, %s5159_s17 }
 0x281   : > { %v1221_v32 = vpop.permute.xlu1 %1220 }
 0x282   : > { %v1272_v59 = vsel %vm662_vm9, %v7767_v23, %v1221_v32  ;;  %v1690_v46 = vpop.permute.xlu2 %1689  ;;  %v947_v13 = vpop.permute.xlu0 %946 }
 0x283   : > { %v989_v25 = vsel %vm655_vm7, %v8821_v45, %v947_v13 }
 0x284   : > { %v991_v41 = vsel %vm659_vm8, %v989_v25, %v951_v10 }
 0x289   : > { %v1714_v38 = vpop.permute.xlu1 %1713 }
 0x28a   : > { %v7826_v2 = vpop.permute.xlu2 %629  ;;  %v1686_v47 = vpop.permute.xlu0 %1685  ;;  %v1748_v50 = vsel %vm668_vm11, %v7783_v22, %v1714_v38 }
 0x28b   : > { %v1733_v4 = vsel %vm668_vm11, %v1731_v21, %v1686_v47  ;;  %v3312_v47 = vld [vmem:[%s8469_s2 + $0x28] sm:$0xff] }
 0x28c   : > { %v1735_v7 = vsel %vm671_vm12, %v1733_v4, %v1690_v46 }
 0x291   : > { %v923_v23 = vpop.permute.xlu1 %922 }
 0x292   : > { %v976_v56 = vsel %vm659_vm8, %v7773_v51, %v923_v23  ;;  %v1229_v52 = vpop.permute.xlu2 %1228  ;;  %v2016_v62 = vpop.permute.xlu0 %2015  ;;  %v3307_v23 = vld [vmem:[%s8469_s2] sm:$0xff] }
 0x293   : > { %v2046_v9 = vsel %vm674_vm13, %v2044_v58, %v2016_v62  ;;  %v577_v58 = vpack.i.b16 %v7554_v3, %v7545_v57  ;;  %v3311_v62 = vld [vmem:[%s8469_s2 + $0x20] sm:$0xff] }
 0x294   : > { %v3291_v36 = vsel %vm3274_vm14, %v2046_v9, %v3269_v48  ;;  %v553_v48 = vpack.i.b16 %v7551_v44, %v7548_v39  ;;  %v3313_v9 = vld [vmem:[%s8469_s2 + $0x30] sm:$0xff]  ;;  %3337 = vperm.xlu2 %5068, %v3311_v62  }
 0x295   : > { %3426 = vmatpush.bf16.msra.mxu1 %v3291_v36  ;;  %3347 = vperm.xlu0 %5066, %v3313_v9   ;;  %v679_v57 = vsel %vm655_vm7, %v577_v58, %v7826_v2 }
 0x299   : > { %v1253_v21 = vpop.permute.xlu1 %1252 }
 0x29a   : > { %v1722_v18 = vpop.permute.xlu2 %1721  ;;  %v1225_v30 = vpop.permute.xlu0 %1224  ;;  %v1289_v1 = vsel %vm665_vm10, %v1287_v24, %v1253_v21 }
 0x29b   : > { %v1274_v24 = vsel %vm665_vm10, %v1272_v59, %v1225_v30  ;;  %v3314_v59 = vld [vmem:[%s8469_s2 + $0x38] sm:$0xff] }
 0x29c   : > { %v1276_v16 = vsel %vm668_vm11, %v1274_v24, %v1229_v52  ;;  %3352 = vperm.xlu1 %5067, %v3314_v59  }
 0x2a1   : > { %v602_v28 = vpop.permute.xlu1 %601 }
 0x2a2   : > { %v931_v33 = vpop.permute.xlu2 %930  ;;  %v1718_v34 = vpop.permute.xlu0 %1717 }
 0x2a3   : > { %v1750_v49 = vsel %vm671_vm12, %v1748_v50, %v1718_v34 }
 0x2a4   : > { %v1752_v19 = vsel %vm674_vm13, %v1750_v49, %v1722_v18  ;;  %3342 = vperm.xlu1 %5067, %v3312_v47  }
 0x2a5   : > { %v3265_v40 = vrot.slane %v1752_v19, 4 }
 0x2a9   : > { %v955_v55 = vpop.permute.xlu1 %954 }
 0x2aa   : > { %v1261_v42 = vpop.permute.xlu2 %1260  ;;  %v927_v12 = vpop.permute.xlu0 %926  ;;  %v7841_v51 = vsel %vm662_vm9, %v991_v41, %v955_v55 }
 0x2ab   : > { %v978_v27 = vsel %vm662_vm9, %v976_v56, %v927_v12 }
 0x2ac   : > { %v980_v35 = vsel %vm665_vm10, %v978_v27, %v931_v33  ;;  %3317 = vperm.xlu1 %5067, %v3307_v23  }
 0x2b1   : > { %v1694_v61 = vpop.permute.xlu1 %1693 }
 0x2b2   : > { %v935_v60 = vpop.permute.xlu2 %934  ;;  %v1257_v17 = vpop.permute.xlu0 %1256  ;;  %v1737_v37 = vsel %vm674_vm13, %v1735_v7, %v1694_v61  ;;  %v658_v7 = vsel %vm655_vm7, %v553_v48, %v602_v28 }
 0x2b3   : > { %v1291_v26 = vsel %vm668_vm11, %v1289_v1, %v1257_v17  ;;  %v3264_v43 = vrot.slane %v1737_v37, 4  ;;  %v982_v44 = vsel %vm668_vm11, %v980_v35, %v935_v60 }
 0x2b4   : > { %v1293_v11 = vsel %vm671_vm12, %v1291_v26, %v1261_v42 }
 0x2b9   : > { %v634_v20 = vpop.permute.xlu1 %633 }
 0x2ba   : > { %v1265_v8 = vpop.permute.xlu2 %1264  ;;  %v606_v6 = vpop.permute.xlu0 %605  ;;  %v681_v21 = vsel %vm659_vm8, %v679_v57, %v634_v20  ;;  %v4990_v20 = vld [vmem:[%s8468_s1] sm:$0xff] }
 0x2bb   : > { %v1295_v10 = vsel %vm674_vm13, %v1293_v11, %v1265_v8  ;;  %v661_v39 = vsel %vm659_vm8, %v658_v7, %v606_v6  ;;  %v3309_v11 = vld [vmem:[%s8469_s2 + $0x10] sm:$0xff]  ;;  %v3310_v6 = vld [vmem:[%s8469_s2 + $0x18] sm:$0xff] }
 0x2bc   : > { %v3285_v29 = vsel %vm3274_vm14, %v1295_v10, %v3265_v40  ;;  %3327 = vperm.xlu2 %5068, %v3309_v11   ;;  %3332 = vperm.xlu0 %5066, %v3310_v6   ;;  %v3308_v10 = vld [vmem:[%s8469_s2 + $0x8] sm:$0xff] }
 0x2bd   : > { %3427 = vmatpush.bf16.msra.mxu1 %v3285_v29  ;;  %v4991_v29 = vld [vmem:[%s8468_s1 + $0x8] sm:$0xff] }
 0x2c1   : > { %v1233_v22 = vpop.permute.xlu1 %1232 }
 0x2c2   : > { %v959_v5 = vpop.permute.xlu0 %958  ;;  %v1278_v14 = vsel %vm671_vm12, %v1276_v16, %v1233_v22  ;;  %v939_v45 = vpop.permute.xlu2 %938  ;;  %v3475_v22 = vld [vmem:[%s8471_s4] sm:$0xff] }
 0x2c3   : > { %v984_v18 = vsel %vm671_vm12, %v982_v44, %v939_v45  ;;  %v995_v30 = vsel %vm665_vm10, %v7841_v51, %v959_v5  ;;  %v4992_v5 = vld [vmem:[%s8468_s1 + $0x10] sm:$0xff] }
 0x2c4   : > { %3322 = vperm.xlu2 %5068, %v3308_v10   ;;  %3478 = vperm.xlu0 %5066, %v3475_v22  }
 0x2c9   : > { %v638_v63 = vpop.permute.xlu1 %637 }
 0x2ca   : > { %v610_v53 = vpop.permute.xlu0 %609  ;;  %v646_v4 = vpop.permute.xlu2 %645  ;;  %v683_v33 = vsel %vm662_vm9, %v681_v21, %v638_v63  ;;  %v4993_v63 = vld [vmem:[%s8468_s1 + $0x18] sm:$0xff] }
 0x2cb   : > { %v664_v3 = vsel %vm662_vm9, %v661_v39, %v610_v53 }
 0x2d1   : > { %v1237_v32 = vpop.permute.xlu1 %1236 }
 0x2d2   : > { %v1280_v46 = vsel %vm674_vm13, %v1278_v14, %v1237_v32  ;;  %v963_v13 = vpop.permute.xlu0 %962  ;;  %v622_v56 = vpop.permute.xlu2 %621 }
 0x2d3   : > { %v3282_v15 = vsel %vm3274_vm14, %v1280_v46, %v3264_v43  ;;  %v997_v34 = vsel %vm668_vm11, %v995_v30, %v963_v13 }
 0x2d4   : > { %3398 = vmatpush.bf16.msra.mxu0 %v3282_v15 }
 0x2d9   : > { %v642_v25 = vpop.permute.xlu1 %641 }
 0x2da   : > { %v614_v38 = vpop.permute.xlu0 %613  ;;  %v685_v42 = vsel %vm665_vm10, %v683_v33, %v642_v25  ;;  %v654_v60 = vpop.permute.xlu2 %653 }
 0x2db   : > { %v667_v28 = vsel %vm665_vm10, %v664_v3, %v614_v38  ;;  %v687_v17 = vsel %vm668_vm11, %v685_v42, %v646_v4 }
 0x2e1   : > { %v618_v41 = vpop.permute.xlu1 %617 }
 0x2e2   : > { %v967_v0 = vpop.permute.xlu0 %966  ;;  %v670_v55 = vsel %vm668_vm11, %v667_v28, %v618_v41 }
 0x2e3   : > { %v999_v12 = vsel %vm671_vm12, %v997_v34, %v967_v0  ;;  %v673_v35 = vsel %vm671_vm12, %v670_v55, %v622_v56 }
 0x2e9   : > { %v971_v52 = vpop.permute.xlu1 %970 }
 0x2ea   : > { %v943_v36 = vpop.permute.xlu0 %942  ;;  %v1001_v27 = vsel %vm674_vm13, %v999_v12, %v971_v52 }
 0x2eb   : > { %v986_v2 = vsel %vm674_vm13, %v984_v18, %v943_v36  ;;  %v3261_v1 = vrot.slane %v1001_v27, 4 }
 0x2ec   : > { %v3260_v61 = vrot.slane %v986_v2, 4 }
 0x2ee   : > { %v3338_v59 = vpop.permute.xlu2 %3337 }
 0x2f1   : > { %v626_v51 = vpop.permute.xlu1 %625 }
 0x2f2   : > { %v676_v50 = vsel %vm674_vm13, %v673_v35, %v626_v51  ;;  %v650_v49 = vpop.permute.xlu0 %649 }
 0x2f3   : > { %v689_v19 = vsel %vm671_vm12, %v687_v17, %v650_v49  ;;  %v3276_v26 = vsel %vm3274_vm14, %v676_v50, %v3260_v61 }
 0x2f4   : > { %v691_v40 = vsel %vm674_vm13, %v689_v19, %v654_v60  ;;  %3399 = vmatpush.bf16.msra.mxu0 %v3276_v26 }
 0x2f5   : > { %v3279_v8 = vsel %vm3274_vm14, %v691_v40, %v3261_v1 }
 0x2f6   : > { %3428 = vmatpush.bf16.msra.mxu1 %v3279_v8 }
 0x2f7   : > { %4879 = vmatmul.msk.bf16.vlgmr.msra.gmra.mxu0 %vm3375_vm15, %v4990_v20 }
 0x2f9   : > { %4883 = vmatmul.msk.bf16.vlgmr.msra.gmra.mxu1 %vm3375_vm15, %v4990_v20 }
 0x307   : > { %4880 = vmatmul.msk.bf16.gmra.mxu0 %vm3375_vm15, %v4991_v29  ;;  %v3348_v38 = vpop.permute.xlu0 %3347 }
 0x309   : > { %4884 = vmatmul.msk.bf16.gmra.mxu1 %vm3375_vm15, %v4991_v29 }
 0x30e   : > { %v3353_v25 = vpop.permute.xlu1 %3352 }
 0x316   : > { %v3328_v41 = vpop.permute.xlu2 %3327  ;;  %v3343_v0 = vpop.permute.xlu1 %3342 }
 0x317   : > { %4881 = vmatmul.msk.bf16.gmra.mxu0 %vm3375_vm15, %v4992_v5 }
 0x319   : > { %4885 = vmatmul.msk.bf16.gmra.mxu1 %vm3375_vm15, %v4992_v5 }
 0x31e   : > { %v3323_v18 = vpop.permute.xlu2 %3322  ;;  %v3318_v2 = vpop.permute.xlu1 %3317 }
 0x327   : > { %4882 = vmatmul.msk.bf16.gmra.mxu0 %vm3375_vm15, %v4993_v63 }
 0x329   : > { %4886 = vmatmul.msk.bf16.gmra.mxu1 %vm3375_vm15, %v4993_v63 }
 0x32e   : > { %v3333_v58 = vpop.permute.xlu0 %3332 }
 0x374   : > { %v3401_v53 = vpop.f32.mrf.mxu0 }
 0x375   : > { %v3402_v49 = vadd.f32 %v3401_v53, %v3318_v2  ;;  %v3466_v53 = vld [vmem:[%s8470_s3] sm:$0xf] }
 0x376   : > { %v3430_v24 = vpop.f32.mrf.mxu1 }
 0x377   : > { %v3431_v40 = vadd.f32 %v3430_v24, %v3318_v2  ;;  %v3450_v10 = vmax.f32 %v3402_v49, 0.0  ;;  %v3479_v24 = vpop.permute.xlu0 %3478 }
 0x379   : > { %v3451_v5 = vmax.f32 %v3431_v40, 0.0 }
 0x37c   : > { %v3403_v37 = vpop.f32.mrf.mxu0 }
 0x37d   : > { %v3404_v61 = vadd.f32 %v3403_v37, %v3323_v18 }
 0x37e   : > { %v3432_v16 = vpop.f32.mrf.mxu1 }
 0x37f   : > { %v3433_v1 = vadd.f32 %v3432_v16, %v3323_v18  ;;  %v3452_v8 = vmax.f32 %v3404_v61, 0.0 }
 0x381   : > { %v3453_v29 = vmax.f32 %v3433_v1, 0.0  ;;  %v3467_v63 = vpack.c.bf16 %v3452_v8, %v3450_v10 }
 0x383   : > { %v3468_v37 = vpack.c.bf16 %v3453_v29, %v3451_v5 }
 0x384   : > { %v3406_v43 = vpop.f32.mrf.mxu0 }
 0x385   : > { %v3407_v55 = vadd.f32 %v3406_v43, %v3328_v41 }
 0x386   : > { %v3435_v14 = vpop.f32.mrf.mxu1 }
 0x387   : > { %v3436_v51 = vadd.f32 %v3435_v14, %v3328_v41  ;;  %v3454_v19 = vmax.f32 %v3407_v55, 0.0 }
 0x389   : > { %v3455_v11 = vmax.f32 %v3436_v51, 0.0 }
 0x38c   : > { %v3408_v32 = vpop.f32.mrf.mxu0 }
 0x38d   : > { %v3409_v3 = vadd.f32 %v3408_v32, %v3333_v58 }
 0x38e   : > { %v3437_v46 = vpop.f32.mrf.mxu1 }
 0x38f   : > { %v3438_v42 = vadd.f32 %v3437_v46, %v3333_v58  ;;  %v3456_v60 = vmax.f32 %v3409_v3, 0.0 }
 0x391   : > { %v3457_v26 = vmax.f32 %v3438_v42, 0.0  ;;  %v3469_v6 = vpack.c.bf16 %v3456_v60, %v3454_v19 }
 0x393   : > { %v3470_v22 = vpack.c.bf16 %v3457_v26, %v3455_v11 }
 0x394   : > { %v3411_v13 = vpop.f32.mrf.mxu0 }
 0x395   : > { %v3412_v9 = vadd.f32 %v3411_v13, %v3338_v59 }
 0x396   : > { %v3440_v15 = vpop.f32.mrf.mxu1 }
 0x397   : > { %v3441_v21 = vadd.f32 %v3440_v15, %v3338_v59  ;;  %v3458_v12 = vmax.f32 %v3412_v9, 0.0 }
 0x399   : > { %v3459_v17 = vmax.f32 %v3441_v21, 0.0 }
 0x39c   : > { %v3413_v54 = vpop.f32.mrf.mxu0 }
 0x39d   : > { %v3414_v56 = vadd.f32 %v3413_v54, %v3343_v0  ;;  %v4994_v54 = vld [vmem:[%s8472_s5] sm:$0xff] }
 0x39e   : > { %v3442_v45 = vpop.f32.mrf.mxu1 }
 0x39f   : > { %v3443_v36 = vadd.f32 %v3442_v45, %v3343_v0  ;;  %v3460_v30 = vmax.f32 %v3414_v56, 0.0 }
 0x3a1   : > { %v3461_v27 = vmax.f32 %v3443_v36, 0.0  ;;  %v3471_v50 = vpack.c.bf16 %v3460_v30, %v3458_v12  ;;  %v8823_v36 = vld [vmem:[#allocation6_spill] sm:$0xff] }
 0x3a3   : > { %v3472_v20 = vpack.c.bf16 %v3461_v27, %v3459_v17 }
 0x3a4   : > { %v3416_v47 = vpop.f32.mrf.mxu0 }
 0x3a5   : > { %v3417_v23 = vadd.f32 %v3416_v47, %v3348_v38 }
 0x3a6   : > { %v3445_v4 = vpop.f32.mrf.mxu1 }
 0x3a7   : > { %v3446_v52 = vadd.f32 %v3445_v4, %v3348_v38  ;;  %v3462_v39 = vmax.f32 %v3417_v23, 0.0 }
 0x3a9   : > { %v3463_v28 = vmax.f32 %v3446_v52, 0.0 }
 0x3ac   : > { %v3418_v48 = vpop.f32.mrf.mxu0 }
 0x3ad   : > { %v3419_v62 = vadd.f32 %v3418_v48, %v3353_v25 }
 0x3ae   : > { %v3447_v7 = vpop.f32.mrf.mxu1 }
 0x3af   : > { %v3464_v57 = vmax.f32 %v3419_v62, 0.0  ;;  %v3448_v44 = vadd.f32 %v3447_v7, %v3353_v25 }
 0x3b1   : > { %v3465_v33 = vmax.f32 %v3448_v44, 0.0  ;;  %v3473_v34 = vpack.c.bf16 %v3464_v57, %v3462_v39 }
 0x3b3   : > { %3488 = vmatpush.bf16.msra.mxu2 %v3473_v34  ;;  %v3474_v35 = vpack.c.bf16 %v3465_v33, %v3463_v28 }
 0x3b5   : > { %3501 = vmatpush.bf16.msra.mxu3 %v3474_v35 }
 0x3b7   : > { %3489 = vmatpush.bf16.msra.mxu2 %v3471_v50 }
 0x3b9   : > { %3502 = vmatpush.bf16.msra.mxu3 %v3472_v20 }
 0x3bb   : > { %3490 = vmatpush.bf16.msra.mxu2 %v3469_v6 }
 0x3bd   : > { %3503 = vmatpush.bf16.msra.mxu3 %v3470_v22 }
 0x3bf   : > { %3491 = vmatpush.bf16.msra.mxu2 %v3467_v63 }
 0x3c1   : > { %3504 = vmatpush.bf16.msra.mxu3 %v3468_v37 }
 0x3c2   : > { %4887 = vmatmul.msk.bf16.vlgmr.msra.gmra.mxu2 %vm665_vm10, %v3466_v53 }
 0x3c3   : > { %3772 = vmatpush.bf16.msrb.mxu2 %v4994_v54 }
 0x3c4   : > { %4888 = vmatmul.msk.bf16.vlgmr.msra.gmra.mxu3 %vm665_vm10, %v3466_v53 }
 0x445   : > { %v3493_v16 = vpop.f32.mrf.mxu2 }
 0x446   : > { %v3494_v43 = vadd.f32 %v3493_v16, %v3479_v24 }
 0x447   : > { %v3506_v14 = vpop.f32.mrf.mxu3 }
 0x448   : > { %v3507_v32 = vadd.f32 %v3506_v14, %v3479_v24 }
 0x44a   : > { %v3510_v46 = vpack.c.bf16 %v3507_v32, %v3494_v43 }
 0x44c   : > { %3534 = vrot.lane.b32.xlu0 %v3510_v46, %s5154_s9  ;;  %3522 = vrot.lane.b32.xlu2 %v3510_v46, %s5157_s15  ;;  %v3512_v41 = vrot.slane %v3510_v46, 4 }
 0x44d   : > { %3518 = vrot.lane.b32.xlu1 %v3510_v46, %s5158_s16  ;;  %v3495_v13 = vpop.f32.mrf.mxu2 }
 0x44f   : > { %v3508_v15 = vpop.f32.mrf.mxu3 }
 0x454   : > { %3526 = vrot.lane.b32.xlu0 %v3510_v46, %s5156_s14  ;;  %3514 = vrot.lane.b32.xlu2 %v3510_v46, %s5159_s17 }
 0x455   : > { %3538 = vrot.lane.b32.xlu1 %v3510_v46, %s5153_s8 }
 0x45d   : > { %3530 = vrot.lane.b32.xlu1 %v3510_v46, %s8822_s18 }
 0x4a6   : > { %v3523_v25 = vpop.permute.xlu2 %3522 }
 0x4a7   : > { %v3524_v23 = vrot.slane %v3523_v25, 4 }
 0x4ae   : > { %v3515_v7 = vpop.permute.xlu2 %3514 }
 0x4af   : > { %v3516_v30 = vrot.slane %v3515_v7, 4 }
 0x4be   : > { %v3535_v59 = vpop.permute.xlu0 %3534 }
 0x4bf   : > { %v3519_v45 = vpop.permute.xlu1 %3518  ;;  %v3555_v47 = vrot.slane %v3535_v59, 4 }
 0x4c0   : > { %v3520_v38 = vrot.slane %v3519_v45, 4 }
 0x4c1   : > { %v3556_v52 = vsel %vm439_vm3, %v3555_v47, %v3519_v45 }
 0x4c2   : > { %v3612_v48 = vsel %vm439_vm3, %v3535_v59, %v3520_v38  ;;  %v3560_v3 = vperm.slane %v3556_v52, %v8823_v36 }
 0x4c3   : > { %v3616_v39 = vperm.slane %v3612_v48, %v8823_v36 }
 0x4c4   : > { %v3561_v12 = vrot.slane %v3560_v3, 4 }
 0x4c5   : > { %v3617_v28 = vrot.slane %v3616_v39, 4 }
 0x4c6   : > { %v3527_v4 = vpop.permute.xlu0 %3526 }
 0x4c7   : > { %v3539_v0 = vpop.permute.xlu1 %3538  ;;  %v3549_v58 = vrot.slane %v3527_v4, 4  ;;  %v3606_v62 = vsel %vm439_vm3, %v3527_v4, %v3512_v41 }
 0x4c8   : > { %v3583_v56 = vrot.slane %v3539_v0, 4  ;;  %v3640_v9 = vsel %vm439_vm3, %v3539_v0, %v3524_v23  ;;  %v3610_v21 = vperm.slane %v3606_v62, %v8823_v36 }
 0x4c9   : > { %v3550_v57 = vsel %vm439_vm3, %v3549_v58, %v3510_v46  ;;  %v3644_v18 = vperm.slane %v3640_v9, %v8823_v36 }
 0x4ca   : > { %v3584_v44 = vsel %vm439_vm3, %v3583_v56, %v3523_v25  ;;  %v3554_v33 = vperm.slane %v3550_v57, %v8823_v36  ;;  %v3618_v27 = vsel %vm439_vm3, %v3617_v28, %v3610_v21  ;;  %v3619_v16 = vrot.slane %v3610_v21, 4 }
 0x4cb   : > { %v3588_v34 = vperm.slane %v3584_v44, %v8823_v36  ;;  %v3645_v35 = vrot.slane %v3644_v18, 4  ;;  %v3624_v1 = vperm.slane %v3618_v27, %v8798_v31 }
 0x4cc   : > { %v3562_v60 = vsel %vm439_vm3, %v3561_v12, %v3554_v33  ;;  %v3620_v46 = vsel %vm439_vm3, %v3616_v39, %v3619_v16  ;;  %v3563_v13 = vrot.slane %v3554_v33, 4 }
 0x4cd   : > { %v3589_v17 = vrot.slane %v3588_v34, 4  ;;  %v3568_v20 = vperm.slane %v3562_v60, %v8798_v31  ;;  %v3688_v24 = vshrl.u32 %v3624_v1, 16  ;;  %v3628_v45 = vperm.slane %v3620_v46, %v8798_v31 }
 0x4ce   : > { %v3564_v47 = vsel %vm439_vm3, %v3560_v3, %v3563_v13  ;;  %v3629_v52 = vrot.slane %v3624_v1, 4 }
 0x4cf   : > { %v3531_v55 = vpop.permute.xlu1 %3530  ;;  %v3664_v5 = vshrl.u32 %v3568_v20, 16  ;;  %v3573_v0 = vrot.slane %v3568_v20, 4  ;;  %v3572_v48 = vperm.slane %v3564_v47, %v8798_v31  ;;  %v3631_v33 = vrot.slane %v3628_v45, 4 }
 0x4d0   : > { %v3577_v2 = vrot.slane %v3531_v55, 4  ;;  %v3634_v42 = vsel %vm439_vm3, %v3531_v55, %v3516_v30  ;;  %v3630_v3 = vsel %vm439_vm3, 0, %v3629_v52 }
 0x4d1   : > { %v3638_v61 = vperm.slane %v3634_v42, %v8823_v36  ;;  %v3574_v9 = vsel %vm439_vm3, 0, %v3573_v0  ;;  %v3700_v42 = vshrl.u32 %v3628_v45, 16 }
 0x4d2   : > { %v3578_v51 = vsel %vm439_vm3, %v3577_v2, %v3515_v7  ;;  %v3676_v2 = vshrl.u32 %v3572_v48, 16 }
 0x4d3   : > { %v3582_v50 = vperm.slane %v3578_v51, %v8823_v36  ;;  %v3646_v49 = vsel %vm439_vm3, %v3645_v35, %v3638_v61  ;;  %v3647_v37 = vrot.slane %v3638_v61, 4  ;;  %v3632_v35 = vsel %vm439_vm3, 0, %v3631_v33 }
 0x4d4   : > { %v3652_v19 = vperm.slane %v3646_v49, %v8798_v31 }
 0x4d5   : > { %v3590_v26 = vsel %vm439_vm3, %v3589_v17, %v3582_v50  ;;  %v3648_v14 = vsel %vm439_vm3, %v3644_v18, %v3647_v37  ;;  %v3591_v15 = vrot.slane %v3582_v50, 4 }
 0x4d6   : > { %v3596_v40 = vperm.slane %v3590_v26, %v8798_v31  ;;  %v3687_v8 = vpack.i.b16 %v3652_v19, %v3624_v1  ;;  %v3689_v63 = vshrl.u32 %v3652_v19, 16  ;;  %v3656_v54 = vperm.slane %v3648_v14, %v8798_v31 }
 0x4d7   : > { %v3592_v4 = vsel %vm439_vm3, %v3588_v34, %v3591_v15  ;;  %v3657_v23 = vrot.slane %v3652_v19, 4  ;;  %v3575_v34 = vrot.slane %v3572_v48, 4  ;;  %v3670_v19 = vshrl.u32 %v3574_v9, 16 }
 0x4d8   : > { %v3663_v11 = vpack.i.b16 %v3596_v40, %v3568_v20  ;;  %v3712_v10 = vunpack.c.l.b16 %v3687_v8  ;;  %v3665_v22 = vshrl.u32 %v3596_v40, 16  ;;  %v3690_v43 = vpack.i.b16 %v3689_v63, %v3688_v24 }
 0x4d9   : > { %v3601_v38 = vrot.slane %v3596_v40, 4  ;;  %v3699_v41 = vpack.i.b16 %v3656_v54, %v3628_v45  ;;  %v3600_v58 = vperm.slane %v3592_v4, %v8798_v31  ;;  %v3658_v7 = vsel %vm439_vm3, 0, %v3657_v23 }
 0x4da   : > { %v3711_v6 = vunpack.c.l.b16 %v3663_v11  ;;  %v3666_v53 = vpack.i.b16 %v3665_v22, %v3664_v5  ;;  %v3714_v59 = vunpack.c.l.b16 %v3690_v43  ;;  %v3693_v18 = vpack.i.b16 %v3658_v7, %v3630_v3 }
 0x4db   : > { %v3602_v56 = vsel %vm439_vm3, 0, %v3601_v38  ;;  %v3675_v62 = vpack.i.b16 %v3600_v58, %v3572_v48  ;;  %v3720_v57 = vunpack.c.l.b16 %v3699_v41  ;;  %v3677_v12 = vshrl.u32 %v3600_v58, 16 }
 0x4dc   : > { %v3727_v29 = vpack.c.b16 %v3712_v10, %v3711_v6  ;;  %v3713_v32 = vunpack.c.l.b16 %v3666_v53  ;;  %v3669_v44 = vpack.i.b16 %v3602_v56, %v3574_v9  ;;  %v3716_v28 = vunpack.c.l.b16 %v3693_v18 }
 0x4dd   : > { %v3719_v39 = vunpack.c.l.b16 %v3675_v62  ;;  %v3701_v27 = vshrl.u32 %v3656_v54, 16  ;;  %v3659_v61 = vrot.slane %v3656_v54, 4  ;;  %v3671_v51 = vshrl.u32 %v3602_v56, 16 }
 0x4de   : > { %4897 = vmatmul.msk.bf16.vlgmr.msrb.gmra.mxu2 %vm655_vm7, %v3727_v29  ;;  %v3728_v25 = vpack.c.b16 %v3714_v59, %v3713_v32  ;;  %v3715_v30 = vunpack.c.l.b16 %v3669_v44  ;;  %v3576_v60 = vsel %vm439_vm3, 0, %v3575_v34  ;;  %v3678_v17 = vpack.i.b16 %v3677_v12, %v3676_v2  ;;  %v4996_v44 = vld [vmem:[%s8473_s6 + $0x8] sm:$0xff]  ;;  %v4999_v2 = vld [vmem:[%s8473_s6 + $0x20] sm:$0xff] }
 0x4df   : > { %v3731_v21 = vpack.c.b16 %v3720_v57, %v3719_v39  ;;  %v3702_v50 = vpack.i.b16 %v3701_v27, %v3700_v42  ;;  %v3603_v49 = vrot.slane %v3600_v58, 4  ;;  %v3660_v1 = vsel %vm439_vm3, 0, %v3659_v61  ;;  %v4995_v58 = vld [vmem:[%s8473_s6] sm:$0xff] }
 0x4e0   : > { %v3729_v55 = vpack.c.b16 %v3716_v28, %v3715_v30  ;;  %v3705_v26 = vpack.i.b16 %v3660_v1, %v3632_v35  ;;  %v3706_v20 = vshrl.u32 %v3632_v35, 16  ;;  %v3707_v40 = vshrl.u32 %v3660_v1, 16 }
 0x4e1   : > { %v3695_v8 = vshrl.u32 %v3658_v7, 16  ;;  %v3721_v11 = vunpack.c.l.b16 %v3678_v17  ;;  %v3722_v6 = vunpack.c.l.b16 %v3702_v50  ;;  %v3604_v10 = vsel %vm439_vm3, 0, %v3603_v49  ;;  %v5001_v17 = vld [vmem:[%s8473_s6 + $0x30] sm:$0xff]  ;;  %v4998_v50 = vld [vmem:[%s8473_s6 + $0x18] sm:$0xff]  ;;  %v5000_v49 = vld [vmem:[%s8473_s6 + $0x28] sm:$0xff] }
 0x4e2   : > { %v3681_v29 = vpack.i.b16 %v3604_v10, %v3576_v60  ;;  %v3682_v22 = vshrl.u32 %v3576_v60, 16  ;;  %v3683_v5 = vshrl.u32 %v3604_v10, 16  ;;  %v3708_v63 = vpack.i.b16 %v3707_v40, %v3706_v20  ;;  %v5003_v10 = vld [vmem:[%s8473_s6 + $0x40] sm:$0xff] }
 0x4e3   : > { %v3672_v37 = vpack.i.b16 %v3671_v51, %v3670_v19  ;;  %v3694_v53 = vshrl.u32 %v3630_v3, 16  ;;  %v3732_v24 = vpack.c.b16 %v3722_v6, %v3721_v11  ;;  %v3724_v43 = vunpack.c.l.b16 %v3705_v26  ;;  %v5002_v6 = vld [vmem:[%s8473_s6 + $0x38] sm:$0xff] }
 0x4e4   : > { %v3723_v16 = vunpack.c.l.b16 %v3681_v29  ;;  %v3684_v14 = vpack.i.b16 %v3683_v5, %v3682_v22  ;;  %v3726_v15 = vunpack.c.l.b16 %v3708_v63 }
 0x4e5   : > { %v3696_v32 = vpack.i.b16 %v3695_v8, %v3694_v53  ;;  %v3717_v54 = vunpack.c.l.b16 %v3672_v37 }
 0x4e6   : > { %v3733_v46 = vpack.c.b16 %v3724_v43, %v3723_v16  ;;  %v3725_v13 = vunpack.c.l.b16 %v3684_v14  ;;  %v5004_v16 = vld [vmem:[%s8473_s6 + $0x48] sm:$0xff]  ;;  %v5005_v14 = vld [vmem:[%s8473_s6 + $0x50] sm:$0xff] }
 0x4e7   : > { %v3718_v45 = vunpack.c.l.b16 %v3696_v32 }
 0x4e8   : > { %v3734_v59 = vpack.c.b16 %v3726_v15, %v3725_v13 }
 0x4ee   : > { %4898 = vmatmul.msk.bf16.gmra.mxu2 %vm655_vm7, %v3728_v25  ;;  %v3730_v25 = vpack.c.b16 %v3718_v45, %v3717_v54  ;;  %v5007_v45 = vld [vmem:[%s8473_s6 + $0x60] sm:$0xff] }
 0x4fe   : > { %4899 = vmatmul.msk.bf16.gmra.mxu2 %vm655_vm7, %v3729_v55  ;;  %v4997_v55 = vld [vmem:[%s8473_s6 + $0x10] sm:$0xff] }
 0x50e   : > { %4900 = vmatmul.msk.bf16.gmra.mxu2 %vm655_vm7, %v3730_v25 }
 0x51e   : > { %4901 = vmatmul.msk.bf16.gmra.mxu2 %vm655_vm7, %v3731_v21 }
 0x52e   : > { %4902 = vmatmul.msk.bf16.gmra.mxu2 %vm655_vm7, %v3732_v24 }
 0x53e   : > { %4903 = vmatmul.msk.bf16.gmra.mxu2 %vm655_vm7, %v3733_v46 }
 0x54e   : > { %4904 = vmatmul.msk.bf16.gmra.mxu2 %vm655_vm7, %v3734_v59 }
 0x561   : > { %v3774_v38 = vpop.f32.mrf.mxu2 }
 0x562   : > { %v3814_v47 = vpack.c.bf16 %v3774_v38, %v3774_v38  ;;  %v5006_v38 = vld [vmem:[%s8473_s6 + $0x58] sm:$0xff] }
 0x564   : > { %v3874_v0 = vunpack.c.l.b16 %v3814_v47 }
 0x569   : > { %v3776_v4 = vpop.f32.mrf.mxu2 }
 0x56a   : > { %v3815_v41 = vpack.c.bf16 %v3776_v4, %v3776_v4 }
 0x56c   : > { %v3875_v23 = vunpack.c.l.b16 %v3815_v41 }
 0x56e   : > { %v3876_v48 = vpack.c.b16 %v3875_v23, %v3874_v0 }
 0x570   : > { %3891 = vmatpush.bf16.msrb.mxu3 %v3876_v48 }
 0x571   : > { %v3779_v56 = vpop.f32.mrf.mxu2 }
 0x572   : > { %v3816_v52 = vpack.c.bf16 %v3779_v56, %v3779_v56  ;;  %v5008_v56 = vld [vmem:[%s8473_s6 + $0x68] sm:$0xff] }
 0x573   : > { %4913 = vmatmul.msk.bf16.vlgmr.msrb.gmra.mxu3 %vm655_vm7, %v4995_v58  ;;  %v5009_v58 = vld [vmem:[%s8473_s6 + $0x70] sm:$0xff] }
 0x574   : > { %v3915_v7 = vunpack.c.l.b16 %v3816_v52  ;;  %v5010_v52 = vld [vmem:[%s8473_s6 + $0x78] sm:$0xff] }
 0x579   : > { %v3781_v62 = vpop.f32.mrf.mxu2 }
 0x57a   : > { %v3817_v9 = vpack.c.bf16 %v3781_v62, %v3781_v62 }
 0x57c   : > { %v3916_v39 = vunpack.c.l.b16 %v3817_v9 }
 0x57e   : > { %v3917_v57 = vpack.c.b16 %v3916_v39, %v3915_v7 }
 0x580   : > { %3932 = vmatpush.bf16.msra.mxu3 %v3917_v57 }
 0x581   : > { %v3784_v3 = vpop.f32.mrf.mxu2 }
 0x582   : > { %v3818_v21 = vpack.c.bf16 %v3784_v3, %v3784_v3 }
 0x583   : > { %4914 = vmatmul.msk.bf16.gmra.mxu3 %vm655_vm7, %v4996_v44 }
 0x584   : > { %v3956_v28 = vunpack.c.l.b16 %v3818_v21 }
 0x589   : > { %v3786_v18 = vpop.f32.mrf.mxu2 }
 0x58a   : > { %v3819_v30 = vpack.c.bf16 %v3786_v18, %v3786_v18 }
 0x58c   : > { %v3957_v33 = vunpack.c.l.b16 %v3819_v30 }
 0x58e   : > { %v3958_v34 = vpack.c.b16 %v3957_v33, %v3956_v28 }
 0x590   : > { %3973 = vmatpush.bf16.msrb.mxu0 %v3958_v34 }
 0x591   : > { %v3789_v42 = vpop.f32.mrf.mxu2 }
 0x592   : > { %v3820_v12 = vpack.c.bf16 %v3789_v42, %v3789_v42 }
 0x593   : > { %4923 = vmatmul.msk.bf16.vlgmr.msra.gmra.mxu3 %vm655_vm7, %v4997_v55  ;;  %4933 = vmatmul.msk.bf16.vlgmr.msrb.gmra.mxu0 %vm655_vm7, %v4999_v2 }
 0x594   : > { %v3997_v61 = vunpack.c.l.b16 %v3820_v12 }
 0x599   : > { %v3791_v27 = vpop.f32.mrf.mxu2 }
 0x59a   : > { %v3821_v35 = vpack.c.bf16 %v3791_v27, %v3791_v27 }
 0x59c   : > { %v3998_v51 = vunpack.c.l.b16 %v3821_v35 }
 0x59e   : > { %v3999_v60 = vpack.c.b16 %v3998_v51, %v3997_v61 }
 0x5a0   : > { %4014 = vmatpush.bf16.msrb.mxu1 %v3999_v60 }
 0x5a1   : > { %v3794_v1 = vpop.f32.mrf.mxu2 }
 0x5a2   : > { %v3822_v19 = vpack.c.bf16 %v3794_v1, %v3794_v1 }
 0x5a3   : > { %4943 = vmatmul.msk.bf16.vlgmr.msrb.gmra.mxu1 %vm655_vm7, %v5001_v17  ;;  %4924 = vmatmul.msk.bf16.gmra.mxu3 %vm655_vm7, %v4998_v50 }
 0x5a4   : > { %4934 = vmatmul.msk.bf16.gmra.mxu0 %vm655_vm7, %v5000_v49  ;;  %v4038_v40 = vunpack.c.l.b16 %v3822_v19 }
 0x5a9   : > { %v3796_v26 = vpop.f32.mrf.mxu2 }
 0x5aa   : > { %v3823_v20 = vpack.c.bf16 %v3796_v26, %v3796_v26 }
 0x5ac   : > { %v4039_v8 = vunpack.c.l.b16 %v3823_v20 }
 0x5ae   : > { %v4040_v11 = vpack.c.b16 %v4039_v8, %v4038_v40 }
 0x5b0   : > { %4055 = vmatpush.bf16.msrb.mxu3 %v4040_v11 }
 0x5b1   : > { %v3799_v29 = vpop.f32.mrf.mxu2 }
 0x5b2   : > { %v3824_v22 = vpack.c.bf16 %v3799_v29, %v3799_v29 }
 0x5b3   : > { %4944 = vmatmul.msk.bf16.gmra.mxu1 %vm655_vm7, %v5002_v6  ;;  %4953 = vmatmul.msk.bf16.vlgmr.msrb.gmra.mxu3 %vm655_vm7, %v5003_v10 }
 0x5b4   : > { %v4079_v37 = vunpack.c.l.b16 %v3824_v22 }
 0x5b9   : > { %v3801_v5 = vpop.f32.mrf.mxu2 }
 0x5ba   : > { %v3825_v63 = vpack.c.bf16 %v3801_v5, %v3801_v5 }
 0x5bc   : > { %v4080_v53 = vunpack.c.l.b16 %v3825_v63 }
 0x5be   : > { %v4081_v24 = vpack.c.b16 %v4080_v53, %v4079_v37 }
 0x5c0   : > { %4096 = vmatpush.bf16.msra.mxu0 %v4081_v24 }
 0x5c1   : > { %v3804_v43 = vpop.f32.mrf.mxu2 }
 0x5c2   : > { %v3826_v32 = vpack.c.bf16 %v3804_v43, %v3804_v43 }
 0x5c3   : > { %4954 = vmatmul.msk.bf16.gmra.mxu3 %vm655_vm7, %v5004_v16  ;;  %4963 = vmatmul.msk.bf16.vlgmr.msra.gmra.mxu0 %vm655_vm7, %v5005_v14 }
 0x5c4   : > { %v4120_v15 = vunpack.c.l.b16 %v3826_v32 }
 0x5c9   : > { %v3806_v46 = vpop.f32.mrf.mxu2 }
 0x5ca   : > { %v3827_v13 = vpack.c.bf16 %v3806_v46, %v3806_v46 }
 0x5cc   : > { %v4121_v54 = vunpack.c.l.b16 %v3827_v13 }
 0x5ce   : > { %v4122_v59 = vpack.c.b16 %v4121_v54, %v4120_v15 }
 0x5d0   : > { %4137 = vmatpush.bf16.msra.mxu1 %v4122_v59 }
 0x5d1   : > { %v3809_v25 = vpop.f32.mrf.mxu2 }
 0x5d2   : > { %v3828_v47 = vpack.c.bf16 %v3809_v25, %v3809_v25 }
 0x5d3   : > { %4973 = vmatmul.msk.bf16.vlgmr.msra.gmra.mxu1 %vm655_vm7, %v5007_v45  ;;  %4964 = vmatmul.msk.bf16.gmra.mxu0 %vm655_vm7, %v5006_v38 }
 0x5d4   : > { %v4161_v0 = vunpack.c.l.b16 %v3828_v47 }
 0x5d9   : > { %v3811_v4 = vpop.f32.mrf.mxu2 }
 0x5da   : > { %v3829_v41 = vpack.c.bf16 %v3811_v4, %v3811_v4 }
 0x5dc   : > { %v4162_v23 = vunpack.c.l.b16 %v3829_v41 }
 0x5de   : > { %v4163_v48 = vpack.c.b16 %v4162_v23, %v4161_v0 }
 0x5e0   : > { %4178 = vmatpush.bf16.msra.mxu3 %v4163_v48 }
 0x5e3   : > { %4983 = vmatmul.msk.bf16.vlgmr.msra.gmra.mxu3 %vm655_vm7, %v5009_v58  ;;  %4974 = vmatmul.msk.bf16.gmra.mxu1 %vm655_vm7, %v5008_v56 }
 0x5f3   : > { %4984 = vmatmul.msk.bf16.gmra.mxu3 %vm655_vm7, %v5010_v52 }
 0x5f6   : > { %v8063_v62 = vpop.f32.mrf.mxu3 }
 0x5fe   : > { %v3895_v9 = vpop.f32.mrf.mxu3 }
 0x5ff   : > { %v4305_v30 = vrot.slane %v3895_v9, 4 }
 0x606   : > { %v8065_v7 = vpop.f32.mrf.mxu3 }
 0x607   : > { %v4417_v12 = vrot.slane %v8065_v7, 4 }
 0x60e   : > { %v8067_v39 = vpop.f32.mrf.mxu3 }
 0x60f   : > { %v4529_v20 = vrot.slane %v8067_v39, 4 }
 0x610   : > { %v8069_v57 = vpop.f32.mrf.mxu0 }
 0x611   : > { %v4190_v13 = vrot.slane %v8069_v57, 4 }
 0x613   : > { %v4192_v59 = vsel %vm439_vm3, %v4190_v13, %v8063_v62 }
 0x614   : > { %v4198_v25 = vperm.slane %v4192_v59, %v8823_v36 }
 0x616   : > { %v8071_v44 = vpop.f32.mrf.mxu3  ;;  %v4241_v41 = vrot.slane %v4198_v25, 4 }
 0x618   : > { %v3977_v3 = vpop.f32.mrf.mxu0 }
 0x619   : > { %v4306_v28 = vsel %vm439_vm3, %v3977_v3, %v4305_v30  ;;  %v4303_v47 = vrot.slane %v3977_v3, 4 }
 0x61a   : > { %v4314_v34 = vperm.slane %v4306_v28, %v8823_v36 }
 0x61b   : > { %v4304_v48 = vsel %vm439_vm3, %v4303_v47, %v3895_v9 }
 0x61c   : > { %v4365_v35 = vrot.slane %v4314_v34, 4  ;;  %v4310_v52 = vperm.slane %v4304_v48, %v8823_v36 }
 0x61e   : > { %v3936_v21 = vpop.f32.mrf.mxu3 }
 0x61f   : > { %v4317_v33 = vrot.slane %v3936_v21, 4 }
 0x620   : > { %v8073_v18 = vpop.f32.mrf.mxu1 }
 0x621   : > { %v3980_v55 = vpop.f32.mrf.mxu0  ;;  %v4203_v15 = vrot.slane %v8073_v18, 4 }
 0x622   : > { %v4418_v51 = vsel %vm439_vm3, %v3980_v55, %v4417_v12  ;;  %v4415_v3 = vrot.slane %v3980_v55, 4 }
 0x623   : > { %v4426_v1 = vperm.slane %v4418_v51, %v8823_v36  ;;  %v4204_v45 = vsel %vm439_vm3, %v4203_v15, %v8071_v44 }
 0x624   : > { %v4210_v38 = vperm.slane %v4204_v45, %v8823_v36  ;;  %v4416_v12 = vsel %vm439_vm3, %v4415_v3, %v8065_v7  ;;  %v4193_v7 = vrot.slane %v8063_v62, 4 }
 0x625   : > { %v4477_v8 = vrot.slane %v4426_v1, 4 }
 0x626   : > { %v3939_v42 = vpop.f32.mrf.mxu3  ;;  %v4239_v0 = vrot.slane %v4210_v38, 4  ;;  %v8120_v56 = vsel %vm439_vm3, %v4210_v38, %v4241_v41 }
 0x627   : > { %v4429_v50 = vrot.slane %v3939_v42, 4 }
 0x628   : > { %v4018_v2 = vpop.f32.mrf.mxu1  ;;  %v8125_v28 = vsel %vm439_vm3, %v4239_v0, %v4198_v25 }
 0x629   : > { %v4318_v27 = vsel %vm439_vm3, %v4018_v2, %v4317_v33  ;;  %v3982_v26 = vpop.f32.mrf.mxu0  ;;  %v4315_v4 = vrot.slane %v4018_v2, 4 }
 0x62a   : > { %v4326_v61 = vperm.slane %v4318_v27, %v8823_v36  ;;  %v4530_v10 = vsel %vm439_vm3, %v3982_v26, %v4529_v20  ;;  %v4194_v20 = vsel %vm439_vm3, %v8069_v57, %v4193_v7 }
 0x62b   : > { %v4538_v37 = vperm.slane %v4530_v10, %v8823_v36  ;;  %v4316_v58 = vsel %vm439_vm3, %v4315_v4, %v3936_v21  ;;  %v4202_v62 = vperm.slane %v4194_v20, %v8823_v36 }
 0x62c   : > { %v4363_v60 = vrot.slane %v4326_v61, 4  ;;  %v8082_v17 = vsel %vm439_vm3, %v4326_v61, %v4365_v35  ;;  %v4322_v30 = vperm.slane %v4316_v58, %v8823_v36  ;;  %v4205_v35 = vrot.slane %v8071_v44, 4 }
 0x62d   : > { %v4589_v16 = vrot.slane %v4538_v37, 4  ;;  %v4422_v61 = vperm.slane %v4416_v12, %v8823_v36 }
 0x62e   : > { %v8085_v49 = vsel %vm439_vm3, %v4363_v60, %v4314_v34  ;;  %v3941_v6 = vpop.f32.mrf.mxu3  ;;  %v4353_v34 = vrot.slane %v4310_v52, 4  ;;  %v4351_v2 = vrot.slane %v4322_v30, 4  ;;  %v4527_v60 = vrot.slane %v3982_v26, 4 }
 0x62f   : > { %v4541_v5 = vrot.slane %v3941_v6, 4 }
 0x630   : > { %v4021_v19 = vpop.f32.mrf.mxu1  ;;  %v8133_v27 = vsel %vm439_vm3, %v4322_v30, %v4353_v34  ;;  %v8139_v55 = vsel %vm439_vm3, %v4351_v2, %v4310_v52  ;;  %v4528_v44 = vsel %vm439_vm3, %v4527_v60, %v8067_v39 }
 0x631   : > { %v4430_v40 = vsel %vm439_vm3, %v4021_v19, %v4429_v50  ;;  %v4427_v33 = vrot.slane %v4021_v19, 4 }
 0x632   : > { %v4438_v11 = vperm.slane %v4430_v40, %v8823_v36 }
 0x633   : > { %v4428_v9 = vsel %vm439_vm3, %v4427_v33, %v3939_v42  ;;  %v4206_v42 = vsel %vm439_vm3, %v8073_v18, %v4205_v35  ;;  %v4534_v18 = vperm.slane %v4528_v44, %v8823_v36 }
 0x634   : > { %v4475_v29 = vrot.slane %v4438_v11, 4  ;;  %v8093_v22 = vsel %vm439_vm3, %v4438_v11, %v4477_v8  ;;  %v4434_v51 = vperm.slane %v4428_v9, %v8823_v36  ;;  %v4214_v26 = vperm.slane %v4206_v42, %v8823_v36 }
 0x636   : > { %v8096_v63 = vsel %vm439_vm3, %v4475_v29, %v4426_v1  ;;  %v4057_v54 = vpop.f32.mrf.mxu3  ;;  %v4465_v1 = vrot.slane %v4422_v61, 4  ;;  %v4463_v19 = vrot.slane %v4434_v51, 4 }
 0x637   : > { %v4217_v39 = vrot.slane %v4057_v54, 4 }
 0x638   : > { %v4023_v53 = vpop.f32.mrf.mxu1  ;;  %v8150_v11 = vsel %vm439_vm3, %v4434_v51, %v4465_v1 }
 0x639   : > { %v4542_v24 = vsel %vm439_vm3, %v4023_v53, %v4541_v5  ;;  %v4539_v50 = vrot.slane %v4023_v53, 4  ;;  %v8159_v5 = vsel %vm439_vm3, %v4463_v19, %v4422_v61 }
 0x63a   : > { %v4550_v43 = vperm.slane %v4542_v24, %v8823_v36  ;;  %v4253_v24 = vrot.slane %v4202_v62, 4 }
 0x63b   : > { %v4540_v40 = vsel %vm439_vm3, %v4539_v50, %v3941_v6 }
 0x63c   : > { %v4587_v14 = vrot.slane %v4550_v43, 4  ;;  %v8102_v32 = vsel %vm439_vm3, %v4550_v43, %v4589_v16  ;;  %v4546_v10 = vperm.slane %v4540_v40, %v8823_v36  ;;  %v4577_v16 = vrot.slane %v4534_v18, 4 }
 0x63d   : > { %v4254_v13 = vsel %vm439_vm3, %v4214_v26, %v4253_v24 }
 0x63e   : > { %v8105_v46 = vsel %vm439_vm3, %v4587_v14, %v4538_v37  ;;  %v8115_v23 = vpop.f32.mrf.mxu3  ;;  %v4251_v37 = vrot.slane %v4214_v26, 4  ;;  %v4575_v43 = vrot.slane %v4546_v10, 4  ;;  %v8166_v45 = vsel %vm439_vm3, %v4546_v10, %v4577_v16 }
 0x63f   : > { %v4262_v41 = vperm.slane %v4254_v13, %v8798_v31  ;;  %v4329_v2 = vrot.slane %v8115_v23, 4  ;;  %v8210_v16 = vperm.slane %v8125_v28, %v8798_v31 }
 0x640   : > { %v4098_v57 = vpop.f32.mrf.mxu0  ;;  %v4252_v25 = vsel %vm439_vm3, %v4251_v37, %v4202_v62  ;;  %v8170_v4 = vsel %vm439_vm3, %v4575_v43, %v4534_v18 }
 0x641   : > { %v4229_v14 = vrot.slane %v4098_v57, 4  ;;  %v8177_v33 = vperm.slane %v4252_v25, %v8798_v31  ;;  %v4301_v50 = vrot.slane %v4262_v41, 4 }
 0x643   : > { %v4297_v19 = vrot.slane %v8177_v33, 4 }
 0x646   : > { %v8130_v21 = vpop.f32.mrf.mxu3 }
 0x648   : > { %v4100_v3 = vpop.f32.mrf.mxu0 }
 0x649   : > { %v4341_v51 = vrot.slane %v4100_v3, 4 }
 0x64e   : > { %v8156_v29 = vpop.f32.mrf.mxu3 }
 0x650   : > { %v4139_v8 = vpop.f32.mrf.mxu1 }
 0x651   : > { %v4215_v6 = vrot.slane %v4139_v8, 4  ;;  %v4218_v53 = vsel %vm439_vm3, %v4139_v8, %v4217_v39 }
 0x652   : > { %v4226_v59 = vperm.slane %v4218_v53, %v8823_v36 }
 0x653   : > { %v4216_v15 = vsel %vm439_vm3, %v4215_v6, %v4057_v54 }
 0x654   : > { %v4222_v0 = vperm.slane %v4216_v15, %v8823_v36  ;;  %v4277_v54 = vrot.slane %v4226_v59, 4 }
 0x656   : > { %v4265_v61 = vrot.slane %v4222_v0, 4 }
 0x658   : > { %v4141_v38 = vpop.f32.mrf.mxu1 }
 0x659   : > { %v4327_v52 = vrot.slane %v4141_v38, 4  ;;  %v4330_v26 = vsel %vm439_vm3, %v4141_v38, %v4329_v2 }
 0x65a   : > { %v4338_v43 = vperm.slane %v4330_v26, %v8823_v36 }
 0x65b   : > { %v4328_v7 = vsel %vm439_vm3, %v4327_v52, %v8115_v23  ;;  %v4250_v23 = vperm.slane %v8120_v56, %v8798_v31 }
 0x65c   : > { %v4334_v37 = vperm.slane %v4328_v7, %v8823_v36 }
 0x65d   : > { %v4293_v13 = vrot.slane %v4250_v23, 4 }
 0x65e   : > { %v4377_v25 = vrot.slane %v4334_v37, 4 }
 0x660   : > { %v4144_v38 = vpop.f32.mrf.mxu1 }
 0x666   : > { %v4180_v47 = vpop.f32.mrf.mxu3 }
 0x667   : > { %v4227_v48 = vrot.slane %v4180_v47, 4  ;;  %v4230_v58 = vsel %vm439_vm3, %v4180_v47, %v4229_v14 }
 0x668   : > { %v4238_v30 = vperm.slane %v4230_v58, %v8823_v36  ;;  %v4389_v58 = vrot.slane %v4338_v43, 4 }
 0x669   : > { %v4228_v34 = vsel %vm439_vm3, %v4227_v48, %v4098_v57  ;;  %v4289_v48 = vrot.slane %v8210_v16, 4 }
 0x66a   : > { %v4234_v12 = vperm.slane %v4228_v34, %v8823_v36  ;;  %v4275_v9 = vrot.slane %v4238_v30, 4  ;;  %v4278_v35 = vsel %vm439_vm3, %v4238_v30, %v4277_v54  ;;  %v4362_v54 = vperm.slane %v8133_v27, %v8798_v31 }
 0x66b   : > { %v4286_v60 = vperm.slane %v4278_v35, %v8798_v31  ;;  %v4439_v30 = vrot.slane %v4144_v38, 4  ;;  %v4374_v27 = vperm.slane %v8082_v17, %v8798_v31 }
 0x66c   : > { %v4263_v42 = vrot.slane %v4234_v12, 4  ;;  %v4276_v1 = vsel %vm439_vm3, %v4275_v9, %v4226_v59  ;;  %v4266_v8 = vsel %vm439_vm3, %v4234_v12, %v4265_v61  ;;  %v4441_v12 = vrot.slane %v8130_v21, 4 }
 0x66d   : > { %v4302_v20 = vsel %vm439_vm3, %v4286_v60, %v4301_v50  ;;  %v4299_v44 = vrot.slane %v4286_v60, 4  ;;  %v8190_v40 = vperm.slane %v4276_v1, %v8798_v31  ;;  %v4274_v18 = vperm.slane %v4266_v8, %v8798_v31 }
 0x66e   : > { %4660 = vrot.lane.b32.xlu1 %v4302_v20, %s5158_s16  ;;  %v4182_v62 = vpop.f32.mrf.mxu3  ;;  %v4264_v56 = vsel %vm439_vm3, %v4263_v42, %v4222_v0  ;;  %v8236_v60 = vperm.slane %v8085_v49, %v8798_v31  ;;  %v4442_v50 = vsel %vm439_vm3, %v4144_v38, %v4441_v12  ;;  %v4405_v7 = vrot.slane %v4362_v54, 4 }
 0x66f   : > { %v4339_v10 = vrot.slane %v4182_v62, 4  ;;  %v4342_v57 = vsel %vm439_vm3, %v4182_v62, %v4341_v51  ;;  %v4300_v39 = vsel %vm439_vm3, %v4299_v44, %v4262_v41  ;;  %v4298_v6 = vsel %vm439_vm3, %v8190_v40, %v4297_v19  ;;  %v4103_v41 = vpop.f32.mrf.mxu0 }
 0x670   : > { %v4350_v53 = vperm.slane %v4342_v57, %v8823_v36  ;;  %4656 = vrot.lane.b32.xlu0 %v4300_v39, %s5156_s14  ;;  %4652 = vrot.lane.b32.xlu2 %v4298_v6, %s5154_s9  ;;  %v4291_v15 = vrot.slane %v4274_v18, 4  ;;  %v8215_v59 = vperm.slane %v4264_v56, %v8798_v31  ;;  %v4294_v0 = vsel %vm439_vm3, %v4274_v18, %v4293_v13  ;;  %v4146_v39 = vpop.f32.mrf.mxu1 }
 0x671   : > { %v4340_v24 = vsel %vm439_vm3, %v4339_v10, %v4100_v3  ;;  %v4453_v3 = vrot.slane %v4103_v41, 4  ;;  %v4440_v42 = vsel %vm439_vm3, %v4439_v30, %v8130_v21  ;;  %v4413_v49 = vrot.slane %v4374_v27, 4 }
 0x672   : > { %v4346_v14 = vperm.slane %v4340_v24, %v8823_v36  ;;  %v4387_v47 = vrot.slane %v4350_v53, 4  ;;  %v4292_v34 = vsel %vm439_vm3, %v4291_v15, %v4250_v23  ;;  %v4290_v2 = vsel %vm439_vm3, %v8215_v59, %v4289_v48 }
 0x673   : > { %v4390_v9 = vsel %vm439_vm3, %v4350_v53, %v4389_v58  ;;  %v4409_v26 = vrot.slane %v8236_v60, 4  ;;  %v8250_v62 = vperm.slane %v4440_v42, %v8823_v36  ;;  %v4450_v21 = vperm.slane %v4442_v50, %v8823_v36 }
 0x674   : > { %v4378_v52 = vsel %vm439_vm3, %v4346_v14, %v4377_v25  ;;  %v4388_v35 = vsel %vm439_vm3, %v4387_v47, %v4338_v43  ;;  %v4398_v19 = vperm.slane %v4390_v9, %v8798_v31  ;;  %v4375_v17 = vrot.slane %v4346_v14, 4 }
 0x675   : > { %v4386_v51 = vperm.slane %v4378_v52, %v8798_v31  ;;  %v8244_v20 = vperm.slane %v4388_v35, %v8798_v31  ;;  %v4553_v56 = vrot.slane %v8156_v29, 4  ;;  %v8265_v14 = vperm.slane %v8139_v55, %v8798_v31 }
 0x676   : > { %4648 = vrot.lane.b32.xlu1 %v4294_v0, %s5158_s16  ;;  %v4185_v28 = vpop.f32.mrf.mxu3  ;;  %v4414_v10 = vsel %vm439_vm3, %v4398_v19, %v4413_v49  ;;  %v4376_v53 = vsel %vm439_vm3, %v4375_v17, %v4334_v37  ;;  %v4411_v43 = vrot.slane %v4398_v19, 4  ;;  %v4489_v13 = vrot.slane %v8250_v62, 4 }
 0x677   : > { %v4451_v61 = vrot.slane %v4185_v28, 4  ;;  %v4454_v1 = vsel %vm439_vm3, %v4185_v28, %v4453_v3  ;;  %v4406_v8 = vsel %vm439_vm3, %v4386_v51, %v4405_v7  ;;  %v4105_v18 = vpop.f32.mrf.mxu0  ;;  %v4410_v57 = vsel %vm439_vm3, %v8244_v20, %v4409_v26 }
 0x678   : > { %4644 = vrot.lane.b32.xlu0 %v4292_v34, %s5156_s14  ;;  %4640 = vrot.lane.b32.xlu2 %v4290_v2, %s5154_s9  ;;  %v4462_v23 = vperm.slane %v4454_v1, %v8823_v36  ;;  %v4565_v24 = vrot.slane %v4105_v18, 4  ;;  %v4501_v15 = vrot.slane %v4450_v21, 4  ;;  %v4403_v47 = vrot.slane %v4386_v51, 4 }
 0x679   : > { %v4452_v44 = vsel %vm439_vm3, %v4451_v61, %v4103_v41  ;;  %v4554_v41 = vsel %vm439_vm3, %v4146_v39, %v4553_v56  ;;  %v8270_v0 = vperm.slane %v4376_v53, %v8798_v31  ;;  %v4551_v58 = vrot.slane %v4146_v39, 4 }
 0x67a   : > { %v4458_v6 = vperm.slane %v4452_v44, %v8823_v36  ;;  %v4499_v25 = vrot.slane %v4462_v23, 4  ;;  %v4502_v37 = vsel %vm439_vm3, %v4462_v23, %v4501_v15  ;;  %v4412_v55 = vsel %vm439_vm3, %v4411_v43, %v4374_v27 }
 0x67b   : > { %v4401_v52 = vrot.slane %v8265_v14, 4  ;;  %v4562_v30 = vperm.slane %v4554_v41, %v8823_v36  ;;  %v4404_v3 = vsel %vm439_vm3, %v4403_v47, %v4362_v54  ;;  %v8282_v34 = vperm.slane %v8096_v63, %v8798_v31 }
 0x67c   : > { %v4490_v48 = vsel %vm439_vm3, %v4458_v6, %v4489_v13  ;;  %v4500_v2 = vsel %vm439_vm3, %v4499_v25, %v4450_v21  ;;  %v8286_v12 = vperm.slane %v4502_v37, %v8798_v31  ;;  %v4552_v63 = vsel %vm439_vm3, %v4551_v58, %v8156_v29 }
 0x67d   : > { %v4402_v35 = vsel %vm439_vm3, %v8270_v0, %v4401_v52  ;;  %v4498_v27 = vperm.slane %v4490_v48, %v8798_v31  ;;  %v8297_v54 = vperm.slane %v4500_v2, %v8798_v31  ;;  %v4613_v51 = vrot.slane %v4562_v30, 4 }
 0x67e   : > { %4672 = vrot.lane.b32.xlu1 %v4406_v8, %s5158_s16  ;;  %v4187_v38 = vpop.f32.mrf.mxu3  ;;  %v4521_v7 = vrot.slane %v8282_v34, 4  ;;  %v4523_v42 = vrot.slane %v8286_v12, 4  ;;  %v4558_v19 = vperm.slane %v4552_v63, %v8823_v36  ;;  %v4487_v17 = vrot.slane %v4458_v6, 4 }
 0x67f   : > { %v4566_v28 = vsel %vm439_vm3, %v4187_v38, %v4565_v24  ;;  %v4563_v9 = vrot.slane %v4187_v38, 4  ;;  %v4515_v1 = vrot.slane %v4498_v27, 4  ;;  %v4486_v29 = vperm.slane %v8093_v22, %v8798_v31 }
 0x680   : > { %4684 = vrot.lane.b32.xlu0 %v4414_v10, %s5158_s16  ;;  %4676 = vrot.lane.b32.xlu2 %v4410_v57, %s5154_s9  ;;  %v4574_v61 = vperm.slane %v4566_v28, %v8823_v36  ;;  %v4522_v8 = vsel %vm439_vm3, %v8297_v54, %v4521_v7  ;;  %v4474_v49 = vperm.slane %v8150_v11, %v8798_v31  ;;  %v4601_v10 = vrot.slane %v4558_v19, 4 }
 0x681   : > { %v4564_v50 = vsel %vm439_vm3, %v4563_v9, %v4105_v18  ;;  %v4524_v23 = vsel %vm439_vm3, %v4523_v42, %v4486_v29  ;;  %v4488_v22 = vsel %vm439_vm3, %v4487_v17, %v8250_v62  ;;  %v8321_v11 = vperm.slane %v8159_v5, %v8798_v31 }
 0x682   : > { %v4614_v44 = vsel %vm439_vm3, %v4574_v61, %v4613_v51  ;;  %v4570_v26 = vperm.slane %v4564_v50, %v8823_v36  ;;  %v4516_v18 = vsel %vm439_vm3, %v4515_v1, %v4474_v49  ;;  %v4517_v57 = vrot.slane %v4474_v49, 4 }
 0x683   : > { %v4622_v21 = vperm.slane %v4614_v44, %v8798_v31  ;;  %v8325_v39 = vperm.slane %v4488_v22, %v8798_v31  ;;  %v4611_v56 = vrot.slane %v4574_v61, 4  ;;  %v4513_v43 = vrot.slane %v8321_v11, 4 }
 0x684   : > { %v4602_v36 = vsel %vm439_vm3, %v4570_v26, %v4601_v10  ;;  %v4599_v53 = vrot.slane %v4570_v26, 4  ;;  %v4518_v24 = vsel %vm439_vm3, %v4498_v27, %v4517_v57  ;;  %v4598_v62 = vperm.slane %v8102_v32, %v8798_v31 }
 0x685   : > { %v4635_v6 = vrot.slane %v4622_v21, 4  ;;  %v4610_v13 = vperm.slane %v4602_v36, %v8798_v31  ;;  %v4514_v5 = vsel %vm439_vm3, %v8325_v39, %v4513_v43  ;;  %v4612_v25 = vsel %vm439_vm3, %v4611_v56, %v4562_v30 }
 0x686   : > { %4680 = vrot.lane.b32.xlu1 %v4412_v55, %s5156_s14  ;;  %v4600_v38 = vsel %vm439_vm3, %v4599_v53, %v4558_v19  ;;  %v8342_v32 = vperm.slane %v8105_v46, %v8798_v31  ;;  %v8346_v41 = vperm.slane %v8170_v4, %v8798_v31  ;;  %v4586_v37 = vperm.slane %v8166_v45, %v8798_v31 }
 0x687   : > { %v4636_v15 = vsel %vm439_vm3, %v4635_v6, %v4598_v62  ;;  %v4627_v47 = vrot.slane %v4610_v13, 4  ;;  %v8351_v48 = vperm.slane %v4612_v25, %v8798_v31  ;;  %v8354_v58 = vperm.slane %v4600_v38, %v8798_v31 }
 0x688   : > { %4668 = vrot.lane.b32.xlu0 %v4404_v3, %s5156_s14  ;;  %4664 = vrot.lane.b32.xlu2 %v4402_v35, %s5154_s9  ;;  %v4633_v55 = vrot.slane %v8342_v32, 4  ;;  %v4625_v46 = vrot.slane %v8346_v41, 4  ;;  %v4637_v31 = vrot.slane %v4598_v62, 4  ;;  %v4629_v30 = vrot.slane %v4586_v37, 4 }
 0x689   : > { %v4628_v28 = vsel %vm439_vm3, %v4627_v47, %v4586_v37  ;;  %v4525_v3 = vrot.slane %v4486_v29, 4  ;;  %v4295_v63 = vrot.slane %v8190_v40, 4  ;;  %v4287_v17 = vrot.slane %v8215_v59, 4 }
 0x68a   : > { %v4634_v4 = vsel %vm439_vm3, %v8351_v48, %v4633_v55  ;;  %v4626_v45 = vsel %vm439_vm3, %v8354_v58, %v4625_v46  ;;  %v4638_v52 = vsel %vm439_vm3, %v4622_v21, %v4637_v31  ;;  %v4630_v2 = vsel %vm439_vm3, %v4610_v13, %v4629_v30 }
 0x68b   : > { %v4526_v9 = vsel %vm439_vm3, %v8286_v12, %v4525_v3  ;;  %v4296_v50 = vsel %vm439_vm3, %v4295_v63, %v8177_v33  ;;  %v4288_v44 = vsel %vm439_vm3, %v4287_v17, %v8210_v16  ;;  %v4399_v10 = vrot.slane %v8270_v0, 4 }
 0x68c   : > { %v4519_v43 = vrot.slane %v8297_v54, 4  ;;  %v4511_v47 = vrot.slane %v8325_v39, 4  ;;  %v4623_v31 = vrot.slane %v8354_v58, 4 }
 0x68d   : > { %v4400_v57 = vsel %vm439_vm3, %v4399_v10, %v8265_v14 }
 0x68e   : > { %4700 = vrot.lane.b32.xlu1 %v4522_v8, %s5154_s9  ;;  %v4520_v14 = vsel %vm439_vm3, %v4519_v43, %v8282_v34 }
 0x690   : > { %4704 = vrot.lane.b32.xlu0 %v4524_v23, %s5156_s14  ;;  %4692 = vrot.lane.b32.xlu2 %v4516_v18, %s5156_s14  ;;  %v4407_v18 = vrot.slane %v8244_v20, 4 }
 0x692   : > { %v4408_v16 = vsel %vm439_vm3, %v4407_v18, %v8236_v60 }
 0x696   : > { %4696 = vrot.lane.b32.xlu1 %v4518_v24, %s5158_s16 }
 0x698   : > { %4688 = vrot.lane.b32.xlu0 %v4514_v5, %s5154_s9  ;;  %4728 = vrot.lane.b32.xlu2 %v4636_v15, %s5156_s14 }
 0x69e   : > { %4716 = vrot.lane.b32.xlu1 %v4628_v28, %s5156_s14  ;;  %v4512_v28 = vsel %vm439_vm3, %v4511_v47, %v8321_v11 }
 0x6a0   : > { %4724 = vrot.lane.b32.xlu0 %v4634_v4, %s5154_s9  ;;  %4712 = vrot.lane.b32.xlu2 %v4626_v45, %s5154_s9  ;;  %s4854_s9 = sshll.u32 %s5276_s20, 6  ;;  %v4631_v45 = vrot.slane %v8351_v48, 4  ;;  %v4624_v48 = vsel %vm439_vm3, %v4623_v31, %v8346_v41 }
 0x6a1   : > { %s8381_s14 = scalar_lea.vmem [#allocation3], %s4854_s9  ;;  %s5105_s9 = scalar_lea.hbm %s8474_s7, 128 }
 0x6a2   : > { %s4781_s22 = sshll.u32 %s8381_s14, 4  ;;  %s4782_s22 = int_to_ptr.vmem [resolvable:$true] %s4781_s22 }
 0x6a6   : > { %4732 = vrot.lane.b32.xlu1 %v4638_v52, %s5158_s16  ;;  %v4632_v52 = vsel %vm439_vm3, %v4631_v45, %v8342_v32 }
 0x6a8   : > { %4720 = vrot.lane.b32.xlu0 %v4630_v2, %s5158_s16  ;;  %4708 = vrot.lane.b32.xlu2 %v4526_v9, %s5158_s16  ;;  %s8824_s16 = sadd.s32 4294967295, %s5147_s27  }
 0x6a9   : > { %s5011_s21 = sshll.u32 %s8824_s16, 6 }
 0x6aa   : > { %s4779_s17 = scalar_lea.hbm %s8474_s7, %s5011_s21 }
 0x6ab   : > { %s4783_s23 = sshll.u32 %s4779_s17, 4  ;;  %s4784_s23 = int_to_ptr.hbm [resolvable:$true] %s4783_s23 }
 0x6ac   : > { %s5099_s13 = sshra.s32 %s4784_s23, 4  ;;  %s5100_s13 = int_to_ptr.hbm [resolvable:$true] %s5099_s13 }
 0x6ad   : > { %s5101_s29 = scalar_lea.hbm %s5100_s13, 64  ;;  %p5106_p2 = scmp.lt.s32.totalorder %s5100_s13, %s8474_s7 }
 0x6ae   : > { %p5102_p13 = scmp.ne.s32.totalorder %s5100_s13, %s5101_s29  ;;  %p5107_p3 = scmp.lt.s32.totalorder %s5105_s9, %s5101_s29 }
 0x6b0   : > { %p5103_p0 = pnand %p5102_p13, %p5239_p6  ;;  %p5108_p4 = por %p5107_p3, %p5106_p2 }
 0x6b2   : > { %p5104_p1 = pneg %p5103_p0 }
 0x6b4   : > { %p5109_p5 = pnand %p5108_p4, %p5104_p1 }
 0x6ca   : > { %v4653_v35 = vpop.permute.xlu2 %4652 }
 0x6cb   : > { %v4738_v7 = vsel %vm659_vm8, %v4296_v50, %v4653_v35 }
 0x6d2   : > { %v4641_v27 = vpop.permute.xlu2 %4640 }
 0x6d3   : > { %v4735_v33 = vsel %vm659_vm8, %v4288_v44, %v4641_v27 }
 0x6da   : > { %v4677_v61 = vpop.permute.xlu2 %4676 }
 0x6db   : > { %v4744_v22 = vsel %vm659_vm8, %v4408_v16, %v4677_v61 }
 0x6e0   : > { %v4661_v51 = vpop.permute.xlu1 %4660 }
 0x6e2   : > { %v4657_v42 = vpop.permute.xlu0 %4656  ;;  %v4665_v1 = vpop.permute.xlu2 %4664 }
 0x6e3   : > { %v4739_v12 = vsel %vm665_vm10, %v4738_v7, %v4657_v42  ;;  %v4741_v53 = vsel %vm659_vm8, %v4400_v57, %v4665_v1 }
 0x6e4   : > { %v4740_v19 = vsel %vm671_vm12, %v4739_v12, %v4661_v51 }
 0x6e5   : > { %4760 = vst [vmem:[%s8381_s14 + $0x8] sm:$0xff] %v4740_v19 }
 0x6e8   : > { %v4649_v40 = vpop.permute.xlu1 %4648 }
 0x6ea   : > { %v4645_v8 = vpop.permute.xlu0 %4644  ;;  %v4693_v29 = vpop.permute.xlu2 %4692 }
 0x6eb   : > { %v4736_v49 = vsel %vm665_vm10, %v4735_v33, %v4645_v8 }
 0x6ec   : > { %v4737_v26 = vsel %vm671_vm12, %v4736_v49, %v4649_v40 }
 0x6ed   : > { %4759 = vst [vmem:[%s8381_s14] sm:$0xff] %v4737_v26 }
 0x6f0   : > { %v4673_v59 = vpop.permute.xlu1 %4672 }
 0x6f2   : > { %v4685_v21 = vpop.permute.xlu0 %4684  ;;  %v4729_v23 = vpop.permute.xlu2 %4728 }
 0x6f8   : > { %v4681_v36 = vpop.permute.xlu1 %4680 }
 0x6f9   : > { %v4745_v6 = vsel %vm665_vm10, %v4744_v22, %v4681_v36 }
 0x6fa   : > { %v4746_v56 = vsel %vm671_vm12, %v4745_v6, %v4685_v21  ;;  %v4669_v24 = vpop.permute.xlu0 %4668  ;;  %v4713_v20 = vpop.permute.xlu2 %4712 }
 0x6fb   : > { %4762 = vst [vmem:[%s8381_s14 + $0x18] sm:$0xff] %v4746_v56  ;;  %v4742_v0 = vsel %vm665_vm10, %v4741_v53, %v4669_v24  ;;  %v4753_v3 = vsel %vm659_vm8, %v4624_v48, %v4713_v20 }
 0x6fc   : > { %v4743_v60 = vsel %vm671_vm12, %v4742_v0, %v4673_v59 }
 0x6fd   : > { %4761 = vst [vmem:[%s8381_s14 + $0x10] sm:$0xff] %v4743_v60 }
 0x700   : > { %v4701_v62 = vpop.permute.xlu1 %4700 }
 0x701   : > { %v4750_v13 = vsel %vm659_vm8, %v4520_v14, %v4701_v62 }
 0x702   : > { %v4705_v5 = vpop.permute.xlu0 %4704  ;;  %v4709_v15 = vpop.permute.xlu2 %4708 }
 0x703   : > { %v4751_v25 = vsel %vm665_vm10, %v4750_v13, %v4705_v5 }
 0x704   : > { %v4752_v38 = vsel %vm671_vm12, %v4751_v25, %v4709_v15 }
 0x705   : > { %4764 = vst [vmem:[%s8381_s14 + $0x28] sm:$0xff] %v4752_v38 }
 0x708   : > { %v4697_v54 = vpop.permute.xlu1 %4696 }
 0x70a   : > { %v4689_v37 = vpop.permute.xlu0 %4688 }
 0x70b   : > { %v4747_v34 = vsel %vm659_vm8, %v4512_v28, %v4689_v37 }
 0x70c   : > { %v4748_v55 = vsel %vm665_vm10, %v4747_v34, %v4693_v29 }
 0x70d   : > { %v4749_v46 = vsel %vm671_vm12, %v4748_v55, %v4697_v54 }
 0x70e   : > { %4763 = vst [vmem:[%s8381_s14 + $0x20] sm:$0xff] %v4749_v46 }
 0x710   : > { %v4717_v4 = vpop.permute.xlu1 %4716 }
 0x711   : > { %v4754_v2 = vsel %vm665_vm10, %v4753_v3, %v4717_v4 }
 0x712   : > { %v4725_v39 = vpop.permute.xlu0 %4724 }
 0x713   : > { %v4756_v11 = vsel %vm659_vm8, %v4632_v52, %v4725_v39 }
 0x714   : > { %v4757_v30 = vsel %vm665_vm10, %v4756_v11, %v4729_v23 }
 0x718   : > { %v4733_v58 = vpop.permute.xlu1 %4732 }
 0x719   : > { %v4758_v32 = vsel %vm671_vm12, %v4757_v30, %v4733_v58 }
 0x71a   : > { %4766 = vst [vmem:[%s8381_s14 + $0x38] sm:$0xff] %v4758_v32  ;;  %v4721_v9 = vpop.permute.xlu0 %4720 }
 0x71b   : > { %v4755_v35 = vsel %vm671_vm12, %v4754_v2, %v4721_v9 }
 0x71c   : > { %4765 = vst [vmem:[%s8381_s14 + $0x30] sm:$0xff] %v4755_v35 }
 0x71d   : > { %5112 = shalt.err (!%p5109_p5)
}
 0x71e   : > { %5015 = dma.vmem_to_hbm [thread:$0]  (%p5239_p6), %s4782_s22, 1024, %s4784_s23, %s4768_s28  }
 0x71f PF: > { %s4795_s20 = sand.u32 1, %s5135_s24   ;;  %p5018_p7 = pnand %p4851_p9, %p5243_p8 }
 0x720   : > { %s4796_s14 = scalar_lea.sflag [#allocation4], %s4795_s20 }
 0x721   : > { %p5019_p10 = pneg %p5018_p7 }
 0x723   : > { %5130 = dma.done.wait (%p5019_p10), %s4796_s14, 1024  }
 0x724   : > { %5132 = vsyncadd (%p5019_p10), %s4796_s14, 4294966272  ;;  %p17_p11 = scmp.ge.s32.totalorder %s5224_s30, 4   ;;  %s8825_s24 = smov %s5139_s25 }
 0x725   : > { %s8826_s25 = smov %s5143_s26  ;;  %s8827_s26 = smov %s5237_s10 }
 0x726   : > { %s8828_s27 = smov %s5224_s30  ;;  %19 = sbr.rel (!%p17_p11) target bundleno = 3 (0x3), region = 129 }
 0x72b   :  { %4802 = vsyncpa [#allocation4], 1 }
 0x72c   :  { %4804 = vsyncpa [#allocation4 + $0x1], 1 }

</bundles_post_ra>
